<compile_context>
chip_gen: v6e
topology: v6e:2x2x1
jax: 0.10.0
libtpu: 0.0.40
codegen_flags: <defaults>
</compile_context>

<pallas_src>
import functools
import math

import jax
import jax.numpy as jnp
from jax.experimental import pallas as pl
from jax.experimental.pallas import tpu as pltpu

# Make the plain-JAX reference matmuls use full f32 precision so they match the
# Pallas kernels' preferred_element_type=f32 MXU accumulation on the f32 path.
jax.config.update("jax_default_matmul_precision", "highest")

LN_EPS = 1e-5
# Above v5e's 16 MiB default scoped limit, at/below v6e & v7x defaults; tiny blocks
# here never come close to it, but real sizes need the headroom on v5e.
VMEM_LIMIT_BYTES = 32 * 1024 * 1024


def _pick_block_m(m, target=512):
    """Row-tile size: full extent for small problems, 512 (multiple of 8) otherwise."""
    return m if m <= target else target


def _normalize(x):
    """LayerNorm without the affine part (gamma/beta are folded into weights)."""
    mu = jnp.mean(x, axis=-1, keepdims=True)
    xc = x - mu
    var = jnp.mean(xc * xc, axis=-1, keepdims=True)
    return xc * jax.lax.rsqrt(var + LN_EPS)


# ---------------------------------------------------------------------------
# Kernel 1: fully-fused cross-attention layer (per-batch grid step)
#   out = to_out( softmax( (LN_q(xt) Wq) (LN_k(xs) Wk)^T * scale ) (LN_v(xs) Wv) ) + xt
# ---------------------------------------------------------------------------
def _attention_layer_kernel(xt_ref, xs_ref, wq_ref, bq_ref, wkv_ref, bkv_ref,
                            wo_ref, bo_ref, out_ref, *, heads, dim_head, scale,
                            mxu_dtype):
    f32 = jnp.float32
    inner = heads * dim_head

    xt = xt_ref[0].astype(f32)                       # (n_t, d)
    xs = xs_ref[0].astype(f32)                       # (n_s, d)

    # LayerNorm statistics (affines folded into wq/wkv/bq/bkv in the wrapper).
    xt_n = _normalize(xt)
    xs_n = _normalize(xs)                            # normalized once, shared by K & V

    # Fused projections: q = (n_t, inner), kv = (n_s, 2*inner) -> lane-dense outputs.
    q = jnp.dot(xt_n.astype(mxu_dtype), wq_ref[...].astype(mxu_dtype),
                preferred_element_type=f32) + bq_ref[...].astype(f32)
    kv = jnp.dot(xs_n.astype(mxu_dtype), wkv_ref[...].astype(mxu_dtype),
                 preferred_element_type=f32) + bkv_ref[...].astype(f32)

    # Per-head attention, unrolled over the (static) head count; scores keep n_s on
    # the lane axis, all intermediates stay in VMEM.
    head_outs = []
    for hh in range(heads):
        lo = hh * dim_head
        qh = q[:, lo:lo + dim_head]                  # (n_t, dh)
        kh = kv[:, lo:lo + dim_head]                 # (n_s, dh)
        vh = kv[:, inner + lo:inner + lo + dim_head] # (n_s, dh)

        s = jnp.dot(qh.astype(mxu_dtype), kh.astype(mxu_dtype).T,
                    preferred_element_type=f32) * scale          # (n_t, n_s)
        s = s - jnp.max(s, axis=-1, keepdims=True)
        p = jnp.exp(s)
        denom = jnp.sum(p, axis=-1, keepdims=True)
        if mxu_dtype == jnp.bfloat16:
            # EUP approximate reciprocal (free slot) on the fast path.
            p = p * pl.reciprocal(denom, approx=True)
        else:
            p = p / denom
        head_outs.append(jnp.dot(p.astype(mxu_dtype), vh.astype(mxu_dtype),
                                 preferred_element_type=f32))    # (n_t, dh)

    o = jnp.concatenate(head_outs, axis=-1)          # (n_t, inner), lane-dense

    out = jnp.dot(o.astype(mxu_dtype), wo_ref[...].astype(mxu_dtype),
                  preferred_element_type=f32) + bo_ref[...].astype(f32) + xt
    out_ref[0] = out.astype(out_ref.dtype)


def attention_layer(target_x, source_x, p, *, heads, dim_head, mxu_dtype):
    b, n_t, d = target_x.shape
    n_s = source_x.shape[1]
    inner = heads * dim_head

    # Fold LayerNorm affines into the projection weights (exact rewrite):
    #   LN(x) @ W = normalize(x) @ (g[:,None] * W) + (b @ W)
    wq_f = p["ln_q_g"][:, None] * p["w_q"]
    bq_f = (p["ln_q_b"] @ p["w_q"]).reshape(1, inner)
    wkv_f = jnp.concatenate([p["ln_k_g"][:, None] * p["w_k"],
                             p["ln_v_g"][:, None] * p["w_v"]], axis=1)
    bkv_f = jnp.concatenate([p["ln_k_b"] @ p["w_k"],
                             p["ln_v_b"] @ p["w_v"]], axis=0).reshape(1, 2 * inner)

    kernel = functools.partial(_attention_layer_kernel, heads=heads,
                               dim_head=dim_head, scale=dim_head ** -0.5,
                               mxu_dtype=mxu_dtype)
    return pl.pallas_call(
        kernel,
        out_shape=jax.ShapeDtypeStruct((b, n_t, d), target_x.dtype),
        grid_spec=pltpu.PrefetchScalarGridSpec(
            num_scalar_prefetch=0,
            grid=(b,),                                  # parallel over batch (2 TCs on v7x)
            in_specs=[
                pl.BlockSpec((1, n_t, d), lambda i: (i, 0, 0)),
                pl.BlockSpec((1, n_s, d), lambda i: (i, 0, 0)),
                pl.BlockSpec((d, inner), lambda i: (0, 0)),
                pl.BlockSpec((1, inner), lambda i: (0, 0)),
                pl.BlockSpec((d, 2 * inner), lambda i: (0, 0)),
                pl.BlockSpec((1, 2 * inner), lambda i: (0, 0)),
                pl.BlockSpec((inner, d), lambda i: (0, 0)),
                pl.BlockSpec((1, d), lambda i: (0, 0)),
            ],
            out_specs=pl.BlockSpec((1, n_t, d), lambda i: (i, 0, 0)),
        ),
        compiler_params=pltpu.CompilerParams(
            dimension_semantics=("parallel",),
            vmem_limit_bytes=VMEM_LIMIT_BYTES),
    )(target_x, source_x, wq_f, bq_f, wkv_f, bkv_f, p["w_o"], p["b_o"].reshape(1, d))


# ---------------------------------------------------------------------------
# Kernel 2: fused FeedForward block with pre-norm and residual
#   out = x + GELU(LN(x) @ W1 + b1) @ W2 + b2     (LN affine folded into W1/b1)
# ---------------------------------------------------------------------------
def _ffn_kernel(x_ref, w1_ref, b1_ref, w2_ref, b2_ref, out_ref, *, mxu_dtype):
    f32 = jnp.float32
    x = x_ref[...].astype(f32)                        # (bm, d)
    xn = _normalize(x)
    h = jnp.dot(xn.astype(mxu_dtype), w1_ref[...].astype(mxu_dtype),
                preferred_element_type=f32) + b1_ref[...].astype(f32)
    # NOTE: tanh-approx GELU (PyTorch nn.GELU defaults to exact erf; diff is ~1e-3 max).
    h = jax.nn.gelu(h, approximate=True)
    y = jnp.dot(h.astype(mxu_dtype), w2_ref[...].astype(mxu_dtype),
                preferred_element_type=f32) + b2_ref[...].astype(f32)
    out_ref[...] = (x + y).astype(out_ref.dtype)


def ffn_layer(x, p, *, mxu_dtype):
    b, n, d = x.shape
    m = b * n
    d_h = p["w1"].shape[1]
    # Fold LN affine into W1/b1 (exact rewrite).
    w1_f = p["ln_g"][:, None] * p["w1"]
    b1_f = (p["ln_b"] @ p["w1"] + p["b1"]).reshape(1, d_h)
    bm = _pick_block_m(m)
    out = pl.pallas_call(
        functools.partial(_ffn_kernel, mxu_dtype=mxu_dtype),
        out_shape=jax.ShapeDtypeStruct((m, d), x.dtype),
        grid_spec=pltpu.PrefetchScalarGridSpec(
            num_scalar_prefetch=0,
            grid=(pl.cdiv(m, bm),),
            in_specs=[
                pl.BlockSpec((bm, d), lambda i: (i, 0)),
                pl.BlockSpec((d, d_h), lambda i: (0, 0)),
                pl.BlockSpec((1, d_h), lambda i: (0, 0)),
                pl.BlockSpec((d_h, d), lambda i: (0, 0)),
                pl.BlockSpec((1, d), lambda i: (0, 0)),
            ],
            out_specs=pl.BlockSpec((bm, d), lambda i: (i, 0)),
        ),
        compiler_params=pltpu.CompilerParams(
            dimension_semantics=("parallel",),
            vmem_limit_bytes=VMEM_LIMIT_BYTES),
    )(x.reshape(m, d), w1_f, b1_f, p["w2"], p["b2"].reshape(1, d))
    return out.reshape(b, n, d)


# ---------------------------------------------------------------------------
# Model wrapper
# ---------------------------------------------------------------------------
@functools.partial(jax.jit, static_argnames=("heads", "dim_head", "mxu_dtype"))
def cross_transformer_forward(source_x, target_x, params, *, heads, dim_head,
                              mxu_dtype=jnp.float32):
    n_s = source_x.shape[1]
    n_t = target_x.shape[1]
    # positional embedding add; emb_dropout = 0.0 -> identity (skipped)
    source_x = source_x + params["pos_s"][:, :n_s]
    target_x = target_x + params["pos_t"][:, :n_t]
    for layer in params["layers"]:
        target_x = attention_layer(target_x, source_x, layer["attn"],
                                   heads=heads, dim_head=dim_head, mxu_dtype=mxu_dtype)
        target_x = ffn_layer(target_x, layer["ff"], mxu_dtype=mxu_dtype)
    return target_x


# ---------------------------------------------------------------------------
# Parameter init + pure-JAX reference (standard LN-then-matmul order, unfolded)
# ---------------------------------------------------------------------------
def init_params(key, *, dim, depth, heads, dim_head, mlp_dim, n_s, n_t):
    inner = heads * dim_head

    def dense(k, fan_in, fan_out):
        return jax.random.normal(k, (fan_in, fan_out), jnp.float32) / math.sqrt(fan_in)

    def ln_pair(k, d):
        kg, kb = jax.random.split(k)
        return (1.0 + 0.1 * jax.random.normal(kg, (d,), jnp.float32),
                0.05 * jax.random.normal(kb, (d,), jnp.float32))

    k_pos_s, k_pos_t, k_layers = jax.random.split(key, 3)
    layers = []
    for lk in jax.random.split(k_layers, depth):
        ks = jax.random.split(lk, 13)
        gq, bq = ln_pair(ks[9], dim)
        gk, bk = ln_pair(ks[10], dim)
        gv, bv = ln_pair(ks[11], dim)
        gf, bf = ln_pair(ks[12], dim)
        attn = {
            "ln_q_g": gq, "ln_q_b": bq,
            "ln_k_g": gk, "ln_k_b": bk,
            "ln_v_g": gv, "ln_v_b": bv,
            "w_q": dense(ks[0], dim, inner),
            "w_k": dense(ks[1], dim, inner),
            "w_v": dense(ks[2], dim, inner),
            "w_o": dense(ks[3], inner, dim),
            "b_o": 0.1 * jax.random.normal(ks[4], (dim,), jnp.float32),
        }
        ff = {
            "ln_g": gf, "ln_b": bf,
            "w1": dense(ks[5], dim, mlp_dim),
            "b1": 0.1 * jax.random.normal(ks[6], (mlp_dim,), jnp.float32),
            "w2": dense(ks[7], mlp_dim, dim),
            "b2": 0.1 * jax.random.normal(ks[8], (dim,), jnp.float32),
        }
        layers.append({"attn": attn, "ff": ff})
    return {
        "pos_s": jax.random.normal(k_pos_s, (1, n_s, dim), jnp.float32),
        "pos_t": jax.random.normal(k_pos_t, (1, n_t, dim), jnp.float32),
        "layers": layers,
    }


def reference_forward(source_x, target_x, params, *, heads, dim_head):
    def ln(x, g, b):
        mu = jnp.mean(x, -1, keepdims=True)
        var = jnp.mean((x - mu) ** 2, -1, keepdims=True)
        return (x - mu) / jnp.sqrt(var + LN_EPS) * g + b

    sx = source_x + params["pos_s"][:, : source_x.shape[1]]
    tx = target_x + params["pos_t"][:, : target_x.shape[1]]
    for layer in params["layers"]:
        a = layer["attn"]
        q = ln(tx, a["ln_q_g"], a["ln_q_b"]) @ a["w_q"]
        k = ln(sx, a["ln_k_g"], a["ln_k_b"]) @ a["w_k"]
        v = ln(sx, a["ln_v_g"], a["ln_v_b"]) @ a["w_v"]
        b, n_t, _ = q.shape
        n_s = k.shape[1]
        qh = q.reshape(b, n_t, heads, dim_head).transpose(0, 2, 1, 3)
        kh = k.reshape(b, n_s, heads, dim_head).transpose(0, 2, 1, 3)
        vh = v.reshape(b, n_s, heads, dim_head).transpose(0, 2, 1, 3)
        dots = jnp.einsum("bhid,bhjd->bhij", qh, kh) * dim_head ** -0.5
        attn = jax.nn.softmax(dots, axis=-1)
        o = jnp.einsum("bhij,bhjd->bhid", attn, vh)
        o = o.transpose(0, 2, 1, 3).reshape(b, n_t, heads * dim_head)
        tx = o @ a["w_o"] + a["b_o"] + tx
        f = layer["ff"]
        h = ln(tx, f["ln_g"], f["ln_b"])
        h = jax.nn.gelu(h @ f["w1"] + f["b1"], approximate=True)
        tx = h @ f["w2"] + f["b2"] + tx
    return tx


if __name__ == "__main__":
    key = jax.random.PRNGKey(0)
    B, N_S, N_T = 2, 16, 16
    DIM, DEPTH, HEADS, DIM_HEAD, MLP_DIM = 32, 2, 4, 8, 64

    k_params, k_src, k_tgt = jax.random.split(key, 3)
    params = init_params(k_params, dim=DIM, depth=DEPTH, heads=HEADS,
                         dim_head=DIM_HEAD, mlp_dim=MLP_DIM, n_s=N_S, n_t=N_T)
    source_x = jax.random.normal(k_src, (B, N_S, DIM), jnp.float32)
    target_x = jax.random.normal(k_tgt, (B, N_T, DIM), jnp.float32)

    ref = reference_forward(source_x, target_x, params, heads=HEADS, dim_head=DIM_HEAD)

    # f32 MXU path: strict check against the plain-JAX reference.
    out = cross_transformer_forward(source_x, target_x, params,
                                    heads=HEADS, dim_head=DIM_HEAD,
                                    mxu_dtype=jnp.float32)
    out = jax.block_until_ready(out)
    assert out.shape == (B, N_T, DIM)
    max_err = float(jnp.max(jnp.abs(out - ref)))
    assert max_err < 2e-3, f"f32 mismatch vs reference: max abs err = {max_err}"

    # bf16 MXU-operand fast path (v6e/v7x): f32 accumulation, loose sanity check only.
    out_bf16 = cross_transformer_forward(source_x, target_x, params,
                                         heads=HEADS, dim_head=DIM_HEAD,
                                         mxu_dtype=jnp.bfloat16)
    out_bf16 = jax.block_until_ready(out_bf16)
    assert bool(jnp.all(jnp.isfinite(out_bf16))), "bf16 path produced non-finite values"
    max_err_bf16 = float(jnp.max(jnp.abs(out_bf16 - ref)))
    assert max_err_bf16 < 0.5, f"bf16 path diverged: max abs err = {max_err_bf16}"

    print("KERNEL_OK")
</pallas_src>

<mosaic_0001>
module attributes {stable_mosaic.version = 11 : i64} {
  func.func @_attention_layer_kernel(%arg0: i32, %arg1: memref<1x16x32xf32, #tpu.memory_space<vmem>>, %arg2: memref<1x16x32xf32, #tpu.memory_space<vmem>>, %arg3: memref<32x32xf32, #tpu.memory_space<vmem>>, %arg4: memref<1x32xf32, #tpu.memory_space<vmem>>, %arg5: memref<32x64xf32, #tpu.memory_space<vmem>>, %arg6: memref<1x64xf32, #tpu.memory_space<vmem>>, %arg7: memref<32x32xf32, #tpu.memory_space<vmem>>, %arg8: memref<1x32xf32, #tpu.memory_space<vmem>>, %arg9: memref<1x16x32xf32, #tpu.memory_space<vmem>>) attributes {dimension_semantics = [#tpu.dimension_semantics<parallel>], iteration_bounds = array<i64: 2>, scalar_prefetch = 0 : i64, scratch_operands = 0 : i64, tpu.core_type = #tpu.core_type<tc>, window_params = [{transform_indices = @transform_0, window_bounds = array<i64: 1, 16, 32>}, {transform_indices = @transform_1, window_bounds = array<i64: 1, 16, 32>}, {pipeline_mode = #tpu.pipeline_mode<synchronous>, transform_indices = @transform_2, window_bounds = array<i64: 32, 32>}, {pipeline_mode = #tpu.pipeline_mode<synchronous>, transform_indices = @transform_3, window_bounds = array<i64: 1, 32>}, {pipeline_mode = #tpu.pipeline_mode<synchronous>, transform_indices = @transform_4, window_bounds = array<i64: 32, 64>}, {pipeline_mode = #tpu.pipeline_mode<synchronous>, transform_indices = @transform_5, window_bounds = array<i64: 1, 64>}, {pipeline_mode = #tpu.pipeline_mode<synchronous>, transform_indices = @transform_6, window_bounds = array<i64: 32, 32>}, {pipeline_mode = #tpu.pipeline_mode<synchronous>, transform_indices = @transform_7, window_bounds = array<i64: 1, 32>}, {transform_indices = @transform_8, window_bounds = array<i64: 1, 16, 32>}]} {
    %c0 = arith.constant 0 : index
    %c0_0 = arith.constant 0 : index
    %c0_1 = arith.constant 0 : index
    %0 = vector.load %arg1[%c0, %c0_0, %c0_1] : memref<1x16x32xf32, #tpu.memory_space<vmem>>, vector<1x16x32xf32>
    %1 = vector.shape_cast %0 : vector<1x16x32xf32> to vector<16x32xf32>
    %c0_2 = arith.constant 0 : index
    %c0_3 = arith.constant 0 : index
    %c0_4 = arith.constant 0 : index
    %2 = vector.load %arg2[%c0_2, %c0_3, %c0_4] : memref<1x16x32xf32, #tpu.memory_space<vmem>>, vector<1x16x32xf32>
    %3 = vector.shape_cast %2 : vector<1x16x32xf32> to vector<16x32xf32>
    %cst = arith.constant dense<0.000000e+00> : vector<16xf32>
    %4 = vector.multi_reduction <add>, %1, %cst [1] : vector<16x32xf32> to vector<16xf32>
    %5 = vector.shape_cast %4 : vector<16xf32> to vector<16x1xf32>
    %cst_5 = arith.constant 3.200000e+01 : f32
    %6 = vector.broadcast %cst_5 : f32 to vector<16x1xf32>
    %7 = arith.divf %5, %6 : vector<16x1xf32>
    %8 = vector.broadcast %7 : vector<16x1xf32> to vector<16x32xf32>
    %9 = arith.subf %1, %8 : vector<16x32xf32>
    %10 = arith.mulf %9, %9 : vector<16x32xf32>
    %cst_6 = arith.constant dense<0.000000e+00> : vector<16xf32>
    %11 = vector.multi_reduction <add>, %10, %cst_6 [1] : vector<16x32xf32> to vector<16xf32>
    %12 = vector.shape_cast %11 : vector<16xf32> to vector<16x1xf32>
    %cst_7 = arith.constant 3.200000e+01 : f32
    %13 = vector.broadcast %cst_7 : f32 to vector<16x1xf32>
    %14 = arith.divf %12, %13 : vector<16x1xf32>
    %cst_8 = arith.constant 9.99999974E-6 : f32
    %15 = vector.broadcast %cst_8 : f32 to vector<16x1xf32>
    %16 = arith.addf %14, %15 : vector<16x1xf32>
    %17 = math.rsqrt %16 : vector<16x1xf32>
    %18 = vector.broadcast %17 : vector<16x1xf32> to vector<16x32xf32>
    %19 = arith.mulf %9, %18 : vector<16x32xf32>
    %cst_9 = arith.constant dense<0.000000e+00> : vector<16xf32>
    %20 = vector.multi_reduction <add>, %3, %cst_9 [1] : vector<16x32xf32> to vector<16xf32>
    %21 = vector.shape_cast %20 : vector<16xf32> to vector<16x1xf32>
    %cst_10 = arith.constant 3.200000e+01 : f32
    %22 = vector.broadcast %cst_10 : f32 to vector<16x1xf32>
    %23 = arith.divf %21, %22 : vector<16x1xf32>
    %24 = vector.broadcast %23 : vector<16x1xf32> to vector<16x32xf32>
    %25 = arith.subf %3, %24 : vector<16x32xf32>
    %26 = arith.mulf %25, %25 : vector<16x32xf32>
    %cst_11 = arith.constant dense<0.000000e+00> : vector<16xf32>
    %27 = vector.multi_reduction <add>, %26, %cst_11 [1] : vector<16x32xf32> to vector<16xf32>
    %28 = vector.shape_cast %27 : vector<16xf32> to vector<16x1xf32>
    %cst_12 = arith.constant 3.200000e+01 : f32
    %29 = vector.broadcast %cst_12 : f32 to vector<16x1xf32>
    %30 = arith.divf %28, %29 : vector<16x1xf32>
    %cst_13 = arith.constant 9.99999974E-6 : f32
    %31 = vector.broadcast %cst_13 : f32 to vector<16x1xf32>
    %32 = arith.addf %30, %31 : vector<16x1xf32>
    %33 = math.rsqrt %32 : vector<16x1xf32>
    %34 = vector.broadcast %33 : vector<16x1xf32> to vector<16x32xf32>
    %35 = arith.mulf %25, %34 : vector<16x32xf32>
    %c0_14 = arith.constant 0 : index
    %c0_15 = arith.constant 0 : index
    %36 = vector.load %arg3[%c0_14, %c0_15] : memref<32x32xf32, #tpu.memory_space<vmem>>, vector<32x32xf32>
    %cst_16 = arith.constant dense<0.000000e+00> : vector<16x32xf32>
    %37 = tpu.matmul %19, %36, %cst_16 {dimension_numbers = #tpu.dot_dimension_numbers<[1], [0], [0], [1], [0, 0, 1, 1], [], []>, precision = #tpu.contract_precision<fp32>} : vector<16x32xf32>, vector<32x32xf32>, vector<16x32xf32> -> vector<16x32xf32>
    %c0_17 = arith.constant 0 : index
    %c0_18 = arith.constant 0 : index
    %38 = vector.load %arg4[%c0_17, %c0_18] : memref<1x32xf32, #tpu.memory_space<vmem>>, vector<1x32xf32>
    %39 = vector.broadcast %38 : vector<1x32xf32> to vector<16x32xf32>
    %40 = arith.addf %37, %39 : vector<16x32xf32>
    %c0_19 = arith.constant 0 : index
    %c0_20 = arith.constant 0 : index
    %41 = vector.load %arg5[%c0_19, %c0_20] : memref<32x64xf32, #tpu.memory_space<vmem>>, vector<32x64xf32>
    %cst_21 = arith.constant dense<0.000000e+00> : vector<16x64xf32>
    %42 = tpu.matmul %35, %41, %cst_21 {dimension_numbers = #tpu.dot_dimension_numbers<[1], [0], [0], [1], [0, 0, 1, 1], [], []>, precision = #tpu.contract_precision<fp32>} : vector<16x32xf32>, vector<32x64xf32>, vector<16x64xf32> -> vector<16x64xf32>
    %c0_22 = arith.constant 0 : index
    %c0_23 = arith.constant 0 : index
    %43 = vector.load %arg6[%c0_22, %c0_23] : memref<1x64xf32, #tpu.memory_space<vmem>>, vector<1x64xf32>
    %44 = vector.broadcast %43 : vector<1x64xf32> to vector<16x64xf32>
    %45 = arith.addf %42, %44 : vector<16x64xf32>
    %46 = vector.extract_strided_slice %40 {offsets = [0, 0], sizes = [16, 8], strides = [1, 1]} : vector<16x32xf32> to vector<16x8xf32>
    %47 = vector.extract_strided_slice %45 {offsets = [0, 0], sizes = [16, 8], strides = [1, 1]} : vector<16x64xf32> to vector<16x8xf32>
    %48 = vector.extract_strided_slice %45 {offsets = [0, 32], sizes = [16, 8], strides = [1, 1]} : vector<16x64xf32> to vector<16x8xf32>
    %49 = tpu.transpose %47, [1, 0] : vector<16x8xf32> -> vector<8x16xf32>
    %cst_24 = arith.constant dense<0.000000e+00> : vector<16x16xf32>
    %50 = tpu.matmul %46, %49, %cst_24 {dimension_numbers = #tpu.dot_dimension_numbers<[1], [0], [0], [1], [0, 0, 1, 1], [], []>, precision = #tpu.contract_precision<fp32>} : vector<16x8xf32>, vector<8x16xf32>, vector<16x16xf32> -> vector<16x16xf32>
    %cst_25 = arith.constant 0.353553385 : f32
    %51 = vector.broadcast %cst_25 : f32 to vector<16x16xf32>
    %52 = arith.mulf %50, %51 : vector<16x16xf32>
    %cst_26 = arith.constant dense<0xFF800000> : vector<16xf32>
    %53 = vector.multi_reduction <maximumf>, %52, %cst_26 [1] : vector<16x16xf32> to vector<16xf32>
    %54 = vector.shape_cast %53 : vector<16xf32> to vector<16x1xf32>
    %55 = vector.broadcast %54 : vector<16x1xf32> to vector<16x16xf32>
    %56 = arith.subf %52, %55 : vector<16x16xf32>
    %57 = math.exp %56 : vector<16x16xf32>
    %cst_27 = arith.constant dense<0.000000e+00> : vector<16xf32>
    %58 = vector.multi_reduction <add>, %57, %cst_27 [1] : vector<16x16xf32> to vector<16xf32>
    %59 = vector.shape_cast %58 : vector<16xf32> to vector<16x1xf32>
    %60 = vector.broadcast %59 : vector<16x1xf32> to vector<16x16xf32>
    %61 = arith.divf %57, %60 : vector<16x16xf32>
    %cst_28 = arith.constant dense<0.000000e+00> : vector<16x8xf32>
    %62 = tpu.matmul %61, %48, %cst_28 {dimension_numbers = #tpu.dot_dimension_numbers<[1], [0], [0], [1], [0, 0, 1, 1], [], []>, precision = #tpu.contract_precision<fp32>} : vector<16x16xf32>, vector<16x8xf32>, vector<16x8xf32> -> vector<16x8xf32>
    %63 = vector.extract_strided_slice %40 {offsets = [0, 8], sizes = [16, 8], strides = [1, 1]} : vector<16x32xf32> to vector<16x8xf32>
    %64 = vector.extract_strided_slice %45 {offsets = [0, 8], sizes = [16, 8], strides = [1, 1]} : vector<16x64xf32> to vector<16x8xf32>
    %65 = vector.extract_strided_slice %45 {offsets = [0, 40], sizes = [16, 8], strides = [1, 1]} : vector<16x64xf32> to vector<16x8xf32>
    %66 = tpu.transpose %64, [1, 0] : vector<16x8xf32> -> vector<8x16xf32>
    %cst_29 = arith.constant dense<0.000000e+00> : vector<16x16xf32>
    %67 = tpu.matmul %63, %66, %cst_29 {dimension_numbers = #tpu.dot_dimension_numbers<[1], [0], [0], [1], [0, 0, 1, 1], [], []>, precision = #tpu.contract_precision<fp32>} : vector<16x8xf32>, vector<8x16xf32>, vector<16x16xf32> -> vector<16x16xf32>
    %cst_30 = arith.constant 0.353553385 : f32
    %68 = vector.broadcast %cst_30 : f32 to vector<16x16xf32>
    %69 = arith.mulf %67, %68 : vector<16x16xf32>
    %cst_31 = arith.constant dense<0xFF800000> : vector<16xf32>
    %70 = vector.multi_reduction <maximumf>, %69, %cst_31 [1] : vector<16x16xf32> to vector<16xf32>
    %71 = vector.shape_cast %70 : vector<16xf32> to vector<16x1xf32>
    %72 = vector.broadcast %71 : vector<16x1xf32> to vector<16x16xf32>
    %73 = arith.subf %69, %72 : vector<16x16xf32>
    %74 = math.exp %73 : vector<16x16xf32>
    %cst_32 = arith.constant dense<0.000000e+00> : vector<16xf32>
    %75 = vector.multi_reduction <add>, %74, %cst_32 [1] : vector<16x16xf32> to vector<16xf32>
    %76 = vector.shape_cast %75 : vector<16xf32> to vector<16x1xf32>
    %77 = vector.broadcast %76 : vector<16x1xf32> to vector<16x16xf32>
    %78 = arith.divf %74, %77 : vector<16x16xf32>
    %cst_33 = arith.constant dense<0.000000e+00> : vector<16x8xf32>
    %79 = tpu.matmul %78, %65, %cst_33 {dimension_numbers = #tpu.dot_dimension_numbers<[1], [0], [0], [1], [0, 0, 1, 1], [], []>, precision = #tpu.contract_precision<fp32>} : vector<16x16xf32>, vector<16x8xf32>, vector<16x8xf32> -> vector<16x8xf32>
    %80 = vector.extract_strided_slice %40 {offsets = [0, 16], sizes = [16, 8], strides = [1, 1]} : vector<16x32xf32> to vector<16x8xf32>
    %81 = vector.extract_strided_slice %45 {offsets = [0, 16], sizes = [16, 8], strides = [1, 1]} : vector<16x64xf32> to vector<16x8xf32>
    %82 = vector.extract_strided_slice %45 {offsets = [0, 48], sizes = [16, 8], strides = [1, 1]} : vector<16x64xf32> to vector<16x8xf32>
    %83 = tpu.transpose %81, [1, 0] : vector<16x8xf32> -> vector<8x16xf32>
    %cst_34 = arith.constant dense<0.000000e+00> : vector<16x16xf32>
    %84 = tpu.matmul %80, %83, %cst_34 {dimension_numbers = #tpu.dot_dimension_numbers<[1], [0], [0], [1], [0, 0, 1, 1], [], []>, precision = #tpu.contract_precision<fp32>} : vector<16x8xf32>, vector<8x16xf32>, vector<16x16xf32> -> vector<16x16xf32>
    %cst_35 = arith.constant 0.353553385 : f32
    %85 = vector.broadcast %cst_35 : f32 to vector<16x16xf32>
    %86 = arith.mulf %84, %85 : vector<16x16xf32>
    %cst_36 = arith.constant dense<0xFF800000> : vector<16xf32>
    %87 = vector.multi_reduction <maximumf>, %86, %cst_36 [1] : vector<16x16xf32> to vector<16xf32>
    %88 = vector.shape_cast %87 : vector<16xf32> to vector<16x1xf32>
    %89 = vector.broadcast %88 : vector<16x1xf32> to vector<16x16xf32>
    %90 = arith.subf %86, %89 : vector<16x16xf32>
    %91 = math.exp %90 : vector<16x16xf32>
    %cst_37 = arith.constant dense<0.000000e+00> : vector<16xf32>
    %92 = vector.multi_reduction <add>, %91, %cst_37 [1] : vector<16x16xf32> to vector<16xf32>
    %93 = vector.shape_cast %92 : vector<16xf32> to vector<16x1xf32>
    %94 = vector.broadcast %93 : vector<16x1xf32> to vector<16x16xf32>
    %95 = arith.divf %91, %94 : vector<16x16xf32>
    %cst_38 = arith.constant dense<0.000000e+00> : vector<16x8xf32>
    %96 = tpu.matmul %95, %82, %cst_38 {dimension_numbers = #tpu.dot_dimension_numbers<[1], [0], [0], [1], [0, 0, 1, 1], [], []>, precision = #tpu.contract_precision<fp32>} : vector<16x16xf32>, vector<16x8xf32>, vector<16x8xf32> -> vector<16x8xf32>
    %97 = vector.extract_strided_slice %40 {offsets = [0, 24], sizes = [16, 8], strides = [1, 1]} : vector<16x32xf32> to vector<16x8xf32>
    %98 = vector.extract_strided_slice %45 {offsets = [0, 24], sizes = [16, 8], strides = [1, 1]} : vector<16x64xf32> to vector<16x8xf32>
    %99 = vector.extract_strided_slice %45 {offsets = [0, 56], sizes = [16, 8], strides = [1, 1]} : vector<16x64xf32> to vector<16x8xf32>
    %100 = tpu.transpose %98, [1, 0] : vector<16x8xf32> -> vector<8x16xf32>
    %cst_39 = arith.constant dense<0.000000e+00> : vector<16x16xf32>
    %101 = tpu.matmul %97, %100, %cst_39 {dimension_numbers = #tpu.dot_dimension_numbers<[1], [0], [0], [1], [0, 0, 1, 1], [], []>, precision = #tpu.contract_precision<fp32>} : vector<16x8xf32>, vector<8x16xf32>, vector<16x16xf32> -> vector<16x16xf32>
    %cst_40 = arith.constant 0.353553385 : f32
    %102 = vector.broadcast %cst_40 : f32 to vector<16x16xf32>
    %103 = arith.mulf %101, %102 : vector<16x16xf32>
    %cst_41 = arith.constant dense<0xFF800000> : vector<16xf32>
    %104 = vector.multi_reduction <maximumf>, %103, %cst_41 [1] : vector<16x16xf32> to vector<16xf32>
    %105 = vector.shape_cast %104 : vector<16xf32> to vector<16x1xf32>
    %106 = vector.broadcast %105 : vector<16x1xf32> to vector<16x16xf32>
    %107 = arith.subf %103, %106 : vector<16x16xf32>
    %108 = math.exp %107 : vector<16x16xf32>
    %cst_42 = arith.constant dense<0.000000e+00> : vector<16xf32>
    %109 = vector.multi_reduction <add>, %108, %cst_42 [1] : vector<16x16xf32> to vector<16xf32>
    %110 = vector.shape_cast %109 : vector<16xf32> to vector<16x1xf32>
    %111 = vector.broadcast %110 : vector<16x1xf32> to vector<16x16xf32>
    %112 = arith.divf %108, %111 : vector<16x16xf32>
    %cst_43 = arith.constant dense<0.000000e+00> : vector<16x8xf32>
    %113 = tpu.matmul %112, %99, %cst_43 {dimension_numbers = #tpu.dot_dimension_numbers<[1], [0], [0], [1], [0, 0, 1, 1], [], []>, precision = #tpu.contract_precision<fp32>} : vector<16x16xf32>, vector<16x8xf32>, vector<16x8xf32> -> vector<16x8xf32>
    %114 = tpu.concatenate %62, %79, %96, %113 in 1 : vector<16x8xf32>, vector<16x8xf32>, vector<16x8xf32>, vector<16x8xf32> -> vector<16x32xf32>
    %c0_44 = arith.constant 0 : index
    %c0_45 = arith.constant 0 : index
    %115 = vector.load %arg7[%c0_44, %c0_45] : memref<32x32xf32, #tpu.memory_space<vmem>>, vector<32x32xf32>
    %cst_46 = arith.constant dense<0.000000e+00> : vector<16x32xf32>
    %116 = tpu.matmul %114, %115, %cst_46 {dimension_numbers = #tpu.dot_dimension_numbers<[1], [0], [0], [1], [0, 0, 1, 1], [], []>, precision = #tpu.contract_precision<fp32>} : vector<16x32xf32>, vector<32x32xf32>, vector<16x32xf32> -> vector<16x32xf32>
    %c0_47 = arith.constant 0 : index
    %c0_48 = arith.constant 0 : index
    %117 = vector.load %arg8[%c0_47, %c0_48] : memref<1x32xf32, #tpu.memory_space<vmem>>, vector<1x32xf32>
    %118 = vector.broadcast %117 : vector<1x32xf32> to vector<16x32xf32>
    %119 = arith.addf %116, %118 : vector<16x32xf32>
    %120 = arith.addf %119, %1 : vector<16x32xf32>
    %c0_49 = arith.constant 0 : index
    %c0_50 = arith.constant 0 : index
    %c0_51 = arith.constant 0 : index
    %121 = vector.load %arg9[%c0_49, %c0_50, %c0_51] : memref<1x16x32xf32, #tpu.memory_space<vmem>>, vector<1x16x32xf32>
    %122 = vector.shape_cast %121 : vector<1x16x32xf32> to vector<16x32xf32>
    %123 = vector.shape_cast %120 : vector<16x32xf32> to vector<1x16x32xf32>
    tpu.vector_store %arg9[%c0_49, %c0_50, %c0_51], %123 {strides = array<i32>} : memref<1x16x32xf32, #tpu.memory_space<vmem>>, vector<1x16x32xf32>,
    return
  }
  func.func @transform_0(%arg0: i32) -> (i32, i32, i32) {
    %c0_i32 = arith.constant 0 : i32
    %c0_i32_0 = arith.constant 0 : i32
    %c0_i32_1 = arith.constant 0 : i32
    return %arg0, %c0_i32, %c0_i32_0 : i32, i32, i32
  }
  func.func @transform_1(%arg0: i32) -> (i32, i32, i32) {
    %c0_i32 = arith.constant 0 : i32
    %c0_i32_0 = arith.constant 0 : i32
    %c0_i32_1 = arith.constant 0 : i32
    return %arg0, %c0_i32, %c0_i32_0 : i32, i32, i32
  }
  func.func @transform_2(%arg0: i32) -> (i32, i32) {
    %c0_i32 = arith.constant 0 : i32
    %c0_i32_0 = arith.constant 0 : i32
    %c0_i32_1 = arith.constant 0 : i32
    return %c0_i32, %c0_i32_0 : i32, i32
  }
  func.func @transform_3(%arg0: i32) -> (i32, i32) {
    %c0_i32 = arith.constant 0 : i32
    %c0_i32_0 = arith.constant 0 : i32
    %c0_i32_1 = arith.constant 0 : i32
    return %c0_i32, %c0_i32_0 : i32, i32
  }
  func.func @transform_4(%arg0: i32) -> (i32, i32) {
    %c0_i32 = arith.constant 0 : i32
    %c0_i32_0 = arith.constant 0 : i32
    %c0_i32_1 = arith.constant 0 : i32
    return %c0_i32, %c0_i32_0 : i32, i32
  }
  func.func @transform_5(%arg0: i32) -> (i32, i32) {
    %c0_i32 = arith.constant 0 : i32
    %c0_i32_0 = arith.constant 0 : i32
    %c0_i32_1 = arith.constant 0 : i32
    return %c0_i32, %c0_i32_0 : i32, i32
  }
  func.func @transform_6(%arg0: i32) -> (i32, i32) {
    %c0_i32 = arith.constant 0 : i32
    %c0_i32_0 = arith.constant 0 : i32
    %c0_i32_1 = arith.constant 0 : i32
    return %c0_i32, %c0_i32_0 : i32, i32
  }
  func.func @transform_7(%arg0: i32) -> (i32, i32) {
    %c0_i32 = arith.constant 0 : i32
    %c0_i32_0 = arith.constant 0 : i32
    %c0_i32_1 = arith.constant 0 : i32
    return %c0_i32, %c0_i32_0 : i32, i32
  }
  func.func @transform_8(%arg0: i32) -> (i32, i32, i32) {
    %c0_i32 = arith.constant 0 : i32
    %c0_i32_0 = arith.constant 0 : i32
    %c0_i32_1 = arith.constant 0 : i32
    return %arg0, %c0_i32, %c0_i32_0 : i32, i32, i32
  }
}

module attributes {stable_mosaic.version = 11 : i64} {
  func.func @_ffn_kernel(%arg0: i32, %arg1: memref<32x32xf32, #tpu.memory_space<vmem>>, %arg2: memref<32x64xf32, #tpu.memory_space<vmem>>, %arg3: memref<1x64xf32, #tpu.memory_space<vmem>>, %arg4: memref<64x32xf32, #tpu.memory_space<vmem>>, %arg5: memref<1x32xf32, #tpu.memory_space<vmem>>, %arg6: memref<32x32xf32, #tpu.memory_space<vmem>>) attributes {dimension_semantics = [#tpu.dimension_semantics<parallel>], iteration_bounds = array<i64: 1>, scalar_prefetch = 0 : i64, scratch_operands = 0 : i64, tpu.core_type = #tpu.core_type<tc>, window_params = [{transform_indices = @transform_0, window_bounds = array<i64: 32, 32>}, {pipeline_mode = #tpu.pipeline_mode<synchronous>, transform_indices = @transform_1, window_bounds = array<i64: 32, 64>}, {pipeline_mode = #tpu.pipeline_mode<synchronous>, transform_indices = @transform_2, window_bounds = array<i64: 1, 64>}, {pipeline_mode = #tpu.pipeline_mode<synchronous>, transform_indices = @transform_3, window_bounds = array<i64: 64, 32>}, {pipeline_mode = #tpu.pipeline_mode<synchronous>, transform_indices = @transform_4, window_bounds = array<i64: 1, 32>}, {transform_indices = @transform_5, window_bounds = array<i64: 32, 32>}]} {
    %c0 = arith.constant 0 : index
    %c0_0 = arith.constant 0 : index
    %0 = vector.load %arg1[%c0, %c0_0] : memref<32x32xf32, #tpu.memory_space<vmem>>, vector<32x32xf32>
    %cst = arith.constant dense<0.000000e+00> : vector<32xf32>
    %1 = vector.multi_reduction <add>, %0, %cst [1] : vector<32x32xf32> to vector<32xf32>
    %2 = vector.shape_cast %1 : vector<32xf32> to vector<32x1xf32>
    %cst_1 = arith.constant 3.200000e+01 : f32
    %3 = vector.broadcast %cst_1 : f32 to vector<32x1xf32>
    %4 = arith.divf %2, %3 : vector<32x1xf32>
    %5 = vector.broadcast %4 : vector<32x1xf32> to vector<32x32xf32>
    %6 = arith.subf %0, %5 : vector<32x32xf32>
    %7 = arith.mulf %6, %6 : vector<32x32xf32>
    %cst_2 = arith.constant dense<0.000000e+00> : vector<32xf32>
    %8 = vector.multi_reduction <add>, %7, %cst_2 [1] : vector<32x32xf32> to vector<32xf32>
    %9 = vector.shape_cast %8 : vector<32xf32> to vector<32x1xf32>
    %cst_3 = arith.constant 3.200000e+01 : f32
    %10 = vector.broadcast %cst_3 : f32 to vector<32x1xf32>
    %11 = arith.divf %9, %10 : vector<32x1xf32>
    %cst_4 = arith.constant 9.99999974E-6 : f32
    %12 = vector.broadcast %cst_4 : f32 to vector<32x1xf32>
    %13 = arith.addf %11, %12 : vector<32x1xf32>
    %14 = math.rsqrt %13 : vector<32x1xf32>
    %15 = vector.broadcast %14 : vector<32x1xf32> to vector<32x32xf32>
    %16 = arith.mulf %6, %15 : vector<32x32xf32>
    %c0_5 = arith.constant 0 : index
    %c0_6 = arith.constant 0 : index
    %17 = vector.load %arg2[%c0_5, %c0_6] : memref<32x64xf32, #tpu.memory_space<vmem>>, vector<32x64xf32>
    %cst_7 = arith.constant dense<0.000000e+00> : vector<32x64xf32>
    %18 = tpu.matmul %16, %17, %cst_7 {dimension_numbers = #tpu.dot_dimension_numbers<[1], [0], [0], [1], [0, 0, 1, 1], [], []>, precision = #tpu.contract_precision<fp32>} : vector<32x32xf32>, vector<32x64xf32>, vector<32x64xf32> -> vector<32x64xf32>
    %c0_8 = arith.constant 0 : index
    %c0_9 = arith.constant 0 : index
    %19 = vector.load %arg3[%c0_8, %c0_9] : memref<1x64xf32, #tpu.memory_space<vmem>>, vector<1x64xf32>
    %20 = vector.broadcast %19 : vector<1x64xf32> to vector<32x64xf32>
    %21 = arith.addf %18, %20 : vector<32x64xf32>
    %22 = arith.mulf %21, %21 : vector<32x64xf32>
    %23 = arith.mulf %21, %22 : vector<32x64xf32>
    %cst_10 = arith.constant 4.471500e-02 : f32
    %24 = vector.broadcast %cst_10 : f32 to vector<32x64xf32>
    %25 = arith.mulf %24, %23 : vector<32x64xf32>
    %26 = arith.addf %21, %25 : vector<32x64xf32>
    %cst_11 = arith.constant 0.797884583 : f32
    %27 = vector.broadcast %cst_11 : f32 to vector<32x64xf32>
    %28 = arith.mulf %27, %26 : vector<32x64xf32>
    %29 = math.tanh %28 : vector<32x64xf32>
    %cst_12 = arith.constant 1.000000e+00 : f32
    %30 = vector.broadcast %cst_12 : f32 to vector<32x64xf32>
    %31 = arith.addf %30, %29 : vector<32x64xf32>
    %cst_13 = arith.constant 5.000000e-01 : f32
    %32 = vector.broadcast %cst_13 : f32 to vector<32x64xf32>
    %33 = arith.mulf %32, %31 : vector<32x64xf32>
    %34 = arith.mulf %21, %33 : vector<32x64xf32>
    %c0_14 = arith.constant 0 : index
    %c0_15 = arith.constant 0 : index
    %35 = vector.load %arg4[%c0_14, %c0_15] : memref<64x32xf32, #tpu.memory_space<vmem>>, vector<64x32xf32>
    %cst_16 = arith.constant dense<0.000000e+00> : vector<32x32xf32>
    %36 = tpu.matmul %34, %35, %cst_16 {dimension_numbers = #tpu.dot_dimension_numbers<[1], [0], [0], [1], [0, 0, 1, 1], [], []>, precision = #tpu.contract_precision<fp32>} : vector<32x64xf32>, vector<64x32xf32>, vector<32x32xf32> -> vector<32x32xf32>
    %c0_17 = arith.constant 0 : index
    %c0_18 = arith.constant 0 : index
    %37 = vector.load %arg5[%c0_17, %c0_18] : memref<1x32xf32, #tpu.memory_space<vmem>>, vector<1x32xf32>
    %38 = vector.broadcast %37 : vector<1x32xf32> to vector<32x32xf32>
    %39 = arith.addf %36, %38 : vector<32x32xf32>
    %40 = arith.addf %0, %39 : vector<32x32xf32>
    %c0_19 = arith.constant 0 : index
    %c0_20 = arith.constant 0 : index
    %41 = vector.load %arg6[%c0_19, %c0_20] : memref<32x32xf32, #tpu.memory_space<vmem>>, vector<32x32xf32>
    tpu.vector_store %arg6[%c0_19, %c0_20], %40 {strides = array<i32>} : memref<32x32xf32, #tpu.memory_space<vmem>>, vector<32x32xf32>,
    return
  }
  func.func @transform_0(%arg0: i32) -> (i32, i32) {
    %c0_i32 = arith.constant 0 : i32
    %c0_i32_0 = arith.constant 0 : i32
    return %arg0, %c0_i32 : i32, i32
  }
  func.func @transform_1(%arg0: i32) -> (i32, i32) {
    %c0_i32 = arith.constant 0 : i32
    %c0_i32_0 = arith.constant 0 : i32
    %c0_i32_1 = arith.constant 0 : i32
    return %c0_i32, %c0_i32_0 : i32, i32
  }
  func.func @transform_2(%arg0: i32) -> (i32, i32) {
    %c0_i32 = arith.constant 0 : i32
    %c0_i32_0 = arith.constant 0 : i32
    %c0_i32_1 = arith.constant 0 : i32
    return %c0_i32, %c0_i32_0 : i32, i32
  }
  func.func @transform_3(%arg0: i32) -> (i32, i32) {
    %c0_i32 = arith.constant 0 : i32
    %c0_i32_0 = arith.constant 0 : i32
    %c0_i32_1 = arith.constant 0 : i32
    return %c0_i32, %c0_i32_0 : i32, i32
  }
  func.func @transform_4(%arg0: i32) -> (i32, i32) {
    %c0_i32 = arith.constant 0 : i32
    %c0_i32_0 = arith.constant 0 : i32
    %c0_i32_1 = arith.constant 0 : i32
    return %c0_i32, %c0_i32_0 : i32, i32
  }
  func.func @transform_5(%arg0: i32) -> (i32, i32) {
    %c0_i32 = arith.constant 0 : i32
    %c0_i32_0 = arith.constant 0 : i32
    return %arg0, %c0_i32 : i32, i32
  }
}

module attributes {stable_mosaic.version = 11 : i64} {
  func.func @_ffn_kernel(%arg0: i32, %arg1: memref<32x32xf32, #tpu.memory_space<vmem>>, %arg2: memref<32x64xf32, #tpu.memory_space<vmem>>, %arg3: memref<1x64xf32, #tpu.memory_space<vmem>>, %arg4: memref<64x32xf32, #tpu.memory_space<vmem>>, %arg5: memref<1x32xf32, #tpu.memory_space<vmem>>, %arg6: memref<32x32xf32, #tpu.memory_space<vmem>>) attributes {dimension_semantics = [#tpu.dimension_semantics<parallel>], iteration_bounds = array<i64: 1>, scalar_prefetch = 0 : i64, scratch_operands = 0 : i64, tpu.core_type = #tpu.core_type<tc>, window_params = [{transform_indices = @transform_0, window_bounds = array<i64: 32, 32>}, {pipeline_mode = #tpu.pipeline_mode<synchronous>, transform_indices = @transform_1, window_bounds = array<i64: 32, 64>}, {pipeline_mode = #tpu.pipeline_mode<synchronous>, transform_indices = @transform_2, window_bounds = array<i64: 1, 64>}, {pipeline_mode = #tpu.pipeline_mode<synchronous>, transform_indices = @transform_3, window_bounds = array<i64: 64, 32>}, {pipeline_mode = #tpu.pipeline_mode<synchronous>, transform_indices = @transform_4, window_bounds = array<i64: 1, 32>}, {transform_indices = @transform_5, window_bounds = array<i64: 32, 32>}]} {
    %c0 = arith.constant 0 : index
    %c0_0 = arith.constant 0 : index
    %0 = vector.load %arg1[%c0, %c0_0] : memref<32x32xf32, #tpu.memory_space<vmem>>, vector<32x32xf32>
    %cst = arith.constant dense<0.000000e+00> : vector<32xf32>
    %1 = vector.multi_reduction <add>, %0, %cst [1] : vector<32x32xf32> to vector<32xf32>
    %2 = vector.shape_cast %1 : vector<32xf32> to vector<32x1xf32>
    %cst_1 = arith.constant 3.200000e+01 : f32
    %3 = vector.broadcast %cst_1 : f32 to vector<32x1xf32>
    %4 = arith.divf %2, %3 : vector<32x1xf32>
    %5 = vector.broadcast %4 : vector<32x1xf32> to vector<32x32xf32>
    %6 = arith.subf %0, %5 : vector<32x32xf32>
    %7 = arith.mulf %6, %6 : vector<32x32xf32>
    %cst_2 = arith.constant dense<0.000000e+00> : vector<32xf32>
    %8 = vector.multi_reduction <add>, %7, %cst_2 [1] : vector<32x32xf32> to vector<32xf32>
    %9 = vector.shape_cast %8 : vector<32xf32> to vector<32x1xf32>
    %cst_3 = arith.constant 3.200000e+01 : f32
    %10 = vector.broadcast %cst_3 : f32 to vector<32x1xf32>
    %11 = arith.divf %9, %10 : vector<32x1xf32>
    %cst_4 = arith.constant 9.99999974E-6 : f32
    %12 = vector.broadcast %cst_4 : f32 to vector<32x1xf32>
    %13 = arith.addf %11, %12 : vector<32x1xf32>
    %14 = math.rsqrt %13 : vector<32x1xf32>
    %15 = vector.broadcast %14 : vector<32x1xf32> to vector<32x32xf32>
    %16 = arith.mulf %6, %15 : vector<32x32xf32>
    %c0_5 = arith.constant 0 : index
    %c0_6 = arith.constant 0 : index
    %17 = vector.load %arg2[%c0_5, %c0_6] : memref<32x64xf32, #tpu.memory_space<vmem>>, vector<32x64xf32>
    %cst_7 = arith.constant dense<0.000000e+00> : vector<32x64xf32>
    %18 = tpu.matmul %16, %17, %cst_7 {dimension_numbers = #tpu.dot_dimension_numbers<[1], [0], [0], [1], [0, 0, 1, 1], [], []>, precision = #tpu.contract_precision<fp32>} : vector<32x32xf32>, vector<32x64xf32>, vector<32x64xf32> -> vector<32x64xf32>
    %c0_8 = arith.constant 0 : index
    %c0_9 = arith.constant 0 : index
    %19 = vector.load %arg3[%c0_8, %c0_9] : memref<1x64xf32, #tpu.memory_space<vmem>>, vector<1x64xf32>
    %20 = vector.broadcast %19 : vector<1x64xf32> to vector<32x64xf32>
    %21 = arith.addf %18, %20 : vector<32x64xf32>
    %22 = arith.mulf %21, %21 : vector<32x64xf32>
    %23 = arith.mulf %21, %22 : vector<32x64xf32>
    %cst_10 = arith.constant 4.471500e-02 : f32
    %24 = vector.broadcast %cst_10 : f32 to vector<32x64xf32>
    %25 = arith.mulf %24, %23 : vector<32x64xf32>
    %26 = arith.addf %21, %25 : vector<32x64xf32>
    %cst_11 = arith.constant 0.797884583 : f32
    %27 = vector.broadcast %cst_11 : f32 to vector<32x64xf32>
    %28 = arith.mulf %27, %26 : vector<32x64xf32>
    %29 = math.tanh %28 : vector<32x64xf32>
    %cst_12 = arith.constant 1.000000e+00 : f32
    %30 = vector.broadcast %cst_12 : f32 to vector<32x64xf32>
    %31 = arith.addf %30, %29 : vector<32x64xf32>
    %cst_13 = arith.constant 5.000000e-01 : f32
    %32 = vector.broadcast %cst_13 : f32 to vector<32x64xf32>
    %33 = arith.mulf %32, %31 : vector<32x64xf32>
    %34 = arith.mulf %21, %33 : vector<32x64xf32>
    %c0_14 = arith.constant 0 : index
    %c0_15 = arith.constant 0 : index
    %35 = vector.load %arg4[%c0_14, %c0_15] : memref<64x32xf32, #tpu.memory_space<vmem>>, vector<64x32xf32>
    %cst_16 = arith.constant dense<0.000000e+00> : vector<32x32xf32>
    %36 = tpu.matmul %34, %35, %cst_16 {dimension_numbers = #tpu.dot_dimension_numbers<[1], [0], [0], [1], [0, 0, 1, 1], [], []>, precision = #tpu.contract_precision<fp32>} : vector<32x64xf32>, vector<64x32xf32>, vector<32x32xf32> -> vector<32x32xf32>
    %c0_17 = arith.constant 0 : index
    %c0_18 = arith.constant 0 : index
    %37 = vector.load %arg5[%c0_17, %c0_18] : memref<1x32xf32, #tpu.memory_space<vmem>>, vector<1x32xf32>
    %38 = vector.broadcast %37 : vector<1x32xf32> to vector<32x32xf32>
    %39 = arith.addf %36, %38 : vector<32x32xf32>
    %40 = arith.addf %0, %39 : vector<32x32xf32>
    %c0_19 = arith.constant 0 : index
    %c0_20 = arith.constant 0 : index
    %41 = vector.load %arg6[%c0_19, %c0_20] : memref<32x32xf32, #tpu.memory_space<vmem>>, vector<32x32xf32>
    tpu.vector_store %arg6[%c0_19, %c0_20], %40 {strides = array<i32>} : memref<32x32xf32, #tpu.memory_space<vmem>>, vector<32x32xf32>,
    return
  }
  func.func @transform_0(%arg0: i32) -> (i32, i32) {
    %c0_i32 = arith.constant 0 : i32
    %c0_i32_0 = arith.constant 0 : i32
    return %arg0, %c0_i32 : i32, i32
  }
  func.func @transform_1(%arg0: i32) -> (i32, i32) {
    %c0_i32 = arith.constant 0 : i32
    %c0_i32_0 = arith.constant 0 : i32
    %c0_i32_1 = arith.constant 0 : i32
    return %c0_i32, %c0_i32_0 : i32, i32
  }
  func.func @transform_2(%arg0: i32) -> (i32, i32) {
    %c0_i32 = arith.constant 0 : i32
    %c0_i32_0 = arith.constant 0 : i32
    %c0_i32_1 = arith.constant 0 : i32
    return %c0_i32, %c0_i32_0 : i32, i32
  }
  func.func @transform_3(%arg0: i32) -> (i32, i32) {
    %c0_i32 = arith.constant 0 : i32
    %c0_i32_0 = arith.constant 0 : i32
    %c0_i32_1 = arith.constant 0 : i32
    return %c0_i32, %c0_i32_0 : i32, i32
  }
  func.func @transform_4(%arg0: i32) -> (i32, i32) {
    %c0_i32 = arith.constant 0 : i32
    %c0_i32_0 = arith.constant 0 : i32
    %c0_i32_1 = arith.constant 0 : i32
    return %c0_i32, %c0_i32_0 : i32, i32
  }
  func.func @transform_5(%arg0: i32) -> (i32, i32) {
    %c0_i32 = arith.constant 0 : i32
    %c0_i32_0 = arith.constant 0 : i32
    return %arg0, %c0_i32 : i32, i32
  }
}

</mosaic_0001>

<bundles_post_ra>
// kernel: cross_transformer_forward.7
= control target key start
LH: loop header
LB: loop body
LE: loop exit
PB: predicated region body
PF: predicated region fallthrough
CT: control target
= control target key end

     0   :  { %vm25_vm0 = vcmask 261120   ;;  %s2288_s0 = inlined_call_operand.vmem [shape: f32[32,32], index: 0, kind: input, shape index: {}]   ;;  %s2289_s1 = inlined_call_operand.vmem [shape: f32[32,64], index: 1, kind: input, shape index: {}]   ;;  %s2290_s2 = inlined_call_operand.vmem [shape: f32[1,64], index: 2, kind: input, shape index: {}]   ;;  %s2291_s3 = inlined_call_operand.vmem [shape: f32[64,32], index: 3, kind: input, shape index: {}]   ;;  %s2292_s4 = inlined_call_operand.vmem [shape: f32[1,32], index: 4, kind: input, shape index: {}]   ;;  %s2293_s5 = inlined_call_operand.hbm [shape: f32[32,32], index: 5, kind: output, shape index: {}]  }
   0x1   :  { %v21_v0 = vld [vmem:[%s2288_s0] sm:$0xff]  ;;  %v23_v1 = vld [vmem:[%s2288_s0 + $0x10] sm:$0xff]  ;;  %v1894_v2 = vld [vmem:[%s2288_s0 + $0x8] sm:$0xff] }
   0x2   :  { %v26_v3 = vsel %vm25_vm0, %v21_v0, 0.0  ;;  %v32_v4 = vsel %vm25_vm0, %v23_v1, 0.0  ;;  %v24_v5 = vld [vmem:[%s2288_s0 + $0x18] sm:$0xff] }
   0x3   :  { %10 = vsyncpa [#allocation3], 0  ;;  %27 = vadd.xlane.f32.xlu0 %v26_v3  ;;  %33 = vadd.xlane.f32.xlu1 %v32_v4  ;;  %v29_v6 = vsel %vm25_vm0, %v1894_v2, 0.0  ;;  %v35_v7 = vsel %vm25_vm0, %v24_v5, 0.0  ;;  %v82_v28 = vld [vmem:[%s2289_s1 + $0x18] sm:$0xff]  ;;  %v81_v30 = vld [vmem:[%s2289_s1 + $0x10] sm:$0xff] }
   0x4   :  { %v1928_v29 = vand.u32 4294901760, %v82_v28  ;;  %v1936_v32 = vand.u32 4294901760, %v81_v30  ;;  %v80_v33 = vld [vmem:[%s2289_s1 + $0x8] sm:$0xff]  ;;  %v79_v38 = vld [vmem:[%s2289_s1] sm:$0xff]  ;;  %vm767_vm1 = vcmask 523264   ;;  %s1852_s27 = smov [#allocation2]  }
   0x5   :  { %v1942_v34 = vand.u32 4294901760, %v80_v33  ;;  %v1964_v41 = vand.u32 4294901760, %v79_v38  ;;  %s1459_s28 = sshll.u32 %s1852_s27, 4  ;;  %s1460_s28 = int_to_ptr.vmem [resolvable:$true] %s1459_s28 }
   0x6   :  { %v1934_v31 = vsub.f32 %v82_v28, %v1928_v29  ;;  %1592 = vmatprep.subr.mxu0 %v1928_v29  ;;  %v1949_v36 = vsub.f32 %v81_v30, %v1936_v32  ;;  %s1830_s8 = scalar_lea.vmem %s1460_s28, 512  ;;  %p1835_p1 = scmp.lt.s32.totalorder %s1460_s28, %s1460_s28 }
   0x7   :  { %30 = vadd.xlane.f32.xlu0 %v29_v6  ;;  %36 = vadd.xlane.f32.xlu1 %v35_v7  ;;  %v1953_v37 = vsub.f32 %v80_v33, %v1942_v34  ;;  %v1974_v45 = vsub.f32 %v79_v38, %v1964_v41  ;;  %p1831_p0 = scmp.ne.s32.totalorder %s1460_s28, %s1830_s8  ;;  %p1836_p2 = scmp.lt.s32.totalorder %s1830_s8, %s1830_s8 }
   0x8   :  { %1593 = vmatpush3.msra.mxu0 %v1928_v29  ;;  %v1946_v35 = vand.u32 4294901760, %v1934_v31  ;;  %v1962_v40 = vand.u32 4294901760, %v1949_v36 }
   0x9   :  { %1594 = vmatprep.subr.mxu0 %v1936_v32  ;;  %v1968_v42 = vand.u32 4294901760, %v1953_v37  ;;  %v1981_v48 = vand.u32 4294901760, %v1974_v45  ;;  %p1837_p3 = por %p1836_p2, %p1835_p1 }
   0xa   :  { %1595 = vmatpush3.msra.mxu0 %v1936_v32  ;;  %v239_v39 = vsub.f32 %v1934_v31, %v1946_v35  ;;  %v246_v44 = vsub.f32 %v1949_v36, %v1962_v40 }
   0xb   :  { %1596 = vmatprep.subr.mxu0 %v1942_v34  ;;  %v253_v46 = vsub.f32 %v1953_v37, %v1968_v42  ;;  %v260_v50 = vsub.f32 %v1974_v45, %v1981_v48  ;;  %p1838_p4 = pnand %p1837_p3, %p1831_p0 }
   0xc   :  { %1597 = vmatpush3.msra.mxu0 %v1942_v34  ;;  %v240_v43 = vand.u32 4294901760, %v239_v39  ;;  %v247_v47 = vand.u32 4294901760, %v246_v44 }
   0xd   :  { %1598 = vmatprep.subr.mxu0 %v1964_v41  ;;  %v254_v49 = vand.u32 4294901760, %v253_v46  ;;  %v261_v51 = vand.u32 4294901760, %v260_v50 }
   0xe   :  { %1599 = vmatpush3.msra.mxu0 %v1964_v41  ;;  %1606 = vmatprep.subr.mxu1 %v240_v43 }
   0xf   :  { %1620 = vmatprep.subr.mxu0 %v1934_v31  ;;  %1607 = vmatpush3.msra.mxu1 %v240_v43 }
  0x10   :  { %1608 = vmatprep.subr.mxu1 %v247_v47 }
  0x11   :  { %1609 = vmatpush3.msra.mxu1 %v247_v47  ;;  %v755_v47 = vld [vmem:[%s2291_s3 + $0x18] sm:$0xff] }
  0x12   :  { %1610 = vmatprep.subr.mxu1 %v254_v49 }
  0x13   :  { %1611 = vmatpush3.msra.mxu1 %v254_v49 }
  0x14   :  { %1612 = vmatprep.subr.mxu1 %v261_v51 }
  0x15   :  { %1613 = vmatpush3.msra.mxu1 %v261_v51 }
  0x16   :  { %1634 = vmatprep.subr.mxu1 %v1928_v29 }
  0x8c   :  { %v28_v8 = vpop.xlane.xlu0 %27  ;;  %v34_v9 = vpop.xlane.xlu1 %33 }
  0x8d   :  { %v39_v10 = vmul.f32 0.03125, %v28_v8  ;;  %v41_v11 = vmul.f32 0.03125, %v34_v9 }
  0x8f   :  { %v1904_v12 = vsub.f32 %v21_v0, %v39_v10  ;;  %v1906_v13 = vsub.f32 %v23_v1, %v41_v11 }
  0x90   :  { %v31_v14 = vpop.xlane.xlu0 %30  ;;  %v37_v15 = vpop.xlane.xlu1 %36 }
  0x91   :  { %v40_v16 = vmul.f32 0.03125, %v31_v14  ;;  %v42_v17 = vmul.f32 0.03125, %v37_v15  ;;  %v47_v18 = vmul.f32 %v1904_v12, %v1904_v12  ;;  %v49_v19 = vmul.f32 %v1906_v13, %v1906_v13 }
  0x93   :  { %v1913_v20 = vsub.f32 %v1894_v2, %v40_v16  ;;  %v1915_v21 = vsub.f32 %v24_v5, %v42_v17  ;;  %v51_v22 = vsel %vm25_vm0, %v47_v18, 0.0  ;;  %v57_v23 = vsel %vm25_vm0, %v49_v19, 0.0 }
  0x94   :  { %52 = vadd.xlane.f32.xlu0 %v51_v22 }
  0x95   :  { %v48_v24 = vmul.f32 %v1913_v20, %v1913_v20  ;;  %v50_v25 = vmul.f32 %v1915_v21, %v1915_v21 }
  0x97   :  { %v54_v26 = vsel %vm25_vm0, %v48_v24, 0.0  ;;  %v60_v27 = vsel %vm25_vm0, %v50_v25, 0.0 }
  0x98   :  { %58 = vadd.xlane.f32.xlu0 %v57_v23  ;;  %55 = vadd.xlane.f32.xlu1 %v54_v26 }
  0x9c   :  { %61 = vadd.xlane.f32.xlu1 %v60_v27 }
 0x11d   :  { %v53_v52 = vpop.xlane.xlu0 %52 }
 0x11e   :  { %v63_v53 = vmul.f32 0.03125, %v53_v52  ;;  %v2098_v52 = vand.u32 4294901760, %v755_v47 }
 0x120   :  { %v67_v54 = vadd.f32 1e-05, %v63_v53  ;;  %v754_v53 = vld [vmem:[%s2291_s3 + $0x10] sm:$0xff] }
 0x121   :  { %v56_v55 = vpop.xlane.xlu1 %55  ;;  %v59_v56 = vpop.xlane.xlu0 %58 }
 0x122   :  { %1811 = vrsqrt.f32 %v67_v54  ;;  %v64_v57 = vmul.f32 0.03125, %v56_v55  ;;  %v65_v58 = vmul.f32 0.03125, %v59_v56 }
 0x124   :  { %v68_v59 = vadd.f32 1e-05, %v64_v57  ;;  %v69_v60 = vadd.f32 1e-05, %v65_v58  ;;  %v2109_v57 = vand.u32 4294901760, %v754_v53  ;;  %v2112_v58 = vsub.f32 %v755_v47, %v2098_v52 }
 0x125   :  { %v62_v61 = vpop.xlane.xlu1 %61 }
 0x126   :  { %1813 = vrsqrt.f32 %v68_v59  ;;  %v66_v62 = vmul.f32 0.03125, %v62_v61  ;;  %v753_v59 = vld [vmem:[%s2291_s3 + $0x8] sm:$0xff] }
 0x127   :  { %1815 = vrsqrt.f32 %v69_v60 }
 0x128   :  { %v70_v63 = vadd.f32 1e-05, %v66_v62  ;;  %v2121_v62 = vsub.f32 %v754_v53, %v2109_v57 }
 0x12a   :  { %1817 = vrsqrt.f32 %v70_v63  ;;  %v2123_v63 = vand.u32 4294901760, %v753_v59 }
 0x12f   :  { %v1812_v0 = vpop.eup %1811 }
 0x130   :  { %v75_v1 = vmul.f32 %v1812_v0, %v1904_v12  ;;  %v2127_v0 = vand.u32 4294901760, %v2112_v58 }
 0x132   :  { %v91_v3 = vsel %vm25_vm0, %v75_v1, 0  ;;  %v752_v1 = vld [vmem:[%s2291_s3] sm:$0xff] }
 0x133   :  { %v1814_v4 = vpop.eup %1813  ;;  %v1989_v5 = vand.u32 4294901760, %v91_v3 }
 0x134   :  { %v1816_v6 = vpop.eup %1815  ;;  %v76_v7 = vmul.f32 %v1814_v4, %v1913_v20  ;;  %v2134_v4 = vand.u32 4294901760, %v2121_v62 }
 0x135   :  { %1614 = vmatprep.mubr.f32.mxu1 %v1989_v5  ;;  %v77_v8 = vmul.f32 %v1816_v6, %v1906_v13  ;;  %v172_v9 = vsub.f32 %v91_v3, %v1989_v5  ;;  %v2139_v6 = vand.u32 4294901760, %v752_v1 }
 0x136   :  { %v94_v10 = vsel %vm25_vm0, %v76_v7, 0  ;;  %v941_v7 = vsub.f32 %v2112_v58, %v2127_v0 }
 0x137   :  { %v1818_v11 = vpop.eup %1817  ;;  %v1996_v14 = vand.u32 4294901760, %v94_v10  ;;  %v97_v12 = vsel %vm25_vm0, %v77_v8, 0  ;;  %v173_v15 = vand.u32 4294901760, %v172_v9  ;;  %v948_v8 = vsub.f32 %v2121_v62, %v2134_v4 }
 0x138   :  { %v1999_v16 = vand.u32 4294901760, %v97_v12  ;;  %v78_v17 = vmul.f32 %v1818_v11, %v1915_v21  ;;  %v942_v11 = vand.u32 4294901760, %v941_v7 }
 0x139   :  { %1615 = vmatmul.mubr.f32.vlgmr.msra.gmra.mxu1 %v1996_v14  ;;  %v174_v18 = vsub.f32 %v172_v9, %v173_v15  ;;  %v182_v19 = vsub.f32 %v94_v10, %v1996_v14  ;;  %v2151_v10 = vsub.f32 %v752_v1, %v2139_v6 }
 0x13a   :  { %1617 = vmatprep.mubr.f32.mxu1 %v1999_v16  ;;  %1635 = vmatpush3.msra.mxu1 %v1928_v29  ;;  %v100_v13 = vsel %vm25_vm0, %v78_v17, 0  ;;  %v192_v20 = vsub.f32 %v97_v12, %v1999_v16 }
 0x13b   :  { %1636 = vmatprep.subr.mxu1 %v1936_v32  ;;  %v175_v22 = vand.u32 4294901760, %v174_v18  ;;  %v201_v23 = vand.u32 4294901760, %v100_v13  ;;  %v183_v24 = vand.u32 4294901760, %v182_v19 }
 0x13c   :  { %1637 = vmatpush3.msra.mxu1 %v1936_v32  ;;  %v193_v21 = vand.u32 4294901760, %v192_v20 }
 0x13d   :  { %1600 = vmatprep.mubr.f32.mxu0 %v175_v22  ;;  %1618 = vmatmul.mubr.f32.gmra.mxu1 %v201_v23  ;;  %v184_v25 = vsub.f32 %v182_v19, %v183_v24  ;;  %v202_v26 = vsub.f32 %v100_v13, %v201_v23 }
 0x13e   :  { %1638 = vmatprep.subr.mxu1 %v1942_v34  ;;  %1642 = vmatprep.mubr.f32.mxu1 %v173_v15  ;;  %v194_v27 = vsub.f32 %v192_v20, %v193_v21  ;;  %v2158_v15 = vand.u32 4294901760, %v2151_v10 }
 0x13f   :  { %1639 = vmatpush3.msra.mxu1 %v1942_v34  ;;  %v185_v28 = vand.u32 4294901760, %v184_v25  ;;  %v203_v30 = vand.u32 4294901760, %v202_v26 }
 0x140   :  { %1640 = vmatprep.subr.mxu1 %v1964_v41  ;;  %v195_v33 = vand.u32 4294901760, %v194_v27  ;;  %v962_v17 = vsub.f32 %v2151_v10, %v2158_v15 }
 0x141   :  { %1641 = vmatpush3.msra.mxu1 %v1964_v41  ;;  %1601 = vmatmul.mubr.f32.vlgmr.msra.gmra.mxu0 %v185_v28  ;;  %v204_v38 = vsub.f32 %v202_v26, %v203_v30 }
 0x142   :  { %1621 = vmatpush3.msra.mxu0 %v1934_v31  ;;  %1643 = vmatmul.mubr.f32.vlgmr.msra.gmra.mxu1 %v183_v24  ;;  %v963_v18 = vand.u32 4294901760, %v962_v17 }
 0x143   :  { %1662 = vmatprep.subr.mxu1 %v1928_v29  ;;  %1603 = vmatprep.mubr.f32.mxu0 %v195_v33  ;;  %v205_v39 = vand.u32 4294901760, %v204_v38 }
 0x144   :  { %1622 = vmatprep.subr.mxu0 %v1949_v36  ;;  %1645 = vmatprep.mubr.f32.mxu1 %v193_v21 }
 0x145   :  { %1663 = vmatpush3.msra.mxu1 %v1928_v29  ;;  %1623 = vmatpush3.msra.mxu0 %v1949_v36  ;;  %v759_v29 = vld [vmem:[%s2291_s3 + $0x38] sm:$0xff]  ;;  %v757_v36 = vld [vmem:[%s2291_s3 + $0x28] sm:$0xff] }
 0x146   :  { %1664 = vmatprep.subr.mxu1 %v1936_v32  ;;  %1624 = vmatprep.subr.mxu0 %v1953_v37  ;;  %v2046_v31 = vand.u32 4294901760, %v759_v29 }
 0x147   :  { %1665 = vmatpush3.msra.mxu1 %v1936_v32  ;;  %1604 = vmatmul.mubr.f32.gmra.mxu0 %v205_v39  ;;  %v758_v32 = vld [vmem:[%s2291_s3 + $0x30] sm:$0xff] }
 0x148   :  { %1625 = vmatpush3.msra.mxu0 %v1953_v37  ;;  %1646 = vmatmul.mubr.f32.gmra.mxu1 %v203_v30 }
 0x149   :  { %1666 = vmatprep.subr.mxu1 %v1942_v34  ;;  %1626 = vmatprep.subr.mxu0 %v1974_v45 }
 0x14a   :  { %1628 = vmatprep.mubr.f32.mxu0 %v172_v9  ;;  %1667 = vmatpush3.msra.mxu1 %v1942_v34  ;;  %v2052_v34 = vsub.f32 %v759_v29, %v2046_v31 }
 0x14b   :  { %1670 = vmatprep.mubr.f32.mxu1 %v1989_v5  ;;  %1627 = vmatpush3.msra.mxu0 %v1974_v45 }
 0x14c   :  { %1668 = vmatprep.subr.mxu1 %v1964_v41  ;;  %1648 = vmatprep.subr.mxu0 %v1946_v35  ;;  %v2062_v37 = vand.u32 4294901760, %v2052_v34 }
 0x14d   :  { %1669 = vmatpush3.msra.mxu1 %v1964_v41  ;;  %1629 = vmatmul.mubr.f32.vlgmr.msra.gmra.mxu0 %v182_v19  ;;  %v2067_v41 = vand.u32 4294901760, %v757_v36 }
 0x14e   :  { %1649 = vmatpush3.msra.mxu0 %v1946_v35  ;;  %1671 = vmatmul.mubr.f32.vlgmr.msra.gmra.mxu1 %v1996_v14  ;;  %v2054_v35 = vand.u32 4294901760, %v758_v32  ;;  %v913_v43 = vsub.f32 %v2052_v34, %v2062_v37 }
 0x14f   :  { %1631 = vmatprep.mubr.f32.mxu0 %v192_v20  ;;  %1650 = vmatprep.subr.mxu0 %v1962_v40  ;;  %v2080_v45 = vsub.f32 %v757_v36, %v2067_v41 }
 0x150   :  { %1673 = vmatprep.mubr.f32.mxu1 %v1999_v16  ;;  %1651 = vmatpush3.msra.mxu0 %v1962_v40  ;;  %v2065_v40 = vsub.f32 %v758_v32, %v2054_v35 }
 0x151   :  { %1652 = vmatprep.subr.mxu0 %v1968_v42  ;;  %1632 = vmatmul.mubr.f32.gmra.mxu0 %v202_v26  ;;  %v2092_v50 = vand.u32 4294901760, %v2080_v45  ;;  %v1470_v26 = vld [vmem:[%s2290_s2] ss:$0 sm:$0xff] }
 0x152   :  { %1653 = vmatpush3.msra.mxu0 %v1968_v42  ;;  %1674 = vmatmul.mubr.f32.gmra.mxu1 %v201_v23  ;;  %v756_v42 = vld [vmem:[%s2291_s3 + $0x20] sm:$0xff]  ;;  %v2077_v44 = vand.u32 4294901760, %v2065_v40 }
 0x153   :  { %1654 = vmatprep.subr.mxu0 %v1981_v48  ;;  %1656 = vmatprep.mubr.f32.mxu0 %v1989_v5  ;;  %v2082_v46 = vand.u32 4294901760, %v756_v42  ;;  %v927_v55 = vsub.f32 %v2080_v45, %v2092_v50  ;;  %v2137_v5 = vsub.f32 %v753_v59, %v2123_v63 }
 0x154   :  { %1655 = vmatpush3.msra.mxu0 %v1981_v48  ;;  %v914_v48 = vand.u32 4294901760, %v913_v43  ;;  %v920_v49 = vsub.f32 %v2065_v40, %v2077_v44 }
 0x155   :  { %1657 = vmatmul.mubr.f32.vlgmr.msra.gmra.mxu0 %v1996_v14  ;;  %1676 = vmatprep.subr.mxu0 %v2046_v31  ;;  %v2095_v51 = vsub.f32 %v756_v42, %v2082_v46  ;;  %v928_v60 = vand.u32 4294901760, %v927_v55  ;;  %v2148_v9 = vand.u32 4294901760, %v2137_v5  ;;  %v949_v14 = vand.u32 4294901760, %v948_v8 }
 0x156   :  { %1659 = vmatprep.mubr.f32.mxu0 %v1999_v16  ;;  %1677 = vmatpush3.msra.mxu0 %v2046_v31  ;;  %v921_v54 = vand.u32 4294901760, %v920_v49 }
 0x157   :  { %1678 = vmatprep.subr.mxu0 %v2054_v35  ;;  %1698 = vmatprep.subr.mxu1 %v914_v48  ;;  %v2107_v56 = vand.u32 4294901760, %v2095_v51  ;;  %v955_v12 = vsub.f32 %v2137_v5, %v2148_v9 }
 0x158   :  { %1679 = vmatpush3.msra.mxu0 %v2054_v35  ;;  %1699 = vmatpush3.msra.mxu1 %v914_v48 }
 0x159   :  { %1660 = vmatmul.mubr.f32.gmra.mxu0 %v201_v23  ;;  %1680 = vmatprep.subr.mxu0 %v2067_v41  ;;  %v934_v61 = vsub.f32 %v2095_v51, %v2107_v56  ;;  %v956_v16 = vand.u32 4294901760, %v955_v12 }
 0x15a   :  { %1681 = vmatpush3.msra.mxu0 %v2067_v41  ;;  %1700 = vmatprep.subr.mxu1 %v921_v54 }
 0x15b   :  { %1682 = vmatprep.subr.mxu0 %v2082_v46  ;;  %1701 = vmatpush3.msra.mxu1 %v921_v54  ;;  %v935_v3 = vand.u32 4294901760, %v934_v61 }
 0x15c   :  { %1683 = vmatpush3.msra.mxu0 %v2082_v46  ;;  %1702 = vmatprep.subr.mxu1 %v928_v60 }
 0x15d   :  { %1684 = vmatprep.subr.mxu0 %v2098_v52  ;;  %1703 = vmatpush3.msra.mxu1 %v928_v60 }
 0x15e   :  { %1685 = vmatpush3.msra.mxu0 %v2098_v52  ;;  %1704 = vmatprep.subr.mxu1 %v935_v3 }
 0x15f   :  { %1686 = vmatprep.subr.mxu0 %v2109_v57  ;;  %1705 = vmatpush3.msra.mxu1 %v935_v3 }
 0x160   :  { %1687 = vmatpush3.msra.mxu0 %v2109_v57  ;;  %1706 = vmatprep.subr.mxu1 %v942_v11 }
 0x161   :  { %1688 = vmatprep.subr.mxu0 %v2123_v63  ;;  %1707 = vmatpush3.msra.mxu1 %v942_v11 }
 0x162   :  { %1689 = vmatpush3.msra.mxu0 %v2123_v63  ;;  %1708 = vmatprep.subr.mxu1 %v949_v14 }
 0x163   :  { %1690 = vmatprep.subr.mxu0 %v2139_v6  ;;  %1709 = vmatpush3.msra.mxu1 %v949_v14 }
 0x164   :  { %1691 = vmatpush3.msra.mxu0 %v2139_v6  ;;  %1710 = vmatprep.subr.mxu1 %v956_v16 }
 0x165   :  { %1720 = vmatprep.subr.mxu0 %v2052_v34  ;;  %1711 = vmatpush3.msra.mxu1 %v956_v16 }
 0x166   :  { %1712 = vmatprep.subr.mxu1 %v963_v18 }
 0x167   :  { %1713 = vmatpush3.msra.mxu1 %v963_v18 }
 0x168   :  { %1742 = vmatprep.subr.mxu1 %v2046_v31 }
 0x1f9   :  { %v1616_v19 = vpop.f32.mrf.mxu1 }
 0x1fb   :  { %v298_v13 = vpop.f32.mrf.mxu1 }
 0x1fd   :  { %v1619_v20 = vpop.f32.mrf.mxu1 }
 0x1ff   :  { %v310_v22 = vpop.f32.mrf.mxu1 }
 0x201   :  { %v1602_v23 = vpop.f32.mrf.mxu0 }
 0x202   :  { %v1644_v24 = vpop.f32.mrf.mxu1  ;;  %v188_v33 = vadd.f32 %v1602_v23, %v1470_v26 }
 0x203   :  { %v177_v21 = vpop.f32.mrf.mxu0 }
 0x204   :  { %v494_v25 = vpop.f32.mrf.mxu1  ;;  %v178_v38 = vadd.f32 %v1470_v26, %v177_v21  ;;  %v305_v36 = vadd.f32 %v1616_v19, %v188_v33 }
 0x206   :  { %v299_v48 = vadd.f32 %v298_v13, %v178_v38 }
 0x207   :  { %v1605_v27 = vpop.f32.mrf.mxu0 }
 0x208   :  { %v1647_v28 = vpop.f32.mrf.mxu1  ;;  %v208_v32 = vadd.f32 %v1605_v27, %v1470_v26 }
 0x209   :  { %v197_v30 = vpop.f32.mrf.mxu0 }
 0x20a   :  { %v510_v39 = vpop.f32.mrf.mxu1  ;;  %v198_v43 = vadd.f32 %v1470_v26, %v197_v30  ;;  %v317_v55 = vadd.f32 %v1619_v20, %v208_v32 }
 0x20c   :  { %v311_v61 = vadd.f32 %v310_v22, %v198_v43 }
 0x20d   :  { %v1630_v29 = vpop.f32.mrf.mxu0 }
 0x20e   :  { %v404_v47 = vadd.f32 %v1630_v29, %v305_v36  ;;  %v1672_v49 = vpop.f32.mrf.mxu1 }
 0x20f   :  { %v396_v42 = vpop.f32.mrf.mxu0 }
 0x210   :  { %v397_v54 = vadd.f32 %v396_v42, %v299_v48  ;;  %v503_v1 = vadd.f32 %v1644_v24, %v404_v47  ;;  %v694_v3 = vpop.f32.mrf.mxu1 }
 0x211   :  { %v1633_v53 = vpop.f32.mrf.mxu0 }
 0x212   :  { %v418_v60 = vadd.f32 %v1633_v53, %v317_v55  ;;  %v495_v14 = vadd.f32 %v494_v25, %v397_v54  ;;  %v1675_v19 = vpop.f32.mrf.mxu1 }
 0x213   :  { %v410_v59 = vpop.f32.mrf.mxu0 }
 0x214   :  { %v411_v8 = vadd.f32 %v410_v59, %v311_v61  ;;  %v519_v18 = vadd.f32 %v1647_v28, %v418_v60  ;;  %v706_v38 = vpop.f32.mrf.mxu1 }
 0x215   :  { %v1658_v7 = vpop.f32.mrf.mxu0 }
 0x216   :  { %v608_v11 = vadd.f32 %v1658_v7, %v503_v1  ;;  %v511_v27 = vadd.f32 %v510_v39, %v411_v8 }
 0x217   :  { %v601_v12 = vpop.f32.mrf.mxu0 }
 0x218   :  { %v701_v16 = vadd.f32 %v1672_v49, %v608_v11  ;;  %v602_v17 = vadd.f32 %v601_v12, %v495_v14 }
 0x219   :  { %v1661_v23 = vpop.f32.mrf.mxu0 }
 0x21a   :  { %v717_v13 = vmul.f32 %v701_v16, %v701_v16  ;;  %v695_v21 = vadd.f32 %v694_v3, %v602_v17  ;;  %v620_v26 = vadd.f32 %v1661_v23, %v519_v18 }
 0x21b   :  { %v613_v20 = vpop.f32.mrf.mxu0 }
 0x21c   :  { %v721_v30 = vmul.f32 %v717_v13, %v701_v16  ;;  %v716_v33 = vmul.f32 %v695_v21, %v695_v21  ;;  %v713_v22 = vadd.f32 %v1675_v19, %v620_v26  ;;  %v614_v24 = vadd.f32 %v613_v20, %v511_v27 }
 0x21e   :  { %v725_v29 = vmul.f32 0.044715, %v721_v30  ;;  %v720_v32 = vmul.f32 %v716_v33, %v695_v21  ;;  %v719_v36 = vmul.f32 %v713_v22, %v713_v22  ;;  %v707_v25 = vadd.f32 %v706_v38, %v614_v24 }
 0x220   :  { %v729_v42 = vadd.f32 %v725_v29, %v701_v16  ;;  %v724_v43 = vmul.f32 0.044715, %v720_v32  ;;  %v723_v47 = vmul.f32 %v719_v36, %v713_v22  ;;  %v718_v28 = vmul.f32 %v707_v25, %v707_v25 }
 0x222   :  { %v733_v48 = vmul.f32 0.7978846, %v729_v42  ;;  %v728_v49 = vadd.f32 %v724_v43, %v695_v21  ;;  %v727_v53 = vmul.f32 0.044715, %v723_v47  ;;  %v722_v54 = vmul.f32 %v718_v28, %v707_v25 }
 0x224   :  { %1819 = vtanh.f32 %v733_v48  ;;  %v732_v39 = vmul.f32 0.7978846, %v728_v49  ;;  %v731_v55 = vadd.f32 %v727_v53, %v713_v22  ;;  %v726_v59 = vmul.f32 0.044715, %v722_v54 }
 0x226   :  { %1821 = vtanh.f32 %v732_v39  ;;  %v735_v60 = vmul.f32 0.7978846, %v731_v55  ;;  %v730_v61 = vadd.f32 %v726_v59, %v707_v25 }
 0x228   :  { %1823 = vtanh.f32 %v735_v60  ;;  %v734_v1 = vmul.f32 0.7978846, %v730_v61 }
 0x22a   :  { %1825 = vtanh.f32 %v734_v1 }
 0x231   :  { %v1820_v3 = vpop.eup %1819 }
 0x232   :  { %v741_v7 = vadd.f32 1.0, %v1820_v3 }
 0x233   :  { %v1822_v8 = vpop.eup %1821 }
 0x234   :  { %v745_v11 = vmul.f32 0.5, %v741_v7  ;;  %v740_v14 = vadd.f32 1.0, %v1822_v8 }
 0x235   :  { %v1824_v12 = vpop.eup %1823 }
 0x236   :  { %v749_v17 = vmul.f32 %v745_v11, %v701_v16  ;;  %v744_v18 = vmul.f32 0.5, %v740_v14  ;;  %v743_v19 = vadd.f32 1.0, %v1824_v12 }
 0x237   :  { %v1826_v23 = vpop.eup %1825 }
 0x238   :  { %v772_v13 = vsel %vm767_vm1, %v749_v17, 0  ;;  %v748_v26 = vmul.f32 %v744_v18, %v695_v21  ;;  %v742_v27 = vadd.f32 1.0, %v1826_v23  ;;  %v747_v20 = vmul.f32 0.5, %v743_v19 }
 0x239   :  { %v2169_v30 = vand.u32 4294901760, %v772_v13 }
 0x23a   :  { %v769_v33 = vsel %vm767_vm1, %v748_v26, 0  ;;  %v746_v24 = vmul.f32 0.5, %v742_v27  ;;  %v751_v38 = vmul.f32 %v747_v20, %v713_v22 }
 0x23b   :  { %v2172_v29 = vand.u32 4294901760, %v769_v33  ;;  %v2175_v32 = vsub.f32 %v772_v13, %v2169_v30 }
 0x23c   :  { %v750_v16 = vmul.f32 %v746_v24, %v707_v25  ;;  %v778_v36 = vsel %vm767_vm1, %v751_v38, 0 }
 0x23d   :  { %1714 = vmatprep.mubr.f32.mxu1 %v2172_v29  ;;  %v2179_v42 = vand.u32 4294901760, %v778_v36  ;;  %v854_v21 = vsub.f32 %v769_v33, %v2172_v29  ;;  %v865_v43 = vand.u32 4294901760, %v2175_v32 }
 0x23e   :  { %1715 = vmatmul.mubr.f32.vlgmr.msra.gmra.mxu1 %v2169_v30  ;;  %v775_v22 = vsel %vm767_vm1, %v750_v16, 0 }
 0x23f   :  { %1743 = vmatpush3.msra.mxu1 %v2046_v31  ;;  %v2186_v47 = vand.u32 4294901760, %v775_v22  ;;  %v855_v28 = vand.u32 4294901760, %v854_v21  ;;  %v2189_v25 = vsub.f32 %v778_v36, %v2179_v42  ;;  %v866_v48 = vsub.f32 %v2175_v32, %v865_v43 }
 0x240   :  { %1744 = vmatprep.subr.mxu1 %v2054_v35 }
 0x241   :  { %1745 = vmatpush3.msra.mxu1 %v2054_v35  ;;  %1717 = vmatprep.mubr.f32.mxu1 %v2186_v47  ;;  %v856_v49 = vsub.f32 %v854_v21, %v855_v28  ;;  %v874_v53 = vsub.f32 %v775_v22, %v2186_v47  ;;  %v885_v54 = vand.u32 4294901760, %v2189_v25  ;;  %v867_v59 = vand.u32 4294901760, %v866_v48 }
 0x242   :  { %1746 = vmatprep.subr.mxu1 %v2067_v41  ;;  %1718 = vmatmul.mubr.f32.gmra.mxu1 %v2179_v42 }
 0x243   :  { %1747 = vmatpush3.msra.mxu1 %v2067_v41  ;;  %1758 = vmatprep.mubr.f32.mxu1 %v855_v28  ;;  %v857_v39 = vand.u32 4294901760, %v856_v49  ;;  %v875_v55 = vand.u32 4294901760, %v874_v53  ;;  %v886_v61 = vsub.f32 %v2189_v25, %v885_v54  ;;  %v1829_v49 = vld [vmem:[%s2288_s0 + $0x10] sm:$0xff] }
 0x244   :  { %1748 = vmatprep.subr.mxu1 %v2082_v46 }
 0x245   :  { %1749 = vmatpush3.msra.mxu1 %v2082_v46  ;;  %1692 = vmatprep.mubr.f32.mxu0 %v857_v39  ;;  %v876_v60 = vsub.f32 %v874_v53, %v875_v55  ;;  %v887_v3 = vand.u32 4294901760, %v886_v61 }
 0x246   :  { %1750 = vmatprep.subr.mxu1 %v2098_v52  ;;  %1693 = vmatmul.mubr.f32.vlgmr.msra.gmra.mxu0 %v867_v59 }
 0x247   :  { %1721 = vmatpush3.msra.mxu0 %v2052_v34  ;;  %1751 = vmatpush3.msra.mxu1 %v2098_v52  ;;  %v877_v1 = vand.u32 4294901760, %v876_v60 }
 0x248   :  { %1722 = vmatprep.subr.mxu0 %v2065_v40  ;;  %1752 = vmatprep.subr.mxu1 %v2109_v57 }
 0x249   :  { %1723 = vmatpush3.msra.mxu0 %v2065_v40  ;;  %1753 = vmatpush3.msra.mxu1 %v2109_v57 }
 0x24a   :  { %1695 = vmatprep.mubr.f32.mxu0 %v877_v1  ;;  %1724 = vmatprep.subr.mxu0 %v2080_v45 }
 0x24b   :  { %1754 = vmatprep.subr.mxu1 %v2123_v63  ;;  %1696 = vmatmul.mubr.f32.gmra.mxu0 %v887_v3 }
 0x24c   :  { %1725 = vmatpush3.msra.mxu0 %v2080_v45  ;;  %1755 = vmatpush3.msra.mxu1 %v2123_v63 }
 0x24d   :  { %1726 = vmatprep.subr.mxu0 %v2095_v51  ;;  %1736 = vmatprep.mubr.f32.mxu0 %v854_v21  ;;  %v1827_v21 = vld [vmem:[%s2288_s0] sm:$0xff] }
 0x24e   :  { %1756 = vmatprep.subr.mxu1 %v2139_v6  ;;  %1727 = vmatpush3.msra.mxu0 %v2095_v51 }
 0x24f   :  { %1757 = vmatpush3.msra.mxu1 %v2139_v6  ;;  %1728 = vmatprep.subr.mxu0 %v2112_v58 }
 0x250   :  { %1759 = vmatmul.mubr.f32.vlgmr.msra.gmra.mxu1 %v865_v43  ;;  %1786 = vmatprep.subr.mxu1 %v2046_v31 }
 0x251   :  { %1729 = vmatpush3.msra.mxu0 %v2112_v58  ;;  %1761 = vmatprep.mubr.f32.mxu1 %v875_v55 }
 0x252   :  { %1787 = vmatpush3.msra.mxu1 %v2046_v31  ;;  %1730 = vmatprep.subr.mxu0 %v2121_v62 }
 0x253   :  { %1788 = vmatprep.subr.mxu1 %v2054_v35  ;;  %1731 = vmatpush3.msra.mxu0 %v2121_v62 }
 0x254   :  { %1789 = vmatpush3.msra.mxu1 %v2054_v35  ;;  %1732 = vmatprep.subr.mxu0 %v2137_v5 }
 0x255   :  { %1762 = vmatmul.mubr.f32.gmra.mxu1 %v885_v54  ;;  %1790 = vmatprep.subr.mxu1 %v2067_v41 }
 0x256   :  { %1733 = vmatpush3.msra.mxu0 %v2137_v5  ;;  %1791 = vmatpush3.msra.mxu1 %v2067_v41 }
 0x257   :  { %1802 = vmatprep.mubr.f32.mxu1 %v2172_v29  ;;  %1734 = vmatprep.subr.mxu0 %v2151_v10 }
 0x258   :  { %1792 = vmatprep.subr.mxu1 %v2082_v46  ;;  %1735 = vmatpush3.msra.mxu0 %v2151_v10 }
 0x259   :  { %1793 = vmatpush3.msra.mxu1 %v2082_v46  ;;  %1737 = vmatmul.mubr.f32.vlgmr.msra.gmra.mxu0 %v2175_v32 }
 0x25a   :  { %1764 = vmatprep.subr.mxu0 %v2062_v37  ;;  %1794 = vmatprep.subr.mxu1 %v2098_v52 }
 0x25b   :  { %1739 = vmatprep.mubr.f32.mxu0 %v874_v53  ;;  %1765 = vmatpush3.msra.mxu0 %v2062_v37 }
 0x25c   :  { %1795 = vmatpush3.msra.mxu1 %v2098_v52  ;;  %1766 = vmatprep.subr.mxu0 %v2077_v44 }
 0x25d   :  { %1796 = vmatprep.subr.mxu1 %v2109_v57  ;;  %1767 = vmatpush3.msra.mxu0 %v2077_v44 }
 0x25e   :  { %1797 = vmatpush3.msra.mxu1 %v2109_v57  ;;  %1740 = vmatmul.mubr.f32.gmra.mxu0 %v2189_v25 }
 0x25f   :  { %1768 = vmatprep.subr.mxu0 %v2092_v50  ;;  %1798 = vmatprep.subr.mxu1 %v2123_v63 }
 0x260   :  { %1769 = vmatpush3.msra.mxu0 %v2092_v50  ;;  %1780 = vmatprep.mubr.f32.mxu0 %v2172_v29  ;;  %v1471_v50 = vld [vmem:[%s2292_s4] ss:$0 sm:$0xff] }
 0x261   :  { %1799 = vmatpush3.msra.mxu1 %v2123_v63  ;;  %1770 = vmatprep.subr.mxu0 %v2107_v56 }
 0x262   :  { %1800 = vmatprep.subr.mxu1 %v2139_v6  ;;  %1771 = vmatpush3.msra.mxu0 %v2107_v56 }
 0x263   :  { %1801 = vmatpush3.msra.mxu1 %v2139_v6  ;;  %1772 = vmatprep.subr.mxu0 %v2127_v0 }
 0x264   :  { %1803 = vmatmul.mubr.f32.vlgmr.msra.gmra.mxu1 %v2169_v30  ;;  %1773 = vmatpush3.msra.mxu0 %v2127_v0 }
 0x265   :  { %1805 = vmatprep.mubr.f32.mxu1 %v2186_v47  ;;  %1774 = vmatprep.subr.mxu0 %v2134_v4 }
 0x266   :  { %1775 = vmatpush3.msra.mxu0 %v2134_v4 }
 0x267   :  { %1776 = vmatprep.subr.mxu0 %v2148_v9 }
 0x268   :  { %1806 = vmatmul.mubr.f32.gmra.mxu1 %v2179_v42  ;;  %1777 = vmatpush3.msra.mxu0 %v2148_v9 }
 0x269   :  { %1778 = vmatprep.subr.mxu0 %v2158_v15 }
 0x26a   :  { %1779 = vmatpush3.msra.mxu0 %v2158_v15 }
 0x26b   :  { %1781 = vmatmul.mubr.f32.vlgmr.msra.gmra.mxu0 %v2169_v30 }
 0x26c   :  { %1783 = vmatprep.mubr.f32.mxu0 %v2186_v47 }
 0x26f   :  { %1784 = vmatmul.mubr.f32.gmra.mxu0 %v2179_v42 }
 0x2fe   :  { %v1716_v31 = vpop.f32.mrf.mxu1 }
 0x300   :  { %v1000_v34 = vpop.f32.mrf.mxu1 }
 0x302   :  { %v1719_v37 = vpop.f32.mrf.mxu1 }
 0x304   :  { %v1012_v41 = vpop.f32.mrf.mxu1 }
 0x306   :  { %v1694_v35 = vpop.f32.mrf.mxu0 }
 0x307   :  { %v870_v56 = vadd.f32 %v1694_v35, %v1471_v50 }
 0x308   :  { %v859_v40 = vpop.f32.mrf.mxu0 }
 0x309   :  { %v860_v62 = vadd.f32 %v1471_v50, %v859_v40  ;;  %v1007_v0 = vadd.f32 %v1716_v31, %v870_v56 }
 0x30b   :  { %v1697_v44 = vpop.f32.mrf.mxu0  ;;  %v1001_v10 = vadd.f32 %v1000_v34, %v860_v62 }
 0x30c   :  { %v890_v63 = vadd.f32 %v1697_v44, %v1471_v50 }
 0x30d   :  { %v879_v46 = vpop.f32.mrf.mxu0 }
 0x30e   :  { %v880_v6 = vadd.f32 %v1471_v50, %v879_v46  ;;  %v1019_v8 = vadd.f32 %v1719_v37, %v890_v63 }
 0x310   :  { %v1760_v45 = vpop.f32.mrf.mxu1  ;;  %v1013_v12 = vadd.f32 %v1012_v41, %v880_v6 }
 0x312   :  { %v1208_v51 = vpop.f32.mrf.mxu1 }
 0x315   :  { %v1763_v57 = vpop.f32.mrf.mxu1 }
 0x317   :  { %v1224_v4 = vpop.f32.mrf.mxu1 }
 0x319   :  { %v1738_v52 = vpop.f32.mrf.mxu0 }
 0x31a   :  { %v1114_v9 = vadd.f32 %v1738_v52, %v1007_v0 }
 0x31b   :  { %v1106_v58 = vpop.f32.mrf.mxu0 }
 0x31c   :  { %v1107_v7 = vadd.f32 %v1106_v58, %v1001_v10  ;;  %v1217_v17 = vadd.f32 %v1760_v45, %v1114_v9 }
 0x31e   :  { %v1741_v5 = vpop.f32.mrf.mxu0  ;;  %v1209_v26 = vadd.f32 %v1208_v51, %v1107_v7 }
 0x31f   :  { %v1128_v14 = vadd.f32 %v1741_v5, %v1019_v8 }
 0x320   :  { %v1120_v11 = vpop.f32.mrf.mxu0 }
 0x321   :  { %v1121_v23 = vadd.f32 %v1120_v11, %v1013_v12  ;;  %v1233_v33 = vadd.f32 %v1763_v57, %v1128_v14 }
 0x323   :  { %v1225_v36 = vadd.f32 %v1224_v4, %v1121_v23 }
 0x324   :  { %v1804_v15 = vpop.f32.mrf.mxu1 }
 0x326   :  { %v1424_v18 = vpop.f32.mrf.mxu1 }
 0x328   :  { %v1807_v24 = vpop.f32.mrf.mxu1 }
 0x32a   :  { %v1436_v28 = vpop.f32.mrf.mxu1 }
 0x32b   :  { %v1782_v19 = vpop.f32.mrf.mxu0 }
 0x32c   :  { %v1334_v13 = vadd.f32 %v1782_v19, %v1217_v17 }
 0x32d   :  { %v1327_v27 = vpop.f32.mrf.mxu0 }
 0x32e   :  { %v1431_v20 = vadd.f32 %v1804_v15, %v1334_v13  ;;  %v1328_v30 = vadd.f32 %v1327_v27, %v1209_v26 }
 0x32f   :  { %v1785_v38 = vpop.f32.mrf.mxu0 }
 0x330   :  { %v1447_v29 = vadd.f32 %v1431_v20, %v1894_v2  ;;  %v1425_v32 = vadd.f32 %v1424_v18, %v1328_v30  ;;  %v1346_v16 = vadd.f32 %v1785_v38, %v1233_v33  ;;  %v1828_v2 = vld [vmem:[%s2288_s0 + $0x18] sm:$0xff] }
 0x331   :  { %v1339_v42 = vpop.f32.mrf.mxu0 }
 0x332   :  { %1451 = vst.msk [vmem:[#allocation2 + $0x8] sm:$0xff] %vm25_vm0, %v1447_v29  ;;  %v1446_v43 = vadd.f32 %v1827_v21, %v1425_v32  ;;  %v1443_v22 = vadd.f32 %v1807_v24, %v1346_v16  ;;  %v1340_v47 = vadd.f32 %v1339_v42, %v1225_v36 }
 0x334   :  { %1450 = vst.msk [vmem:[#allocation2] sm:$0xff] %vm25_vm0, %v1446_v43  ;;  %v1449_v25 = vadd.f32 %v1828_v2, %v1443_v22  ;;  %v1437_v48 = vadd.f32 %v1436_v28, %v1340_v47 }
 0x336   :  { %1453 = vst.msk [vmem:[#allocation2 + $0x18] sm:$0xff] %vm25_vm0, %v1449_v25  ;;  %v1448_v53 = vadd.f32 %v1829_v49, %v1437_v48 }
 0x338   :  { %1452 = vst.msk [vmem:[#allocation2 + $0x10] sm:$0xff] %vm25_vm0, %v1448_v53 }
 0x339   :  { %1841 = shalt.err (!%p1838_p4)
}
 0x33a   :  { %s1853_s1 = smov 128   ;;  %s1854_s9 = smov 8  }
 0x33b   :  { %1465 = dma.vmem_to_hbm [thread:$0]  %s1460_s28, 512, %s2293_s5, [#allocation3], %s1853_s1, %s1853_s1, %s1854_s9  }
 0x33c   :  { %1850 = dma.done.wait [#allocation3], 512  }
 0x33d   :  { %1851 = vsyncadd [#allocation3], 4294966784 }
 0x33e   :  { %1469 = vsyncpa [#allocation3], 1 }

// kernel: cross_transformer_forward.5
= control target key start
LH: loop header
LB: loop body
LE: loop exit
PB: predicated region body
PF: predicated region fallthrough
CT: control target
= control target key end

     0   :  { %vm24_vm0 = vcmask 261120   ;;  %vm766_vm1 = vcmask 523264   ;;  %s2256_s0 = inlined_call_operand.vmem [shape: f32[32,32], index: 0, kind: input, shape index: {}]   ;;  %s2257_s1 = inlined_call_operand.vmem [shape: f32[32,64], index: 1, kind: input, shape index: {}]   ;;  %s2258_s3 = inlined_call_operand.vmem [shape: f32[64,32], index: 3, kind: input, shape index: {}]   ;;  %s2259_s2 = inlined_call_operand.vmem [shape: f32[1,64], index: 2, kind: input, shape index: {}]   ;;  %s2260_s4 = inlined_call_operand.vmem [shape: f32[1,32], index: 4, kind: input, shape index: {}]   ;;  %s2261_s5 = inlined_call_operand.vmem [shape: f32[32,32], index: 5, kind: output, shape index: {}]  }
   0x1   :  { %v20_v0 = vld [vmem:[%s2256_s0] sm:$0xff]  ;;  %v22_v1 = vld [vmem:[%s2256_s0 + $0x10] sm:$0xff]  ;;  %v1853_v2 = vld [vmem:[%s2256_s0 + $0x8] sm:$0xff] }
   0x2   :  { %v25_v3 = vsel %vm24_vm0, %v20_v0, 0.0  ;;  %v31_v4 = vsel %vm24_vm0, %v22_v1, 0.0  ;;  %v23_v5 = vld [vmem:[%s2256_s0 + $0x18] sm:$0xff]  ;;  %v28_v6 = vsel %vm24_vm0, %v1853_v2, 0.0  ;;  %v80_v30 = vld [vmem:[%s2257_s1 + $0x10] sm:$0xff]  ;;  %v79_v33 = vld [vmem:[%s2257_s1 + $0x8] sm:$0xff] }
   0x3   :  { %26 = vadd.xlane.f32.xlu0 %v25_v3  ;;  %32 = vadd.xlane.f32.xlu1 %v31_v4  ;;  %v34_v7 = vsel %vm24_vm0, %v23_v5, 0.0  ;;  %v81_v28 = vld [vmem:[%s2257_s1 + $0x18] sm:$0xff]  ;;  %v1895_v32 = vand.u32 4294901760, %v80_v30  ;;  %v1901_v34 = vand.u32 4294901760, %v79_v33  ;;  %v78_v38 = vld [vmem:[%s2257_s1] sm:$0xff] }
   0x4   :  { %v1887_v29 = vand.u32 4294901760, %v81_v28  ;;  %v1923_v41 = vand.u32 4294901760, %v78_v38 }
   0x5   :  { %v1908_v36 = vsub.f32 %v80_v30, %v1895_v32  ;;  %v1912_v37 = vsub.f32 %v79_v33, %v1901_v34 }
   0x6   :  { %v1893_v31 = vsub.f32 %v81_v28, %v1887_v29  ;;  %1579 = vmatprep.subr.mxu0 %v1887_v29  ;;  %v1933_v45 = vsub.f32 %v78_v38, %v1923_v41 }
   0x7   :  { %29 = vadd.xlane.f32.xlu0 %v28_v6  ;;  %35 = vadd.xlane.f32.xlu1 %v34_v7  ;;  %v1921_v40 = vand.u32 4294901760, %v1908_v36  ;;  %v1927_v42 = vand.u32 4294901760, %v1912_v37 }
   0x8   :  { %1580 = vmatpush3.msra.mxu0 %v1887_v29  ;;  %v1905_v35 = vand.u32 4294901760, %v1893_v31  ;;  %v1940_v48 = vand.u32 4294901760, %v1933_v45 }
   0x9   :  { %1581 = vmatprep.subr.mxu0 %v1895_v32  ;;  %v245_v44 = vsub.f32 %v1908_v36, %v1921_v40  ;;  %v252_v46 = vsub.f32 %v1912_v37, %v1927_v42 }
   0xa   :  { %1582 = vmatpush3.msra.mxu0 %v1895_v32  ;;  %v238_v39 = vsub.f32 %v1893_v31, %v1905_v35  ;;  %v259_v50 = vsub.f32 %v1933_v45, %v1940_v48 }
   0xb   :  { %1583 = vmatprep.subr.mxu0 %v1901_v34  ;;  %v246_v47 = vand.u32 4294901760, %v245_v44  ;;  %v253_v49 = vand.u32 4294901760, %v252_v46 }
   0xc   :  { %1584 = vmatpush3.msra.mxu0 %v1901_v34  ;;  %v239_v43 = vand.u32 4294901760, %v238_v39  ;;  %v260_v51 = vand.u32 4294901760, %v259_v50 }
   0xd   :  { %1585 = vmatprep.subr.mxu0 %v1923_v41 }
   0xe   :  { %1586 = vmatpush3.msra.mxu0 %v1923_v41  ;;  %1593 = vmatprep.subr.mxu1 %v239_v43 }
   0xf   :  { %1607 = vmatprep.subr.mxu0 %v1893_v31  ;;  %1594 = vmatpush3.msra.mxu1 %v239_v43 }
  0x10   :  { %1595 = vmatprep.subr.mxu1 %v246_v47 }
  0x11   :  { %1596 = vmatpush3.msra.mxu1 %v246_v47  ;;  %v754_v47 = vld [vmem:[%s2258_s3 + $0x18] sm:$0xff] }
  0x12   :  { %1597 = vmatprep.subr.mxu1 %v253_v49 }
  0x13   :  { %1598 = vmatpush3.msra.mxu1 %v253_v49 }
  0x14   :  { %1599 = vmatprep.subr.mxu1 %v260_v51 }
  0x15   :  { %1600 = vmatpush3.msra.mxu1 %v260_v51 }
  0x16   :  { %1621 = vmatprep.subr.mxu1 %v1887_v29 }
  0x8c   :  { %v27_v8 = vpop.xlane.xlu0 %26  ;;  %v33_v9 = vpop.xlane.xlu1 %32 }
  0x8d   :  { %v38_v10 = vmul.f32 0.03125, %v27_v8  ;;  %v40_v11 = vmul.f32 0.03125, %v33_v9 }
  0x8f   :  { %v1863_v12 = vsub.f32 %v20_v0, %v38_v10  ;;  %v1865_v13 = vsub.f32 %v22_v1, %v40_v11 }
  0x90   :  { %v30_v14 = vpop.xlane.xlu0 %29  ;;  %v36_v15 = vpop.xlane.xlu1 %35 }
  0x91   :  { %v39_v16 = vmul.f32 0.03125, %v30_v14  ;;  %v41_v17 = vmul.f32 0.03125, %v36_v15  ;;  %v46_v18 = vmul.f32 %v1863_v12, %v1863_v12  ;;  %v48_v19 = vmul.f32 %v1865_v13, %v1865_v13 }
  0x93   :  { %v1872_v20 = vsub.f32 %v1853_v2, %v39_v16  ;;  %v1874_v21 = vsub.f32 %v23_v5, %v41_v17  ;;  %v50_v22 = vsel %vm24_vm0, %v46_v18, 0.0  ;;  %v56_v23 = vsel %vm24_vm0, %v48_v19, 0.0 }
  0x94   :  { %51 = vadd.xlane.f32.xlu0 %v50_v22 }
  0x95   :  { %v47_v24 = vmul.f32 %v1872_v20, %v1872_v20  ;;  %v49_v25 = vmul.f32 %v1874_v21, %v1874_v21 }
  0x97   :  { %v53_v26 = vsel %vm24_vm0, %v47_v24, 0.0  ;;  %v59_v27 = vsel %vm24_vm0, %v49_v25, 0.0 }
  0x98   :  { %57 = vadd.xlane.f32.xlu0 %v56_v23  ;;  %54 = vadd.xlane.f32.xlu1 %v53_v26 }
  0x9c   :  { %60 = vadd.xlane.f32.xlu1 %v59_v27 }
 0x11d   :  { %v52_v52 = vpop.xlane.xlu0 %51 }
 0x11e   :  { %v62_v53 = vmul.f32 0.03125, %v52_v52  ;;  %v2057_v52 = vand.u32 4294901760, %v754_v47 }
 0x120   :  { %v66_v54 = vadd.f32 1e-05, %v62_v53  ;;  %v753_v53 = vld [vmem:[%s2258_s3 + $0x10] sm:$0xff] }
 0x121   :  { %v55_v55 = vpop.xlane.xlu1 %54  ;;  %v58_v56 = vpop.xlane.xlu0 %57 }
 0x122   :  { %1795 = vrsqrt.f32 %v66_v54  ;;  %v63_v57 = vmul.f32 0.03125, %v55_v55  ;;  %v64_v58 = vmul.f32 0.03125, %v58_v56 }
 0x124   :  { %v67_v59 = vadd.f32 1e-05, %v63_v57  ;;  %v68_v60 = vadd.f32 1e-05, %v64_v58  ;;  %v2068_v57 = vand.u32 4294901760, %v753_v53  ;;  %v2071_v58 = vsub.f32 %v754_v47, %v2057_v52 }
 0x125   :  { %v61_v61 = vpop.xlane.xlu1 %60 }
 0x126   :  { %1797 = vrsqrt.f32 %v67_v59  ;;  %v65_v62 = vmul.f32 0.03125, %v61_v61  ;;  %v752_v59 = vld [vmem:[%s2258_s3 + $0x8] sm:$0xff] }
 0x127   :  { %1799 = vrsqrt.f32 %v68_v60 }
 0x128   :  { %v69_v63 = vadd.f32 1e-05, %v65_v62  ;;  %v2080_v62 = vsub.f32 %v753_v53, %v2068_v57 }
 0x12a   :  { %1801 = vrsqrt.f32 %v69_v63  ;;  %v2082_v63 = vand.u32 4294901760, %v752_v59 }
 0x12f   :  { %v1796_v0 = vpop.eup %1795 }
 0x130   :  { %v74_v1 = vmul.f32 %v1796_v0, %v1863_v12  ;;  %v2086_v0 = vand.u32 4294901760, %v2071_v58 }
 0x132   :  { %v90_v3 = vsel %vm24_vm0, %v74_v1, 0  ;;  %v751_v1 = vld [vmem:[%s2258_s3] sm:$0xff] }
 0x133   :  { %v1798_v4 = vpop.eup %1797  ;;  %v1948_v5 = vand.u32 4294901760, %v90_v3 }
 0x134   :  { %v1800_v6 = vpop.eup %1799  ;;  %v75_v7 = vmul.f32 %v1798_v4, %v1872_v20  ;;  %v2093_v4 = vand.u32 4294901760, %v2080_v62 }
 0x135   :  { %1601 = vmatprep.mubr.f32.mxu1 %v1948_v5  ;;  %v76_v8 = vmul.f32 %v1800_v6, %v1865_v13  ;;  %v171_v9 = vsub.f32 %v90_v3, %v1948_v5  ;;  %v2098_v6 = vand.u32 4294901760, %v751_v1 }
 0x136   :  { %v93_v10 = vsel %vm24_vm0, %v75_v7, 0  ;;  %v940_v7 = vsub.f32 %v2071_v58, %v2086_v0 }
 0x137   :  { %v1802_v11 = vpop.eup %1801  ;;  %v1955_v14 = vand.u32 4294901760, %v93_v10  ;;  %v96_v12 = vsel %vm24_vm0, %v76_v8, 0  ;;  %v172_v15 = vand.u32 4294901760, %v171_v9  ;;  %v947_v8 = vsub.f32 %v2080_v62, %v2093_v4 }
 0x138   :  { %v1958_v16 = vand.u32 4294901760, %v96_v12  ;;  %v77_v17 = vmul.f32 %v1802_v11, %v1874_v21  ;;  %v941_v11 = vand.u32 4294901760, %v940_v7 }
 0x139   :  { %1602 = vmatmul.mubr.f32.vlgmr.msra.gmra.mxu1 %v1955_v14  ;;  %v173_v18 = vsub.f32 %v171_v9, %v172_v15  ;;  %v181_v19 = vsub.f32 %v93_v10, %v1955_v14  ;;  %v2110_v10 = vsub.f32 %v751_v1, %v2098_v6 }
 0x13a   :  { %1604 = vmatprep.mubr.f32.mxu1 %v1958_v16  ;;  %1622 = vmatpush3.msra.mxu1 %v1887_v29  ;;  %v99_v13 = vsel %vm24_vm0, %v77_v17, 0  ;;  %v191_v20 = vsub.f32 %v96_v12, %v1958_v16 }
 0x13b   :  { %1623 = vmatprep.subr.mxu1 %v1895_v32  ;;  %v174_v22 = vand.u32 4294901760, %v173_v18  ;;  %v200_v23 = vand.u32 4294901760, %v99_v13  ;;  %v182_v24 = vand.u32 4294901760, %v181_v19 }
 0x13c   :  { %1624 = vmatpush3.msra.mxu1 %v1895_v32  ;;  %v192_v21 = vand.u32 4294901760, %v191_v20 }
 0x13d   :  { %1587 = vmatprep.mubr.f32.mxu0 %v174_v22  ;;  %1605 = vmatmul.mubr.f32.gmra.mxu1 %v200_v23  ;;  %v183_v25 = vsub.f32 %v181_v19, %v182_v24  ;;  %v201_v26 = vsub.f32 %v99_v13, %v200_v23 }
 0x13e   :  { %1625 = vmatprep.subr.mxu1 %v1901_v34  ;;  %1629 = vmatprep.mubr.f32.mxu1 %v172_v15  ;;  %v193_v27 = vsub.f32 %v191_v20, %v192_v21  ;;  %v2117_v15 = vand.u32 4294901760, %v2110_v10 }
 0x13f   :  { %1626 = vmatpush3.msra.mxu1 %v1901_v34  ;;  %v184_v28 = vand.u32 4294901760, %v183_v25  ;;  %v202_v30 = vand.u32 4294901760, %v201_v26 }
 0x140   :  { %1627 = vmatprep.subr.mxu1 %v1923_v41  ;;  %v194_v33 = vand.u32 4294901760, %v193_v27  ;;  %v961_v17 = vsub.f32 %v2110_v10, %v2117_v15 }
 0x141   :  { %1628 = vmatpush3.msra.mxu1 %v1923_v41  ;;  %1588 = vmatmul.mubr.f32.vlgmr.msra.gmra.mxu0 %v184_v28  ;;  %v203_v38 = vsub.f32 %v201_v26, %v202_v30 }
 0x142   :  { %1608 = vmatpush3.msra.mxu0 %v1893_v31  ;;  %1630 = vmatmul.mubr.f32.vlgmr.msra.gmra.mxu1 %v182_v24  ;;  %v962_v18 = vand.u32 4294901760, %v961_v17 }
 0x143   :  { %1649 = vmatprep.subr.mxu1 %v1887_v29  ;;  %1590 = vmatprep.mubr.f32.mxu0 %v194_v33  ;;  %v204_v39 = vand.u32 4294901760, %v203_v38 }
 0x144   :  { %1609 = vmatprep.subr.mxu0 %v1908_v36  ;;  %1632 = vmatprep.mubr.f32.mxu1 %v192_v21 }
 0x145   :  { %1650 = vmatpush3.msra.mxu1 %v1887_v29  ;;  %1610 = vmatpush3.msra.mxu0 %v1908_v36  ;;  %v758_v29 = vld [vmem:[%s2258_s3 + $0x38] sm:$0xff]  ;;  %v756_v36 = vld [vmem:[%s2258_s3 + $0x28] sm:$0xff] }
 0x146   :  { %1651 = vmatprep.subr.mxu1 %v1895_v32  ;;  %1611 = vmatprep.subr.mxu0 %v1912_v37  ;;  %v2005_v31 = vand.u32 4294901760, %v758_v29 }
 0x147   :  { %1652 = vmatpush3.msra.mxu1 %v1895_v32  ;;  %1591 = vmatmul.mubr.f32.gmra.mxu0 %v204_v39  ;;  %v757_v32 = vld [vmem:[%s2258_s3 + $0x30] sm:$0xff] }
 0x148   :  { %1612 = vmatpush3.msra.mxu0 %v1912_v37  ;;  %1633 = vmatmul.mubr.f32.gmra.mxu1 %v202_v30 }
 0x149   :  { %1653 = vmatprep.subr.mxu1 %v1901_v34  ;;  %1613 = vmatprep.subr.mxu0 %v1933_v45 }
 0x14a   :  { %1615 = vmatprep.mubr.f32.mxu0 %v171_v9  ;;  %1654 = vmatpush3.msra.mxu1 %v1901_v34  ;;  %v2011_v34 = vsub.f32 %v758_v29, %v2005_v31 }
 0x14b   :  { %1657 = vmatprep.mubr.f32.mxu1 %v1948_v5  ;;  %1614 = vmatpush3.msra.mxu0 %v1933_v45 }
 0x14c   :  { %1655 = vmatprep.subr.mxu1 %v1923_v41  ;;  %1635 = vmatprep.subr.mxu0 %v1905_v35  ;;  %v2021_v37 = vand.u32 4294901760, %v2011_v34 }
 0x14d   :  { %1656 = vmatpush3.msra.mxu1 %v1923_v41  ;;  %1616 = vmatmul.mubr.f32.vlgmr.msra.gmra.mxu0 %v181_v19  ;;  %v2026_v41 = vand.u32 4294901760, %v756_v36 }
 0x14e   :  { %1636 = vmatpush3.msra.mxu0 %v1905_v35  ;;  %1658 = vmatmul.mubr.f32.vlgmr.msra.gmra.mxu1 %v1955_v14  ;;  %v2013_v35 = vand.u32 4294901760, %v757_v32  ;;  %v912_v43 = vsub.f32 %v2011_v34, %v2021_v37 }
 0x14f   :  { %1618 = vmatprep.mubr.f32.mxu0 %v191_v20  ;;  %1637 = vmatprep.subr.mxu0 %v1921_v40  ;;  %v2039_v45 = vsub.f32 %v756_v36, %v2026_v41 }
 0x150   :  { %1660 = vmatprep.mubr.f32.mxu1 %v1958_v16  ;;  %1638 = vmatpush3.msra.mxu0 %v1921_v40  ;;  %v2024_v40 = vsub.f32 %v757_v32, %v2013_v35 }
 0x151   :  { %1639 = vmatprep.subr.mxu0 %v1927_v42  ;;  %1619 = vmatmul.mubr.f32.gmra.mxu0 %v201_v26  ;;  %v2051_v50 = vand.u32 4294901760, %v2039_v45  ;;  %v1457_v26 = vld [vmem:[%s2259_s2] ss:$0 sm:$0xff] }
 0x152   :  { %1640 = vmatpush3.msra.mxu0 %v1927_v42  ;;  %1661 = vmatmul.mubr.f32.gmra.mxu1 %v200_v23  ;;  %v755_v42 = vld [vmem:[%s2258_s3 + $0x20] sm:$0xff]  ;;  %v2036_v44 = vand.u32 4294901760, %v2024_v40 }
 0x153   :  { %1641 = vmatprep.subr.mxu0 %v1940_v48  ;;  %1643 = vmatprep.mubr.f32.mxu0 %v1948_v5  ;;  %v2041_v46 = vand.u32 4294901760, %v755_v42  ;;  %v926_v55 = vsub.f32 %v2039_v45, %v2051_v50  ;;  %v2096_v5 = vsub.f32 %v752_v59, %v2082_v63 }
 0x154   :  { %1642 = vmatpush3.msra.mxu0 %v1940_v48  ;;  %v913_v48 = vand.u32 4294901760, %v912_v43  ;;  %v919_v49 = vsub.f32 %v2024_v40, %v2036_v44 }
 0x155   :  { %1644 = vmatmul.mubr.f32.vlgmr.msra.gmra.mxu0 %v1955_v14  ;;  %1663 = vmatprep.subr.mxu0 %v2005_v31  ;;  %v2054_v51 = vsub.f32 %v755_v42, %v2041_v46  ;;  %v927_v60 = vand.u32 4294901760, %v926_v55  ;;  %v2107_v9 = vand.u32 4294901760, %v2096_v5  ;;  %v948_v14 = vand.u32 4294901760, %v947_v8 }
 0x156   :  { %1646 = vmatprep.mubr.f32.mxu0 %v1958_v16  ;;  %1664 = vmatpush3.msra.mxu0 %v2005_v31  ;;  %v920_v54 = vand.u32 4294901760, %v919_v49 }
 0x157   :  { %1665 = vmatprep.subr.mxu0 %v2013_v35  ;;  %1685 = vmatprep.subr.mxu1 %v913_v48  ;;  %v2066_v56 = vand.u32 4294901760, %v2054_v51  ;;  %v954_v12 = vsub.f32 %v2096_v5, %v2107_v9 }
 0x158   :  { %1666 = vmatpush3.msra.mxu0 %v2013_v35  ;;  %1686 = vmatpush3.msra.mxu1 %v913_v48 }
 0x159   :  { %1647 = vmatmul.mubr.f32.gmra.mxu0 %v200_v23  ;;  %1667 = vmatprep.subr.mxu0 %v2026_v41  ;;  %v933_v61 = vsub.f32 %v2054_v51, %v2066_v56  ;;  %v955_v16 = vand.u32 4294901760, %v954_v12 }
 0x15a   :  { %1668 = vmatpush3.msra.mxu0 %v2026_v41  ;;  %1687 = vmatprep.subr.mxu1 %v920_v54 }
 0x15b   :  { %1669 = vmatprep.subr.mxu0 %v2041_v46  ;;  %1688 = vmatpush3.msra.mxu1 %v920_v54  ;;  %v934_v3 = vand.u32 4294901760, %v933_v61 }
 0x15c   :  { %1670 = vmatpush3.msra.mxu0 %v2041_v46  ;;  %1689 = vmatprep.subr.mxu1 %v927_v60 }
 0x15d   :  { %1671 = vmatprep.subr.mxu0 %v2057_v52  ;;  %1690 = vmatpush3.msra.mxu1 %v927_v60 }
 0x15e   :  { %1672 = vmatpush3.msra.mxu0 %v2057_v52  ;;  %1691 = vmatprep.subr.mxu1 %v934_v3 }
 0x15f   :  { %1673 = vmatprep.subr.mxu0 %v2068_v57  ;;  %1692 = vmatpush3.msra.mxu1 %v934_v3 }
 0x160   :  { %1674 = vmatpush3.msra.mxu0 %v2068_v57  ;;  %1693 = vmatprep.subr.mxu1 %v941_v11 }
 0x161   :  { %1675 = vmatprep.subr.mxu0 %v2082_v63  ;;  %1694 = vmatpush3.msra.mxu1 %v941_v11 }
 0x162   :  { %1676 = vmatpush3.msra.mxu0 %v2082_v63  ;;  %1695 = vmatprep.subr.mxu1 %v948_v14 }
 0x163   :  { %1677 = vmatprep.subr.mxu0 %v2098_v6  ;;  %1696 = vmatpush3.msra.mxu1 %v948_v14 }
 0x164   :  { %1678 = vmatpush3.msra.mxu0 %v2098_v6  ;;  %1697 = vmatprep.subr.mxu1 %v955_v16 }
 0x165   :  { %1707 = vmatprep.subr.mxu0 %v2011_v34  ;;  %1698 = vmatpush3.msra.mxu1 %v955_v16 }
 0x166   :  { %1699 = vmatprep.subr.mxu1 %v962_v18 }
 0x167   :  { %1700 = vmatpush3.msra.mxu1 %v962_v18 }
 0x168   :  { %1729 = vmatprep.subr.mxu1 %v2005_v31 }
 0x1f9   :  { %v1603_v19 = vpop.f32.mrf.mxu1 }
 0x1fb   :  { %v297_v13 = vpop.f32.mrf.mxu1 }
 0x1fd   :  { %v1606_v20 = vpop.f32.mrf.mxu1 }
 0x1ff   :  { %v309_v22 = vpop.f32.mrf.mxu1 }
 0x201   :  { %v1589_v23 = vpop.f32.mrf.mxu0 }
 0x202   :  { %v1631_v24 = vpop.f32.mrf.mxu1  ;;  %v187_v33 = vadd.f32 %v1589_v23, %v1457_v26 }
 0x203   :  { %v176_v21 = vpop.f32.mrf.mxu0 }
 0x204   :  { %v493_v25 = vpop.f32.mrf.mxu1  ;;  %v177_v38 = vadd.f32 %v1457_v26, %v176_v21  ;;  %v304_v36 = vadd.f32 %v1603_v19, %v187_v33 }
 0x206   :  { %v298_v48 = vadd.f32 %v297_v13, %v177_v38 }
 0x207   :  { %v1592_v27 = vpop.f32.mrf.mxu0 }
 0x208   :  { %v1634_v28 = vpop.f32.mrf.mxu1  ;;  %v207_v32 = vadd.f32 %v1592_v27, %v1457_v26 }
 0x209   :  { %v196_v30 = vpop.f32.mrf.mxu0 }
 0x20a   :  { %v509_v39 = vpop.f32.mrf.mxu1  ;;  %v197_v43 = vadd.f32 %v1457_v26, %v196_v30  ;;  %v316_v55 = vadd.f32 %v1606_v20, %v207_v32 }
 0x20c   :  { %v310_v61 = vadd.f32 %v309_v22, %v197_v43 }
 0x20d   :  { %v1617_v29 = vpop.f32.mrf.mxu0 }
 0x20e   :  { %v403_v47 = vadd.f32 %v1617_v29, %v304_v36  ;;  %v1659_v49 = vpop.f32.mrf.mxu1 }
 0x20f   :  { %v395_v42 = vpop.f32.mrf.mxu0 }
 0x210   :  { %v396_v54 = vadd.f32 %v395_v42, %v298_v48  ;;  %v502_v1 = vadd.f32 %v1631_v24, %v403_v47  ;;  %v693_v3 = vpop.f32.mrf.mxu1 }
 0x211   :  { %v1620_v53 = vpop.f32.mrf.mxu0 }
 0x212   :  { %v417_v60 = vadd.f32 %v1620_v53, %v316_v55  ;;  %v494_v14 = vadd.f32 %v493_v25, %v396_v54  ;;  %v1662_v19 = vpop.f32.mrf.mxu1 }
 0x213   :  { %v409_v59 = vpop.f32.mrf.mxu0 }
 0x214   :  { %v410_v8 = vadd.f32 %v409_v59, %v310_v61  ;;  %v518_v18 = vadd.f32 %v1634_v28, %v417_v60  ;;  %v705_v38 = vpop.f32.mrf.mxu1 }
 0x215   :  { %v1645_v7 = vpop.f32.mrf.mxu0 }
 0x216   :  { %v607_v11 = vadd.f32 %v1645_v7, %v502_v1  ;;  %v510_v27 = vadd.f32 %v509_v39, %v410_v8 }
 0x217   :  { %v600_v12 = vpop.f32.mrf.mxu0 }
 0x218   :  { %v700_v16 = vadd.f32 %v1659_v49, %v607_v11  ;;  %v601_v17 = vadd.f32 %v600_v12, %v494_v14 }
 0x219   :  { %v1648_v23 = vpop.f32.mrf.mxu0 }
 0x21a   :  { %v716_v13 = vmul.f32 %v700_v16, %v700_v16  ;;  %v694_v21 = vadd.f32 %v693_v3, %v601_v17  ;;  %v619_v26 = vadd.f32 %v1648_v23, %v518_v18 }
 0x21b   :  { %v612_v20 = vpop.f32.mrf.mxu0 }
 0x21c   :  { %v720_v30 = vmul.f32 %v716_v13, %v700_v16  ;;  %v715_v33 = vmul.f32 %v694_v21, %v694_v21  ;;  %v712_v22 = vadd.f32 %v1662_v19, %v619_v26  ;;  %v613_v24 = vadd.f32 %v612_v20, %v510_v27 }
 0x21e   :  { %v724_v29 = vmul.f32 0.044715, %v720_v30  ;;  %v719_v32 = vmul.f32 %v715_v33, %v694_v21  ;;  %v718_v36 = vmul.f32 %v712_v22, %v712_v22  ;;  %v706_v25 = vadd.f32 %v705_v38, %v613_v24 }
 0x220   :  { %v728_v42 = vadd.f32 %v724_v29, %v700_v16  ;;  %v723_v43 = vmul.f32 0.044715, %v719_v32  ;;  %v722_v47 = vmul.f32 %v718_v36, %v712_v22  ;;  %v717_v28 = vmul.f32 %v706_v25, %v706_v25 }
 0x222   :  { %v732_v48 = vmul.f32 0.7978846, %v728_v42  ;;  %v727_v49 = vadd.f32 %v723_v43, %v694_v21  ;;  %v726_v53 = vmul.f32 0.044715, %v722_v47  ;;  %v721_v54 = vmul.f32 %v717_v28, %v706_v25 }
 0x224   :  { %1803 = vtanh.f32 %v732_v48  ;;  %v731_v39 = vmul.f32 0.7978846, %v727_v49  ;;  %v730_v55 = vadd.f32 %v726_v53, %v712_v22  ;;  %v725_v59 = vmul.f32 0.044715, %v721_v54 }
 0x226   :  { %1805 = vtanh.f32 %v731_v39  ;;  %v734_v60 = vmul.f32 0.7978846, %v730_v55  ;;  %v729_v61 = vadd.f32 %v725_v59, %v706_v25 }
 0x228   :  { %1807 = vtanh.f32 %v734_v60  ;;  %v733_v1 = vmul.f32 0.7978846, %v729_v61 }
 0x22a   :  { %1809 = vtanh.f32 %v733_v1 }
 0x231   :  { %v1804_v3 = vpop.eup %1803 }
 0x232   :  { %v740_v7 = vadd.f32 1.0, %v1804_v3 }
 0x233   :  { %v1806_v8 = vpop.eup %1805 }
 0x234   :  { %v744_v11 = vmul.f32 0.5, %v740_v7  ;;  %v739_v14 = vadd.f32 1.0, %v1806_v8 }
 0x235   :  { %v1808_v12 = vpop.eup %1807 }
 0x236   :  { %v748_v17 = vmul.f32 %v744_v11, %v700_v16  ;;  %v743_v18 = vmul.f32 0.5, %v739_v14  ;;  %v742_v19 = vadd.f32 1.0, %v1808_v12 }
 0x237   :  { %v1810_v23 = vpop.eup %1809 }
 0x238   :  { %v771_v13 = vsel %vm766_vm1, %v748_v17, 0  ;;  %v747_v26 = vmul.f32 %v743_v18, %v694_v21  ;;  %v741_v27 = vadd.f32 1.0, %v1810_v23  ;;  %v746_v20 = vmul.f32 0.5, %v742_v19 }
 0x239   :  { %v2128_v30 = vand.u32 4294901760, %v771_v13 }
 0x23a   :  { %v768_v33 = vsel %vm766_vm1, %v747_v26, 0  ;;  %v745_v24 = vmul.f32 0.5, %v741_v27  ;;  %v750_v38 = vmul.f32 %v746_v20, %v712_v22 }
 0x23b   :  { %v2131_v29 = vand.u32 4294901760, %v768_v33  ;;  %v2134_v32 = vsub.f32 %v771_v13, %v2128_v30 }
 0x23c   :  { %v749_v16 = vmul.f32 %v745_v24, %v706_v25  ;;  %v777_v36 = vsel %vm766_vm1, %v750_v38, 0 }
 0x23d   :  { %1701 = vmatprep.mubr.f32.mxu1 %v2131_v29  ;;  %v2138_v42 = vand.u32 4294901760, %v777_v36  ;;  %v853_v21 = vsub.f32 %v768_v33, %v2131_v29  ;;  %v864_v43 = vand.u32 4294901760, %v2134_v32 }
 0x23e   :  { %1702 = vmatmul.mubr.f32.vlgmr.msra.gmra.mxu1 %v2128_v30  ;;  %v774_v22 = vsel %vm766_vm1, %v749_v16, 0 }
 0x23f   :  { %1730 = vmatpush3.msra.mxu1 %v2005_v31  ;;  %v2145_v47 = vand.u32 4294901760, %v774_v22  ;;  %v854_v28 = vand.u32 4294901760, %v853_v21  ;;  %v2148_v25 = vsub.f32 %v777_v36, %v2138_v42  ;;  %v865_v48 = vsub.f32 %v2134_v32, %v864_v43 }
 0x240   :  { %1731 = vmatprep.subr.mxu1 %v2013_v35 }
 0x241   :  { %1732 = vmatpush3.msra.mxu1 %v2013_v35  ;;  %1704 = vmatprep.mubr.f32.mxu1 %v2145_v47  ;;  %v855_v49 = vsub.f32 %v853_v21, %v854_v28  ;;  %v873_v53 = vsub.f32 %v774_v22, %v2145_v47  ;;  %v884_v54 = vand.u32 4294901760, %v2148_v25  ;;  %v866_v59 = vand.u32 4294901760, %v865_v48 }
 0x242   :  { %1733 = vmatprep.subr.mxu1 %v2026_v41  ;;  %1705 = vmatmul.mubr.f32.gmra.mxu1 %v2138_v42 }
 0x243   :  { %1734 = vmatpush3.msra.mxu1 %v2026_v41  ;;  %1745 = vmatprep.mubr.f32.mxu1 %v854_v28  ;;  %v856_v39 = vand.u32 4294901760, %v855_v49  ;;  %v874_v55 = vand.u32 4294901760, %v873_v53  ;;  %v885_v61 = vsub.f32 %v2148_v25, %v884_v54  ;;  %v1813_v49 = vld [vmem:[%s2256_s0 + $0x10] sm:$0xff] }
 0x244   :  { %1735 = vmatprep.subr.mxu1 %v2041_v46 }
 0x245   :  { %1736 = vmatpush3.msra.mxu1 %v2041_v46  ;;  %1679 = vmatprep.mubr.f32.mxu0 %v856_v39  ;;  %v875_v60 = vsub.f32 %v873_v53, %v874_v55  ;;  %v886_v3 = vand.u32 4294901760, %v885_v61 }
 0x246   :  { %1737 = vmatprep.subr.mxu1 %v2057_v52  ;;  %1680 = vmatmul.mubr.f32.vlgmr.msra.gmra.mxu0 %v866_v59 }
 0x247   :  { %1708 = vmatpush3.msra.mxu0 %v2011_v34  ;;  %1738 = vmatpush3.msra.mxu1 %v2057_v52  ;;  %v876_v1 = vand.u32 4294901760, %v875_v60 }
 0x248   :  { %1709 = vmatprep.subr.mxu0 %v2024_v40  ;;  %1739 = vmatprep.subr.mxu1 %v2068_v57 }
 0x249   :  { %1710 = vmatpush3.msra.mxu0 %v2024_v40  ;;  %1740 = vmatpush3.msra.mxu1 %v2068_v57 }
 0x24a   :  { %1682 = vmatprep.mubr.f32.mxu0 %v876_v1  ;;  %1711 = vmatprep.subr.mxu0 %v2039_v45 }
 0x24b   :  { %1741 = vmatprep.subr.mxu1 %v2082_v63  ;;  %1683 = vmatmul.mubr.f32.gmra.mxu0 %v886_v3 }
 0x24c   :  { %1712 = vmatpush3.msra.mxu0 %v2039_v45  ;;  %1742 = vmatpush3.msra.mxu1 %v2082_v63 }
 0x24d   :  { %1713 = vmatprep.subr.mxu0 %v2054_v51  ;;  %1723 = vmatprep.mubr.f32.mxu0 %v853_v21  ;;  %v1811_v21 = vld [vmem:[%s2256_s0] sm:$0xff] }
 0x24e   :  { %1743 = vmatprep.subr.mxu1 %v2098_v6  ;;  %1714 = vmatpush3.msra.mxu0 %v2054_v51 }
 0x24f   :  { %1744 = vmatpush3.msra.mxu1 %v2098_v6  ;;  %1715 = vmatprep.subr.mxu0 %v2071_v58 }
 0x250   :  { %1746 = vmatmul.mubr.f32.vlgmr.msra.gmra.mxu1 %v864_v43  ;;  %1773 = vmatprep.subr.mxu1 %v2005_v31 }
 0x251   :  { %1716 = vmatpush3.msra.mxu0 %v2071_v58  ;;  %1748 = vmatprep.mubr.f32.mxu1 %v874_v55 }
 0x252   :  { %1774 = vmatpush3.msra.mxu1 %v2005_v31  ;;  %1717 = vmatprep.subr.mxu0 %v2080_v62 }
 0x253   :  { %1775 = vmatprep.subr.mxu1 %v2013_v35  ;;  %1718 = vmatpush3.msra.mxu0 %v2080_v62 }
 0x254   :  { %1776 = vmatpush3.msra.mxu1 %v2013_v35  ;;  %1719 = vmatprep.subr.mxu0 %v2096_v5 }
 0x255   :  { %1749 = vmatmul.mubr.f32.gmra.mxu1 %v884_v54  ;;  %1777 = vmatprep.subr.mxu1 %v2026_v41 }
 0x256   :  { %1720 = vmatpush3.msra.mxu0 %v2096_v5  ;;  %1778 = vmatpush3.msra.mxu1 %v2026_v41 }
 0x257   :  { %1789 = vmatprep.mubr.f32.mxu1 %v2131_v29  ;;  %1721 = vmatprep.subr.mxu0 %v2110_v10 }
 0x258   :  { %1779 = vmatprep.subr.mxu1 %v2041_v46  ;;  %1722 = vmatpush3.msra.mxu0 %v2110_v10 }
 0x259   :  { %1780 = vmatpush3.msra.mxu1 %v2041_v46  ;;  %1724 = vmatmul.mubr.f32.vlgmr.msra.gmra.mxu0 %v2134_v32 }
 0x25a   :  { %1751 = vmatprep.subr.mxu0 %v2021_v37  ;;  %1781 = vmatprep.subr.mxu1 %v2057_v52 }
 0x25b   :  { %1726 = vmatprep.mubr.f32.mxu0 %v873_v53  ;;  %1752 = vmatpush3.msra.mxu0 %v2021_v37 }
 0x25c   :  { %1782 = vmatpush3.msra.mxu1 %v2057_v52  ;;  %1753 = vmatprep.subr.mxu0 %v2036_v44 }
 0x25d   :  { %1783 = vmatprep.subr.mxu1 %v2068_v57  ;;  %1754 = vmatpush3.msra.mxu0 %v2036_v44 }
 0x25e   :  { %1784 = vmatpush3.msra.mxu1 %v2068_v57  ;;  %1727 = vmatmul.mubr.f32.gmra.mxu0 %v2148_v25 }
 0x25f   :  { %1755 = vmatprep.subr.mxu0 %v2051_v50  ;;  %1785 = vmatprep.subr.mxu1 %v2082_v63 }
 0x260   :  { %1756 = vmatpush3.msra.mxu0 %v2051_v50  ;;  %1767 = vmatprep.mubr.f32.mxu0 %v2131_v29  ;;  %v1458_v50 = vld [vmem:[%s2260_s4] ss:$0 sm:$0xff] }
 0x261   :  { %1786 = vmatpush3.msra.mxu1 %v2082_v63  ;;  %1757 = vmatprep.subr.mxu0 %v2066_v56 }
 0x262   :  { %1787 = vmatprep.subr.mxu1 %v2098_v6  ;;  %1758 = vmatpush3.msra.mxu0 %v2066_v56 }
 0x263   :  { %1788 = vmatpush3.msra.mxu1 %v2098_v6  ;;  %1759 = vmatprep.subr.mxu0 %v2086_v0 }
 0x264   :  { %1790 = vmatmul.mubr.f32.vlgmr.msra.gmra.mxu1 %v2128_v30  ;;  %1760 = vmatpush3.msra.mxu0 %v2086_v0 }
 0x265   :  { %1792 = vmatprep.mubr.f32.mxu1 %v2145_v47  ;;  %1761 = vmatprep.subr.mxu0 %v2093_v4 }
 0x266   :  { %1762 = vmatpush3.msra.mxu0 %v2093_v4 }
 0x267   :  { %1763 = vmatprep.subr.mxu0 %v2107_v9 }
 0x268   :  { %1793 = vmatmul.mubr.f32.gmra.mxu1 %v2138_v42  ;;  %1764 = vmatpush3.msra.mxu0 %v2107_v9 }
 0x269   :  { %1765 = vmatprep.subr.mxu0 %v2117_v15 }
 0x26a   :  { %1766 = vmatpush3.msra.mxu0 %v2117_v15 }
 0x26b   :  { %1768 = vmatmul.mubr.f32.vlgmr.msra.gmra.mxu0 %v2128_v30 }
 0x26c   :  { %1770 = vmatprep.mubr.f32.mxu0 %v2145_v47 }
 0x26f   :  { %1771 = vmatmul.mubr.f32.gmra.mxu0 %v2138_v42 }
 0x2fe   :  { %v1703_v31 = vpop.f32.mrf.mxu1 }
 0x300   :  { %v999_v34 = vpop.f32.mrf.mxu1 }
 0x302   :  { %v1706_v37 = vpop.f32.mrf.mxu1 }
 0x304   :  { %v1011_v41 = vpop.f32.mrf.mxu1 }
 0x306   :  { %v1681_v35 = vpop.f32.mrf.mxu0 }
 0x307   :  { %v869_v56 = vadd.f32 %v1681_v35, %v1458_v50 }
 0x308   :  { %v858_v40 = vpop.f32.mrf.mxu0 }
 0x309   :  { %v859_v62 = vadd.f32 %v1458_v50, %v858_v40  ;;  %v1006_v0 = vadd.f32 %v1703_v31, %v869_v56 }
 0x30b   :  { %v1684_v44 = vpop.f32.mrf.mxu0  ;;  %v1000_v10 = vadd.f32 %v999_v34, %v859_v62 }
 0x30c   :  { %v889_v63 = vadd.f32 %v1684_v44, %v1458_v50 }
 0x30d   :  { %v878_v46 = vpop.f32.mrf.mxu0 }
 0x30e   :  { %v879_v6 = vadd.f32 %v1458_v50, %v878_v46  ;;  %v1018_v8 = vadd.f32 %v1706_v37, %v889_v63 }
 0x310   :  { %v1747_v45 = vpop.f32.mrf.mxu1  ;;  %v1012_v12 = vadd.f32 %v1011_v41, %v879_v6 }
 0x312   :  { %v1207_v51 = vpop.f32.mrf.mxu1 }
 0x315   :  { %v1750_v57 = vpop.f32.mrf.mxu1 }
 0x317   :  { %v1223_v4 = vpop.f32.mrf.mxu1 }
 0x319   :  { %v1725_v52 = vpop.f32.mrf.mxu0 }
 0x31a   :  { %v1113_v9 = vadd.f32 %v1725_v52, %v1006_v0 }
 0x31b   :  { %v1105_v58 = vpop.f32.mrf.mxu0 }
 0x31c   :  { %v1106_v7 = vadd.f32 %v1105_v58, %v1000_v10  ;;  %v1216_v17 = vadd.f32 %v1747_v45, %v1113_v9 }
 0x31e   :  { %v1728_v5 = vpop.f32.mrf.mxu0  ;;  %v1208_v26 = vadd.f32 %v1207_v51, %v1106_v7 }
 0x31f   :  { %v1127_v14 = vadd.f32 %v1728_v5, %v1018_v8 }
 0x320   :  { %v1119_v11 = vpop.f32.mrf.mxu0 }
 0x321   :  { %v1120_v23 = vadd.f32 %v1119_v11, %v1012_v12  ;;  %v1232_v33 = vadd.f32 %v1750_v57, %v1127_v14 }
 0x323   :  { %v1224_v36 = vadd.f32 %v1223_v4, %v1120_v23 }
 0x324   :  { %v1791_v15 = vpop.f32.mrf.mxu1 }
 0x326   :  { %v1423_v18 = vpop.f32.mrf.mxu1 }
 0x328   :  { %v1794_v24 = vpop.f32.mrf.mxu1 }
 0x32a   :  { %v1435_v28 = vpop.f32.mrf.mxu1 }
 0x32b   :  { %v1769_v19 = vpop.f32.mrf.mxu0 }
 0x32c   :  { %v1333_v13 = vadd.f32 %v1769_v19, %v1216_v17 }
 0x32d   :  { %v1326_v27 = vpop.f32.mrf.mxu0 }
 0x32e   :  { %v1430_v20 = vadd.f32 %v1791_v15, %v1333_v13  ;;  %v1327_v30 = vadd.f32 %v1326_v27, %v1208_v26 }
 0x32f   :  { %v1772_v38 = vpop.f32.mrf.mxu0 }
 0x330   :  { %v1446_v29 = vadd.f32 %v1430_v20, %v1853_v2  ;;  %v1424_v32 = vadd.f32 %v1423_v18, %v1327_v30  ;;  %v1345_v16 = vadd.f32 %v1772_v38, %v1232_v33  ;;  %v1812_v2 = vld [vmem:[%s2256_s0 + $0x18] sm:$0xff] }
 0x331   :  { %v1338_v42 = vpop.f32.mrf.mxu0 }
 0x332   :  { %1450 = vst.msk [vmem:[%s2261_s5 + $0x8] sm:$0xff] %vm24_vm0, %v1446_v29  ;;  %v1445_v43 = vadd.f32 %v1811_v21, %v1424_v32  ;;  %v1442_v22 = vadd.f32 %v1794_v24, %v1345_v16  ;;  %v1339_v47 = vadd.f32 %v1338_v42, %v1224_v36 }
 0x334   :  { %1449 = vst.msk [vmem:[%s2261_s5] sm:$0xff] %vm24_vm0, %v1445_v43  ;;  %v1448_v25 = vadd.f32 %v1812_v2, %v1442_v22  ;;  %v1436_v48 = vadd.f32 %v1435_v28, %v1339_v47 }
 0x336   :  { %1452 = vst.msk [vmem:[%s2261_s5 + $0x18] sm:$0xff] %vm24_vm0, %v1448_v25  ;;  %v1447_v53 = vadd.f32 %v1813_v49, %v1436_v48 }
 0x338   :  { %1451 = vst.msk [vmem:[%s2261_s5 + $0x10] sm:$0xff] %vm24_vm0, %v1447_v53 }

// kernel: cross_transformer_forward.4
= control target key start
LH: loop header
LB: loop body
LE: loop exit
PB: predicated region body
PF: predicated region fallthrough
CT: control target
= control target key end

     0   :  { %s7319_s27 = smov 0   ;;  %s8047_s0 = inlined_call_operand.vmem [shape: f32[2,16,32], index: 0, kind: input, shape index: {}]   ;;  %s8048_s1 = inlined_call_operand.vmem [shape: f32[2,16,32], index: 1, kind: input, shape index: {}]   ;;  %s8049_s2 = inlined_call_operand.vmem [shape: f32[32,32], index: 2, kind: input, shape index: {}]   ;;  %s8050_s3 = inlined_call_operand.vmem [shape: f32[1,32], index: 3, kind: input, shape index: {}]   ;;  %s8051_s4 = inlined_call_operand.vmem [shape: f32[32,64], index: 4, kind: input, shape index: {}]   ;;  %s8052_s5 = inlined_call_operand.vmem [shape: f32[1,64], index: 5, kind: input, shape index: {}]   ;;  %s8053_s6 = inlined_call_operand.vmem [shape: f32[32,32], index: 6, kind: input, shape index: {}]   ;;  %s8054_s7 = inlined_call_operand.vmem [shape: f32[1,32], index: 7, kind: input, shape index: {}]   ;;  %s8055_s8 = inlined_call_operand.vmem [shape: f32[2,16,32], index: 8, kind: output, shape index: {}]  }
   0x1 LB: > { %s6343_s28 = sadd.s32 4294967295, %s7262_s27   ;;  %p6347_p0 = scmp.ge.s32.totalorder %s7262_s27, 1  ;;  %s7262_s27 = sphi %s7319_s27, %s18_s27  }
   0x2   : > { %p272_p1 = scmp.lt.s32.totalorder %s7262_s27, 3 }
   0x4   : > { %p273_p2 = pnand %p6347_p0, %p272_p1 }
   0x5   : > { %p311_p3 = scmp.lt.s32.totalorder (!%p273_p2), %s6343_s28, 1  ;;  %s7264_s15 = smov (!%p273_p2), 96  }
   0x6   : > { %276 = sbr.rel (%p273_p2) target bundleno = 3375 (0xd2f), region = 52  ;;  %s7265_s16 = smov (!%p273_p2), 120  }
   0x7   : > { %s7266_s17 = smov (!%p273_p2), 88   ;;  %s7267_s18 = smov (!%p273_p2), 112  }
   0x8   : > { %s7268_s19 = smov (!%p273_p2), 80   ;;  %s7269_s20 = smov (!%p273_p2), 104  }
   0x9   : > { %s7270_s21 = smov (!%p273_p2), 72   ;;  %s7271_s22 = smov (!%p273_p2), 8  }
   0xa   : > { %s7272_s23 = smov (!%p273_p2), 16  }
   0xb   : > { %s8057_s28 = smov (!%p311_p3, %s6343_s28), 1  ;;  %vm330_vm0 = vcmask 261120   ;;  %v387_v28 = vld [vmem:[%s8049_s2 + $0x18] sm:$0xff]  ;;  %v386_v30 = vld [vmem:[%s8049_s2 + $0x10] sm:$0xff]  ;;  %v385_v33 = vld [vmem:[%s8049_s2 + $0x8] sm:$0xff]  ;;  %vm1474_vm1 = vcmask 64512  }
   0xc   : > { %s7327_s29 = sshll.u32 %s8057_s28, 4  ;;  %v7368_v29 = vand.u32 4294901760, %v387_v28  ;;  %v7376_v32 = vand.u32 4294901760, %v386_v30  ;;  %v7389_v36 = vand.u32 4294901760, %v385_v33  ;;  %v384_v37 = vld [vmem:[%s8049_s2] sm:$0xff]  ;;  %vm1991_vm2 = vcmask 130048  }
   0xd   : > { %s7333_s10 = scalar_lea.vmem %s8047_s0, %s7327_s29  ;;  %s320_s13 = scalar_lea.vmem %s8048_s1, %s7327_s29  ;;  %v7404_v41 = vand.u32 4294901760, %v384_v37  ;;  %vm5724_vm3 = vcmask 195584  }
   0xe   : > { %v326_v0 = vld [vmem:[%s7333_s10] sm:$0xff]  ;;  %v327_v1 = vld [vmem:[%s7333_s10 + $0x8] sm:$0xff]  ;;  %v7374_v31 = vsub.f32 %v387_v28, %v7368_v29  ;;  %6662 = vmatprep.subr.mxu0 %v7368_v29  ;;  %v7387_v35 = vsub.f32 %v386_v30, %v7376_v32  ;;  %v7402_v40 = vsub.f32 %v385_v33, %v7389_v36 }
   0xf   : > { %v331_v2 = vsel %vm330_vm0, %v326_v0, 0.0  ;;  %v328_v3 = vld [vmem:[%s320_s13] sm:$0xff]  ;;  %v329_v4 = vld [vmem:[%s320_s13 + $0x8] sm:$0xff]  ;;  %v334_v6 = vsel %vm330_vm0, %v327_v1, 0.0  ;;  %6663 = vmatpush3.msra.mxu0 %v7368_v29  ;;  %v7414_v45 = vsub.f32 %v384_v37, %v7404_v41  ;;  %s7273_s13 = smov 24  }
  0x10   : > { %332 = vadd.xlane.f32.xlu0 %v331_v2  ;;  %v358_v5 = vsel %vm330_vm0, %v328_v3, 0.0  ;;  %v361_v7 = vsel %vm330_vm0, %v329_v4, 0.0  ;;  %v7384_v34 = vand.u32 4294901760, %v7374_v31  ;;  %6664 = vmatprep.subr.mxu0 %v7376_v32  ;;  %v7399_v39 = vand.u32 4294901760, %v7387_v35 }
  0x11   : > { %359 = vadd.xlane.f32.xlu1 %v358_v5  ;;  %6665 = vmatpush3.msra.mxu0 %v7376_v32  ;;  %v7411_v44 = vand.u32 4294901760, %v7402_v40  ;;  %v7421_v48 = vand.u32 4294901760, %v7414_v45 }
  0x12   : > { %v518_v38 = vsub.f32 %v7374_v31, %v7384_v34  ;;  %6666 = vmatprep.subr.mxu0 %v7389_v36  ;;  %v525_v43 = vsub.f32 %v7387_v35, %v7399_v39 }
  0x13   : > { %6667 = vmatpush3.msra.mxu0 %v7389_v36  ;;  %v532_v47 = vsub.f32 %v7402_v40, %v7411_v44  ;;  %v539_v50 = vsub.f32 %v7414_v45, %v7421_v48 }
  0x14   : > { %335 = vadd.xlane.f32.xlu0 %v334_v6  ;;  %v519_v42 = vand.u32 4294901760, %v518_v38  ;;  %6668 = vmatprep.subr.mxu0 %v7404_v41  ;;  %v526_v46 = vand.u32 4294901760, %v525_v43 }
  0x15   : > { %362 = vadd.xlane.f32.xlu1 %v361_v7  ;;  %6669 = vmatpush3.msra.mxu0 %v7404_v41  ;;  %v533_v49 = vand.u32 4294901760, %v532_v47  ;;  %v540_v51 = vand.u32 4294901760, %v539_v50  ;;  %v932_v7 = vld [vmem:[%s8051_s4 + $0x18] sm:$0xff] }
  0x16   : > { %6673 = vmatprep.subr.mxu1 %v519_v42  ;;  %6684 = vmatprep.subr.mxu0 %v7374_v31 }
  0x17   : > { %6674 = vmatpush3.msra.mxu1 %v519_v42 }
  0x18   : > { %6675 = vmatprep.subr.mxu1 %v526_v46 }
  0x19   : > { %6676 = vmatpush3.msra.mxu1 %v526_v46 }
  0x1a   : > { %6677 = vmatprep.subr.mxu1 %v533_v49 }
  0x1b   : > { %6678 = vmatpush3.msra.mxu1 %v533_v49 }
  0x1c   : > { %6679 = vmatprep.subr.mxu1 %v540_v51 }
  0x1d   : > { %6680 = vmatpush3.msra.mxu1 %v540_v51 }
  0x1e   : > { %6695 = vmatprep.subr.mxu1 %v7368_v29 }
  0x99   : > { %v333_v8 = vpop.xlane.xlu0 %332 }
  0x9a   : > { %v338_v9 = vmul.f32 0.03125, %v333_v8  ;;  %v360_v10 = vpop.xlane.xlu1 %359 }
  0x9b   : > { %v364_v11 = vmul.f32 0.03125, %v360_v10 }
  0x9c   : > { %v7345_v12 = vsub.f32 %v326_v0, %v338_v9 }
  0x9d   : > { %v7347_v13 = vsub.f32 %v328_v3, %v364_v11  ;;  %v336_v14 = vpop.xlane.xlu0 %335  ;;  %v7440_v11 = vand.u32 4294901760, %v932_v7 }
  0x9e   : > { %v339_v15 = vmul.f32 0.03125, %v336_v14  ;;  %v363_v16 = vpop.xlane.xlu1 %362  ;;  %v342_v17 = vmul.f32 %v7345_v12, %v7345_v12 }
  0x9f   : > { %v365_v18 = vmul.f32 0.03125, %v363_v16  ;;  %v368_v19 = vmul.f32 %v7347_v13, %v7347_v13  ;;  %v930_v16 = vld [vmem:[%s8051_s4 + $0x8] sm:$0xff] }
  0xa0   : > { %v7353_v20 = vsub.f32 %v327_v1, %v339_v15  ;;  %v344_v21 = vsel %vm330_vm0, %v342_v17, 0.0 }
  0xa1   : > { %v7356_v22 = vsub.f32 %v329_v4, %v365_v18  ;;  %345 = vadd.xlane.f32.xlu0 %v344_v21  ;;  %v370_v23 = vsel %vm330_vm0, %v368_v19, 0.0  ;;  %v7456_v21 = vsub.f32 %v932_v7, %v7440_v11 }
  0xa2   : > { %v343_v24 = vmul.f32 %v7353_v20, %v7353_v20 }
  0xa3   : > { %v369_v25 = vmul.f32 %v7356_v22, %v7356_v22  ;;  %v7474_v33 = vand.u32 4294901760, %v7456_v21 }
  0xa4   : > { %v347_v26 = vsel %vm330_vm0, %v343_v24, 0.0 }
  0xa5   : > { %371 = vadd.xlane.f32.xlu0 %v370_v23  ;;  %348 = vadd.xlane.f32.xlu1 %v347_v26  ;;  %v373_v27 = vsel %vm330_vm0, %v369_v25, 0.0  ;;  %v929_v23 = vld [vmem:[%s8051_s4] sm:$0xff]  ;;  %v7462_v25 = vand.u32 4294901760, %v930_v16  ;;  %v1063_v46 = vsub.f32 %v7456_v21, %v7474_v33 }
  0xa6   : > { %v7470_v30 = vand.u32 4294901760, %v929_v23 }
  0xa7   : > { %v7478_v37 = vsub.f32 %v930_v16, %v7462_v25  ;;  %v1064_v50 = vand.u32 4294901760, %v1063_v46 }
  0xa8   : > { %v7488_v43 = vsub.f32 %v929_v23, %v7470_v30  ;;  %v6355_v23 = vld [vmem:[%s8052_s5] ss:$0 sm:$0xff] }
  0xa9   : > { %374 = vadd.xlane.f32.xlu1 %v373_v27 }
 0x12a   : > { %v346_v52 = vpop.xlane.xlu0 %345 }
 0x12b   : > { %v350_v53 = vmul.f32 0.03125, %v346_v52 }
 0x12d   : > { %v352_v54 = vadd.f32 1e-05, %v350_v53 }
 0x12e   : > { %v349_v55 = vpop.xlane.xlu1 %348  ;;  %v372_v57 = vpop.xlane.xlu0 %371 }
 0x12f   : > { %7214 = vrsqrt.f32 %v352_v54  ;;  %v351_v56 = vmul.f32 0.03125, %v349_v55  ;;  %v376_v59 = vmul.f32 0.03125, %v372_v57 }
 0x131   : > { %v353_v58 = vadd.f32 1e-05, %v351_v56  ;;  %v378_v60 = vadd.f32 1e-05, %v376_v59  ;;  %v6354_v59 = vld [vmem:[%s8050_s3] ss:$0 sm:$0xff] }
 0x132   : > { %v375_v61 = vpop.xlane.xlu1 %374 }
 0x133   : > { %7216 = vrsqrt.f32 %v353_v58  ;;  %v377_v62 = vmul.f32 0.03125, %v375_v61 }
 0x134   : > { %7218 = vrsqrt.f32 %v378_v60 }
 0x135   : > { %v379_v1 = vadd.f32 1e-05, %v377_v62 }
 0x137   : > { %7220 = vrsqrt.f32 %v379_v1 }
 0x13c   : > { %v7215_v63 = vpop.eup %7214 }
 0x13d   : > { %v356_v0 = vmul.f32 %v7215_v63, %v7345_v12  ;;  %v931_v12 = vld [vmem:[%s8051_s4 + $0x10] sm:$0xff] }
 0x13f   : > { %v396_v2 = vsel %vm330_vm0, %v356_v0, 0 }
 0x140   : > { %v7217_v3 = vpop.eup %7216  ;;  %v7429_v4 = vand.u32 4294901760, %v396_v2 }
 0x141   : > { %v357_v5 = vmul.f32 %v7217_v3, %v7353_v20  ;;  %v7219_v17 = vpop.eup %7218  ;;  %v7452_v20 = vand.u32 4294901760, %v931_v12 }
 0x142   : > { %6681 = vmatprep.mubr.f32.mxu1 %v7429_v4  ;;  %v471_v6 = vsub.f32 %v396_v2, %v7429_v4  ;;  %v382_v26 = vmul.f32 %v7219_v17, %v7347_v13 }
 0x143   : > { %v399_v8 = vsel %vm330_vm0, %v357_v5, 0  ;;  %v7468_v28 = vsub.f32 %v931_v12, %v7452_v20 }
 0x144   : > { %v7438_v9 = vand.u32 4294901760, %v399_v8  ;;  %v472_v10 = vand.u32 4294901760, %v471_v6  ;;  %v7221_v13 = vpop.eup %7220  ;;  %v941_v38 = vsel %vm330_vm0, %v382_v26, 0 }
 0x145   : > { %v7485_v42 = vand.u32 4294901760, %v7468_v28  ;;  %v383_v47 = vmul.f32 %v7221_v13, %v7356_v22 }
 0x146   : > { %v481_v14 = vsub.f32 %v399_v8, %v7438_v9  ;;  %6682 = vmatmul.mubr.f32.vlgmr.msra.gmra.mxu1 %v7438_v9  ;;  %v473_v15 = vsub.f32 %v471_v6, %v472_v10 }
 0x147   : > { %6696 = vmatpush3.msra.mxu1 %v7368_v29  ;;  %6703 = vmatprep.mubr.f32.mxu1 %v472_v10  ;;  %v1070_v49 = vsub.f32 %v7468_v28, %v7485_v42 }
 0x148   : > { %6697 = vmatprep.subr.mxu1 %v7376_v32  ;;  %v474_v18 = vand.u32 4294901760, %v473_v15  ;;  %v482_v19 = vand.u32 4294901760, %v481_v14 }
 0x149   : > { %6698 = vmatpush3.msra.mxu1 %v7376_v32 }
 0x14a   : > { %6699 = vmatprep.subr.mxu1 %v7389_v36  ;;  %6670 = vmatprep.mubr.f32.mxu0 %v474_v18  ;;  %v483_v24 = vsub.f32 %v481_v14, %v482_v19 }
 0x14b   : > { %6700 = vmatpush3.msra.mxu1 %v7389_v36 }
 0x14c   : > { %6701 = vmatprep.subr.mxu1 %v7404_v41  ;;  %v484_v27 = vand.u32 4294901760, %v483_v24 }
 0x14d   : > { %6702 = vmatpush3.msra.mxu1 %v7404_v41 }
 0x14e   : > { %6704 = vmatmul.mubr.f32.vlgmr.msra.gmra.mxu1 %v482_v19  ;;  %6717 = vmatprep.subr.mxu1 %v7368_v29 }
 0x14f   : > { %6671 = vmatmul.mubr.f32.vlgmr.msra.gmra.mxu0 %v484_v27  ;;  %6718 = vmatpush3.msra.mxu1 %v7368_v29  ;;  %v7495_v29 = vand.u32 4294901760, %v941_v38 }
 0x150   : > { %6685 = vmatpush3.msra.mxu0 %v7374_v31  ;;  %6725 = vmatprep.mubr.f32.mxu1 %v7429_v4  ;;  %v7498_v31 = vand.u32 4294901760, %v7478_v37 }
 0x151   : > { %6686 = vmatprep.subr.mxu0 %v7387_v35  ;;  %6692 = vmatprep.mubr.f32.mxu0 %v471_v6 }
 0x152   : > { %6719 = vmatprep.subr.mxu1 %v7376_v32  ;;  %6687 = vmatpush3.msra.mxu0 %v7387_v35  ;;  %v7508_v35 = vand.u32 4294901760, %v7488_v43  ;;  %v1077_v22 = vsub.f32 %v7478_v37, %v7498_v31 }
 0x153   : > { %6720 = vmatpush3.msra.mxu1 %v7376_v32  ;;  %6688 = vmatprep.subr.mxu0 %v7402_v40  ;;  %v944_v32 = vsel %vm330_vm0, %v383_v47, 0 }
 0x154   : > { %6721 = vmatprep.subr.mxu1 %v7389_v36  ;;  %6689 = vmatpush3.msra.mxu0 %v7402_v40  ;;  %v1016_v40 = vsub.f32 %v941_v38, %v7495_v29  ;;  %v1084_v51 = vsub.f32 %v7488_v43, %v7508_v35  ;;  %v1078_v52 = vand.u32 4294901760, %v1077_v22 }
 0x155   : > { %6722 = vmatpush3.msra.mxu1 %v7389_v36  ;;  %6690 = vmatprep.subr.mxu0 %v7414_v45  ;;  %v1071_v36 = vand.u32 4294901760, %v1070_v49 }
 0x156   : > { %6723 = vmatprep.subr.mxu1 %v7404_v41  ;;  %6691 = vmatpush3.msra.mxu0 %v7414_v45  ;;  %v7524_v45 = vand.u32 4294901760, %v944_v32  ;;  %v1017_v53 = vand.u32 4294901760, %v1016_v40 }
 0x157   : > { %6724 = vmatpush3.msra.mxu1 %v7404_v41  ;;  %6693 = vmatmul.mubr.f32.vlgmr.msra.gmra.mxu0 %v481_v14  ;;  %v1085_v41 = vand.u32 4294901760, %v1084_v51 }
 0x158   : > { %6706 = vmatprep.subr.mxu0 %v7384_v34  ;;  %6726 = vmatmul.mubr.f32.vlgmr.msra.gmra.mxu1 %v7438_v9  ;;  %v1018_v54 = vsub.f32 %v1016_v40, %v1017_v53 }
 0x159   : > { %6739 = vmatprep.subr.mxu1 %v1064_v50  ;;  %6707 = vmatpush3.msra.mxu0 %v7384_v34  ;;  %v1026_v34 = vsub.f32 %v944_v32, %v7524_v45 }
 0x15a   : > { %6714 = vmatprep.mubr.f32.mxu0 %v7429_v4  ;;  %6740 = vmatpush3.msra.mxu1 %v1064_v50  ;;  %v1019_v55 = vand.u32 4294901760, %v1018_v54 }
 0x15b   : > { %6747 = vmatprep.mubr.f32.mxu1 %v7495_v29  ;;  %6708 = vmatprep.subr.mxu0 %v7399_v39 }
 0x15c   : > { %6741 = vmatprep.subr.mxu1 %v1071_v36  ;;  %6709 = vmatpush3.msra.mxu0 %v7399_v39  ;;  %v1027_v39 = vand.u32 4294901760, %v1026_v34 }
 0x15d   : > { %6742 = vmatpush3.msra.mxu1 %v1071_v36  ;;  %6710 = vmatprep.subr.mxu0 %v7411_v44 }
 0x15e   : > { %6743 = vmatprep.subr.mxu1 %v1078_v52  ;;  %6711 = vmatpush3.msra.mxu0 %v7411_v44  ;;  %v1028_v44 = vsub.f32 %v1026_v34, %v1027_v39 }
 0x15f   : > { %6744 = vmatpush3.msra.mxu1 %v1078_v52  ;;  %6712 = vmatprep.subr.mxu0 %v7421_v48 }
 0x160   : > { %6745 = vmatprep.subr.mxu1 %v1085_v41  ;;  %6713 = vmatpush3.msra.mxu0 %v7421_v48  ;;  %v1029_v48 = vand.u32 4294901760, %v1028_v44 }
 0x161   : > { %6746 = vmatpush3.msra.mxu1 %v1085_v41  ;;  %6715 = vmatmul.mubr.f32.vlgmr.msra.gmra.mxu0 %v7438_v9 }
 0x162   : > { %6728 = vmatprep.subr.mxu0 %v7440_v11  ;;  %6748 = vmatmul.mubr.f32.vlgmr.msra.gmra.mxu1 %v7524_v45 }
 0x163   : > { %6761 = vmatprep.subr.mxu1 %v7440_v11  ;;  %6729 = vmatpush3.msra.mxu0 %v7440_v11 }
 0x164   : > { %6736 = vmatprep.mubr.f32.mxu0 %v1019_v55  ;;  %6762 = vmatpush3.msra.mxu1 %v7440_v11 }
 0x165   : > { %6769 = vmatprep.mubr.f32.mxu1 %v1017_v53  ;;  %6730 = vmatprep.subr.mxu0 %v7452_v20 }
 0x166   : > { %6763 = vmatprep.subr.mxu1 %v7452_v20  ;;  %6731 = vmatpush3.msra.mxu0 %v7452_v20 }
 0x167   : > { %6764 = vmatpush3.msra.mxu1 %v7452_v20  ;;  %6732 = vmatprep.subr.mxu0 %v7462_v25 }
 0x168   : > { %6765 = vmatprep.subr.mxu1 %v7462_v25  ;;  %6733 = vmatpush3.msra.mxu0 %v7462_v25 }
 0x169   : > { %6766 = vmatpush3.msra.mxu1 %v7462_v25  ;;  %6734 = vmatprep.subr.mxu0 %v7470_v30 }
 0x16a   : > { %6767 = vmatprep.subr.mxu1 %v7470_v30  ;;  %6735 = vmatpush3.msra.mxu0 %v7470_v30 }
 0x16b   : > { %6768 = vmatpush3.msra.mxu1 %v7470_v30  ;;  %6737 = vmatmul.mubr.f32.vlgmr.msra.gmra.mxu0 %v1029_v48 }
 0x16c   : > { %6750 = vmatprep.subr.mxu0 %v7456_v21  ;;  %6770 = vmatmul.mubr.f32.vlgmr.msra.gmra.mxu1 %v1027_v39 }
 0x16d   : > { %6783 = vmatprep.subr.mxu1 %v7440_v11  ;;  %6751 = vmatpush3.msra.mxu0 %v7456_v21 }
 0x16e   : > { %6758 = vmatprep.mubr.f32.mxu0 %v1016_v40  ;;  %6784 = vmatpush3.msra.mxu1 %v7440_v11 }
 0x16f   : > { %6791 = vmatprep.mubr.f32.mxu1 %v7495_v29  ;;  %6752 = vmatprep.subr.mxu0 %v7468_v28 }
 0x170   : > { %6785 = vmatprep.subr.mxu1 %v7452_v20  ;;  %6753 = vmatpush3.msra.mxu0 %v7468_v28 }
 0x171   : > { %6786 = vmatpush3.msra.mxu1 %v7452_v20  ;;  %6754 = vmatprep.subr.mxu0 %v7478_v37 }
 0x172   : > { %6787 = vmatprep.subr.mxu1 %v7462_v25  ;;  %6755 = vmatpush3.msra.mxu0 %v7478_v37 }
 0x173   : > { %6788 = vmatpush3.msra.mxu1 %v7462_v25  ;;  %6756 = vmatprep.subr.mxu0 %v7488_v43 }
 0x174   : > { %6789 = vmatprep.subr.mxu1 %v7470_v30  ;;  %6757 = vmatpush3.msra.mxu0 %v7488_v43 }
 0x175   : > { %6790 = vmatpush3.msra.mxu1 %v7470_v30  ;;  %6759 = vmatmul.mubr.f32.vlgmr.msra.gmra.mxu0 %v1026_v34 }
 0x176   : > { %6772 = vmatprep.subr.mxu0 %v7474_v33  ;;  %6792 = vmatmul.mubr.f32.vlgmr.msra.gmra.mxu1 %v7524_v45 }
 0x177   : > { %6773 = vmatpush3.msra.mxu0 %v7474_v33  ;;  %6780 = vmatprep.mubr.f32.mxu0 %v7495_v29 }
 0x178   : > { %6774 = vmatprep.subr.mxu0 %v7485_v42 }
 0x179   : > { %6775 = vmatpush3.msra.mxu0 %v7485_v42 }
 0x17a   : > { %6776 = vmatprep.subr.mxu0 %v7498_v31 }
 0x17b   : > { %6777 = vmatpush3.msra.mxu0 %v7498_v31 }
 0x17c   : > { %6778 = vmatprep.subr.mxu0 %v7508_v35 }
 0x17d   : > { %6779 = vmatpush3.msra.mxu0 %v7508_v35 }
 0x17e   : > { %6781 = vmatmul.mubr.f32.vlgmr.msra.gmra.mxu0 %v7524_v45 }
 0x206   : > { %v6683_v57 = vpop.f32.mrf.mxu1 }
 0x208   : > { %v577_v62 = vpop.f32.mrf.mxu1 }
 0x20e   : > { %v6705_v63 = vpop.f32.mrf.mxu1 }
 0x20f   : > { %v6672_v56 = vpop.f32.mrf.mxu0 }
 0x210   : > { %v747_v3 = vpop.f32.mrf.mxu1  ;;  %v487_v9 = vadd.f32 %v6672_v56, %v6354_v59 }
 0x211   : > { %v476_v58 = vpop.f32.mrf.mxu0 }
 0x212   : > { %v477_v61 = vadd.f32 %v6354_v59, %v476_v58  ;;  %v584_v14 = vadd.f32 %v6683_v57, %v487_v9 }
 0x214   : > { %v578_v1 = vadd.f32 %v577_v62, %v477_v61 }
 0x217   : > { %v6694_v60 = vpop.f32.mrf.mxu0 }
 0x218   : > { %v6727_v4 = vpop.f32.mrf.mxu1  ;;  %v671_v16 = vadd.f32 %v6694_v60, %v584_v14 }
 0x219   : > { %v663_v0 = vpop.f32.mrf.mxu0 }
 0x21a   : > { %v664_v2 = vadd.f32 %v663_v0, %v578_v1  ;;  %v919_v10 = vpop.f32.mrf.mxu1  ;;  %v756_v20 = vadd.f32 %v6705_v63, %v671_v16 }
 0x21c   : > { %v748_v6 = vadd.f32 %v747_v3, %v664_v2 }
 0x221   : > { %v6716_v5 = vpop.f32.mrf.mxu0 }
 0x222   : > { %v845_v24 = vadd.f32 %v6716_v5, %v756_v20  ;;  %v6749_v26 = vpop.f32.mrf.mxu1 }
 0x223   : > { %v838_v7 = vpop.f32.mrf.mxu0 }
 0x224   : > { %v839_v8 = vadd.f32 %v838_v7, %v748_v6  ;;  %v7601_v30 = vadd.f32 %v6727_v4, %v845_v24  ;;  %v1122_v13 = vpop.f32.mrf.mxu1 }
 0x226   : > { %v7584_v11 = vadd.f32 %v919_v10, %v839_v8  ;;  %v1479_v46 = vsel %vm1474_vm1, %v7601_v30, 0 }
 0x227   : > { %v1564_v49 = vand.u32 4294901760, %v1479_v46 }
 0x228   : > { %v1476_v12 = vsel %vm1474_vm1, %v7584_v11, 0 }
 0x229   : > { %v7588_v15 = vand.u32 4294901760, %v1476_v12  ;;  %v1565_v51 = vsub.f32 %v1479_v46, %v1564_v49 }
 0x22b   : > { %6805 = vmatprep.mubr.f32.mxu1 %v7588_v15  ;;  %v7592_v17 = vsub.f32 %v1476_v12, %v7588_v15  ;;  %v6738_v19 = vpop.f32.mrf.mxu0  ;;  %v1566_v55 = vand.u32 4294901760, %v1565_v51 }
 0x22c   : > { %v1032_v28 = vadd.f32 %v6738_v19, %v6355_v23  ;;  %v6771_v42 = vpop.f32.mrf.mxu1 }
 0x22d   : > { %v1556_v18 = vand.u32 4294901760, %v7592_v17  ;;  %v1021_v27 = vpop.f32.mrf.mxu0  ;;  %v1567_v57 = vsub.f32 %v1565_v51, %v1566_v55 }
 0x22e   : > { %v1022_v33 = vadd.f32 %v6355_v23, %v1021_v27  ;;  %v1129_v38 = vadd.f32 %v6749_v26, %v1032_v28  ;;  %v1292_v35 = vpop.f32.mrf.mxu1 }
 0x22f   : > { %v1557_v21 = vsub.f32 %v7592_v17, %v1556_v18  ;;  %v1568_v62 = vand.u32 4294901760, %v1567_v57 }
 0x230   : > { %v1123_v31 = vadd.f32 %v1122_v13, %v1022_v33 }
 0x231   : > { %v1558_v25 = vand.u32 4294901760, %v1557_v21 }
 0x233   : > { %6798 = vmatprep.mubr.f32.mxu0 %v1558_v25 }
 0x235   : > { %v6760_v37 = vpop.f32.mrf.mxu0 }
 0x236   : > { %v1216_v29 = vadd.f32 %v6760_v37, %v1129_v38  ;;  %v6793_v22 = vpop.f32.mrf.mxu1 }
 0x237   : > { %v1208_v43 = vpop.f32.mrf.mxu0 }
 0x238   : > { %v1209_v47 = vadd.f32 %v1208_v43, %v1123_v31  ;;  %v1301_v50 = vadd.f32 %v6771_v42, %v1216_v29  ;;  %v1464_v41 = vpop.f32.mrf.mxu1 }
 0x23a   : > { %v1293_v36 = vadd.f32 %v1292_v35, %v1209_v47 }
 0x23e   : > { %v6782_v32 = vpop.f32.mrf.mxu0 }
 0x23f   : > { %v1390_v40 = vadd.f32 %v6782_v32, %v1301_v50 }
 0x240   : > { %v1383_v45 = vpop.f32.mrf.mxu0 }
 0x241   : > { %v7605_v52 = vadd.f32 %v6793_v22, %v1390_v40  ;;  %v1384_v53 = vadd.f32 %v1383_v45, %v1293_v36 }
 0x243   : > { %v7607_v34 = vadd.f32 %v1464_v41, %v1384_v53  ;;  %v1485_v54 = vsel %vm1474_vm1, %v7605_v52, 0 }
 0x244   : > { %v1516_v39 = vand.u32 4294901760, %v1485_v54 }
 0x245   : > { %v1482_v44 = vsel %vm1474_vm1, %v7607_v34, 0 }
 0x246   : > { %6794 = vmatprep.subr.mxu0 %v1516_v39  ;;  %v1519_v48 = vand.u32 4294901760, %v1482_v44  ;;  %v1604_v56 = vsub.f32 %v1485_v54, %v1516_v39 }
 0x247   : > { %6795 = vmatpush3.xpose.msra.mxu0 %v1516_v39 }
 0x248   : > { %6796 = vmatprep.subr.mxu0 %v1519_v48  ;;  %v1605_v58 = vand.u32 4294901760, %v1604_v56  ;;  %v1611_v59 = vsub.f32 %v1482_v44, %v1519_v48 }
 0x24a   : > { %v1606_v60 = vsub.f32 %v1604_v56, %v1605_v58  ;;  %v1612_v61 = vand.u32 4294901760, %v1611_v59 }
 0x24b   : > { %6797 = vmatpush3.xpose.msra.mxu0 %v1519_v48 }
 0x24c   : > { %6808 = vmatprep.subr.mxu0 %v1604_v56  ;;  %v1607_v63 = vand.u32 4294901760, %v1606_v60  ;;  %v1613_v0 = vsub.f32 %v1611_v59, %v1612_v61 }
 0x24e   : > { %6799 = vmatmul.mubr.f32.vlgmr.msra.gmra.mxu0 %v1568_v62  ;;  %6801 = vmatprep.subr.mxu1 %v1607_v63  ;;  %v1614_v1 = vand.u32 4294901760, %v1613_v0 }
 0x24f   : > { %6802 = vmatpush3.xpose.msra.mxu1 %v1607_v63  ;;  %6809 = vmatpush3.xpose.msra.mxu0 %v1604_v56 }
 0x250   : > { %6812 = vmatprep.mubr.f32.mxu0 %v7592_v17  ;;  %6803 = vmatprep.subr.mxu1 %v1614_v1 }
 0x251   : > { %6810 = vmatprep.subr.mxu0 %v1611_v59 }
 0x253   : > { %6804 = vmatpush3.xpose.msra.mxu1 %v1614_v1  ;;  %6811 = vmatpush3.xpose.msra.mxu0 %v1611_v59 }
 0x254   : > { %6815 = vmatprep.subr.mxu1 %v1516_v39  ;;  %6822 = vmatprep.subr.mxu0 %v1605_v58 }
 0x256   : > { %6806 = vmatmul.mubr.f32.vlgmr.msra.gmra.mxu1 %v1564_v49  ;;  %6813 = vmatmul.mubr.f32.vlgmr.msra.gmra.mxu0 %v1565_v51 }
 0x257   : > { %6816 = vmatpush3.xpose.msra.mxu1 %v1516_v39  ;;  %6819 = vmatprep.mubr.f32.mxu1 %v1556_v18 }
 0x258   : > { %6823 = vmatpush3.xpose.msra.mxu0 %v1605_v58  ;;  %6826 = vmatprep.mubr.f32.mxu0 %v7588_v15 }
 0x259   : > { %6817 = vmatprep.subr.mxu1 %v1519_v48  ;;  %6824 = vmatprep.subr.mxu0 %v1612_v61 }
 0x25b   : > { %6818 = vmatpush3.xpose.msra.mxu1 %v1519_v48 }
 0x25c   : > { %6825 = vmatpush3.xpose.msra.mxu0 %v1612_v61  ;;  %6829 = vmatprep.subr.mxu1 %v1516_v39 }
 0x25e   : > { %6820 = vmatmul.mubr.f32.vlgmr.msra.gmra.mxu1 %v1566_v55 }
 0x25f   : > { %6827 = vmatmul.mubr.f32.vlgmr.msra.gmra.mxu0 %v1564_v49  ;;  %6830 = vmatpush3.xpose.msra.mxu1 %v1516_v39 }
 0x260   : > { %6833 = vmatprep.mubr.f32.mxu1 %v7588_v15  ;;  %6831 = vmatprep.subr.mxu1 %v1519_v48 }
 0x263   : > { %6832 = vmatpush3.xpose.msra.mxu1 %v1519_v48 }
 0x266   : > { %6834 = vmatmul.mubr.f32.vlgmr.msra.gmra.mxu1 %v1564_v49 }
 0x30e   : > { %v6800_v2 = vpop.f32.mrf.mxu0 }
 0x310   : > { %v1560_v4 = vpop.f32.mrf.mxu0 }
 0x316   : > { %v6807_v3 = vpop.f32.mrf.mxu1  ;;  %v6814_v7 = vpop.f32.mrf.mxu0 }
 0x317   : > { %v1658_v6 = vadd.f32 %v6807_v3, %v6800_v2 }
 0x318   : > { %v1651_v5 = vpop.f32.mrf.mxu1  ;;  %v1733_v12 = vpop.f32.mrf.mxu0 }
 0x319   : > { %v1652_v8 = vadd.f32 %v1651_v5, %v1560_v4  ;;  %v1741_v10 = vadd.f32 %v6814_v7, %v1658_v6 }
 0x31b   : > { %v1734_v16 = vadd.f32 %v1733_v12, %v1652_v8 }
 0x31e   : > { %v6821_v9 = vpop.f32.mrf.mxu1 }
 0x31f   : > { %v1824_v17 = vadd.f32 %v6821_v9, %v1741_v10  ;;  %v6828_v18 = vpop.f32.mrf.mxu0 }
 0x320   : > { %v1815_v14 = vpop.f32.mrf.mxu1 }
 0x321   : > { %v1816_v19 = vadd.f32 %v1815_v14, %v1734_v16  ;;  %v1907_v20 = vadd.f32 %v6828_v18, %v1824_v17  ;;  %v1900_v15 = vpop.f32.mrf.mxu0 }
 0x323   : > { %v1901_v23 = vadd.f32 %v1900_v15, %v1816_v19 }
 0x326   : > { %v6835_v21 = vpop.f32.mrf.mxu1 }
 0x327   : > { %v1986_v24 = vadd.f32 %v6835_v21, %v1907_v20 }
 0x328   : > { %v1979_v25 = vpop.f32.mrf.mxu1 }
 0x329   : > { %v1990_v26 = vmul.f32 0.35355338, %v1986_v24  ;;  %v1980_v27 = vadd.f32 %v1979_v25, %v1901_v23 }
 0x32b   : > { %v1989_v28 = vmul.f32 0.35355338, %v1980_v27  ;;  %v1995_v33 = vsel %vm1991_vm2, %v1990_v26, -inf }
 0x32c   : > { %1996 = vmax.xlane.f32.xlu1 %v1995_v33 }
 0x32d   : > { %v1992_v37 = vsel %vm1991_vm2, %v1989_v28, -inf }
 0x32e   : > { %1993 = vmax.xlane.f32.xlu0 %v1992_v37 }
 0x3b5   : > { %v1997_v13 = vpop.xlane.xlu1 %1996 }
 0x3b6   : > { %v1999_v38 = vsub.f32 %v1990_v26, %v1997_v13 }
 0x3b7   : > { %v1994_v42 = vpop.xlane.xlu0 %1993 }
 0x3b8   : > { %v2002_v43 = vmul.f32 1.442695, %v1999_v38  ;;  %v1998_v46 = vsub.f32 %v1989_v28, %v1994_v42 }
 0x3ba   : > { %7222 = vpow2.f32 %v2002_v43  ;;  %v2000_v29 = vmul.f32 1.442695, %v1998_v46 }
 0x3bc   : > { %7224 = vpow2.f32 %v2000_v29 }
 0x3c7   : > { %v7223_v31 = vpop.eup %7222 }
 0x3c8   : > { %v2007_v47 = vsel %vm1991_vm2, %v7223_v31, 0.0 }
 0x3c9   : > { %v7225_v49 = vpop.eup %7224  ;;  %2008 = vadd.xlane.f32.xlu1 %v2007_v47 }
 0x3ca   : > { %v2004_v35 = vsel %vm1991_vm2, %v7225_v49, 0.0 }
 0x3cb   : > { %2005 = vadd.xlane.f32.xlu0 %v2004_v35 }
 0x3da   : > { %2014 = vrot.lane.b32.xlu1 %v7607_v34, %s7264_s15 }
 0x3de   : > { %2534 = vrot.lane.b32.xlu1 %v7605_v52, %s7265_s16 }
 0x3e1   : > { %2016 = vrot.lane.b32.xlu0 %v7605_v52, %s7264_s15 }
 0x3e2   : > { %2532 = vrot.lane.b32.xlu1 %v7607_v34, %s7265_s16 }
 0x3e5   : > { %2528 = vrot.lane.b32.xlu0 %v7584_v11, %s7265_s16 }
 0x3e6   : > { %2530 = vrot.lane.b32.xlu1 %v7601_v30, %s7265_s16 }
 0x452   : > { %v2009_v50 = vpop.xlane.xlu1 %2008 }
 0x453   : > { %7226 = vrcp.f32 %v2009_v50 }
 0x454   : > { %v2006_v22 = vpop.xlane.xlu0 %2005 }
 0x455   : > { %7228 = vrcp.f32 %v2006_v22 }
 0x456   : > { %v2015_v32 = vpop.permute.xlu1 %2014 }
 0x457   : > { %v7628_v40 = vand.u32 4294901760, %v2015_v32 }
 0x458   : > { %v2017_v36 = vpop.permute.xlu0 %2016 }
 0x459   : > { %v7631_v51 = vsub.f32 %v2015_v32, %v7628_v40  ;;  %v2055_v45 = vand.u32 4294901760, %v2017_v36 }
 0x45a   : > { %v2535_v53 = vpop.permute.xlu1 %2534 }
 0x45b   : > { %v7633_v41 = vsub.f32 %v2017_v36, %v2055_v45  ;;  %6836 = vmatprep.subr.mxu0 %v2055_v45  ;;  %v7636_v54 = vand.u32 4294901760, %v7631_v51  ;;  %v2542_v39 = vsel %vm1474_vm1, %v2535_v53, 0 }
 0x45c   : > { %6837 = vmatpush3.msra.mxu0 %v2055_v45  ;;  %v7644_v48 = vand.u32 4294901760, %v2542_v39  ;;  %v2529_v5 = vpop.permute.xlu0 %2528 }
 0x45d   : > { %6838 = vmatprep.subr.mxu0 %v7628_v40  ;;  %v7641_v55 = vand.u32 4294901760, %v7633_v41  ;;  %v2152_v58 = vsub.f32 %v7631_v51, %v7636_v54  ;;  %v2536_v12 = vsel %vm1474_vm1, %v2529_v5, 0 }
 0x45e   : > { %v2533_v44 = vpop.permute.xlu1 %2532  ;;  %6839 = vmatpush3.msra.mxu0 %v7628_v40  ;;  %v7655_v0 = vsub.f32 %v2542_v39, %v7644_v48  ;;  %v7673_v19 = vand.u32 4294901760, %v2536_v12 }
 0x45f   : > { %v2540_v56 = vsel %vm1474_vm1, %v2533_v44, 0  ;;  %6850 = vmatprep.subr.mxu0 %v7633_v41  ;;  %v2145_v57 = vsub.f32 %v7633_v41, %v7641_v55  ;;  %v2153_v1 = vand.u32 4294901760, %v2152_v58 }
 0x460   : > { %v7227_v59 = vpop.eup %7226  ;;  %v7652_v63 = vand.u32 4294901760, %v2540_v56  ;;  %v7666_v10 = vand.u32 4294901760, %v7655_v0  ;;  %v2612_v27 = vsub.f32 %v2536_v12, %v7673_v19 }
 0x461   : > { %v2146_v60 = vand.u32 4294901760, %v2145_v57  ;;  %v2013_v61 = vmul.f32 %v7227_v59, %v7223_v31 }
 0x462   : > { %v7229_v62 = vpop.eup %7228  ;;  %v7662_v7 = vsub.f32 %v2540_v56, %v7652_v63  ;;  %v2531_v20 = vpop.permute.xlu1 %2530  ;;  %v2663_v15 = vsub.f32 %v7655_v0, %v7666_v10  ;;  %v2613_v38 = vand.u32 4294901760, %v2612_v27 }
 0x463   : > { %6843 = vmatprep.subr.mxu1 %v2146_v60  ;;  %v2011_v2 = vmul.f32 %v7229_v62, %v7225_v49  ;;  %v2024_v3 = vsel %vm1991_vm2, %v2013_v61, 0  ;;  %v2538_v24 = vsel %vm1474_vm1, %v2531_v20, 0 }
 0x464   : > { %6844 = vmatpush3.msra.mxu1 %v2146_v60  ;;  %v7658_v4 = vand.u32 4294901760, %v2024_v3  ;;  %v7671_v18 = vand.u32 4294901760, %v7662_v7  ;;  %v2664_v28 = vand.u32 4294901760, %v2663_v15  ;;  %v2621_v37 = vand.u32 4294901760, %v2538_v24 }
 0x465   : > { %6845 = vmatprep.subr.mxu1 %v2153_v1  ;;  %v2021_v6 = vsel %vm1991_vm2, %v2011_v2, 0  ;;  %v2614_v43 = vsub.f32 %v2612_v27, %v2613_v38 }
 0x466   : > { %6846 = vmatpush3.msra.mxu1 %v2153_v1  ;;  %v2093_v8 = vand.u32 4294901760, %v2021_v6  ;;  %v2104_v9 = vsub.f32 %v2024_v3, %v7658_v4  ;;  %v2670_v26 = vsub.f32 %v7662_v7, %v7671_v18  ;;  %v2622_v42 = vsub.f32 %v2538_v24, %v2621_v37 }
 0x467   : > { %6857 = vmatprep.subr.mxu1 %v2055_v45  ;;  %v2615_v29 = vand.u32 4294901760, %v2614_v43 }
 0x468   : > { %6847 = vmatprep.mubr.f32.mxu1 %v2093_v8  ;;  %v2094_v14 = vsub.f32 %v2021_v6, %v2093_v8  ;;  %v2105_v16 = vand.u32 4294901760, %v2104_v9  ;;  %v2671_v13 = vand.u32 4294901760, %v2670_v26  ;;  %v2623_v46 = vand.u32 4294901760, %v2622_v42 }
 0x469   : > { %6848 = vmatmul.mubr.f32.vlgmr.msra.gmra.mxu1 %v7658_v4 }
 0x46a   : > { %6858 = vmatpush3.msra.mxu1 %v2055_v45  ;;  %v2095_v17 = vand.u32 4294901760, %v2094_v14  ;;  %v2106_v21 = vsub.f32 %v2104_v9, %v2105_v16  ;;  %v2624_v31 = vsub.f32 %v2622_v42, %v2623_v46 }
 0x46b   : > { %6859 = vmatprep.subr.mxu1 %v7628_v40 }
 0x46c   : > { %6860 = vmatpush3.msra.mxu1 %v7628_v40  ;;  %6861 = vmatprep.mubr.f32.mxu1 %v2095_v17  ;;  %v2096_v23 = vsub.f32 %v2094_v14, %v2095_v17  ;;  %v2107_v33 = vand.u32 4294901760, %v2106_v21  ;;  %v2625_v47 = vand.u32 4294901760, %v2624_v31 }
 0x46d   : > { %6871 = vmatprep.subr.mxu1 %v2055_v45  ;;  %6862 = vmatmul.mubr.f32.vlgmr.msra.gmra.mxu1 %v2105_v16 }
 0x46e   : > { %6872 = vmatpush3.msra.mxu1 %v2055_v45  ;;  %6875 = vmatprep.mubr.f32.mxu1 %v2093_v8  ;;  %v2097_v25 = vand.u32 4294901760, %v2096_v23 }
 0x46f   : > { %6873 = vmatprep.subr.mxu1 %v7628_v40 }
 0x470   : > { %6874 = vmatpush3.msra.mxu1 %v7628_v40  ;;  %6840 = vmatprep.mubr.f32.mxu0 %v2097_v25 }
 0x471   : > { %6885 = vmatprep.subr.mxu1 %v2664_v28  ;;  %6841 = vmatmul.mubr.f32.vlgmr.msra.gmra.mxu0 %v2107_v33 }
 0x472   : > { %6851 = vmatpush3.msra.mxu0 %v7633_v41  ;;  %6876 = vmatmul.mubr.f32.vlgmr.msra.gmra.mxu1 %v7658_v4 }
 0x473   : > { %6886 = vmatpush3.xpose.msra.mxu1 %v2664_v28  ;;  %6852 = vmatprep.subr.mxu0 %v7631_v51 }
 0x474   : > { %6854 = vmatprep.mubr.f32.mxu0 %v2094_v14  ;;  %6887 = vmatprep.subr.mxu1 %v2671_v13 }
 0x475   : > { %6889 = vmatprep.mubr.f32.mxu1 %v7673_v19  ;;  %6853 = vmatpush3.msra.mxu0 %v7631_v51 }
 0x476   : > { %6864 = vmatprep.subr.mxu0 %v7641_v55  ;;  %6855 = vmatmul.mubr.f32.vlgmr.msra.gmra.mxu0 %v2104_v9 }
 0x477   : > { %6865 = vmatpush3.msra.mxu0 %v7641_v55  ;;  %6888 = vmatpush3.xpose.msra.mxu1 %v2671_v13 }
 0x478   : > { %6866 = vmatprep.subr.mxu0 %v7636_v54  ;;  %6868 = vmatprep.mubr.f32.mxu0 %v2093_v8 }
 0x479   : > { %6899 = vmatprep.subr.mxu1 %v7644_v48  ;;  %6867 = vmatpush3.msra.mxu0 %v7636_v54 }
 0x47a   : > { %6878 = vmatprep.subr.mxu0 %v7644_v48  ;;  %6890 = vmatmul.mubr.f32.vlgmr.msra.gmra.mxu1 %v2621_v37 }
 0x47b   : > { %6869 = vmatmul.mubr.f32.vlgmr.msra.gmra.mxu0 %v7658_v4  ;;  %6900 = vmatpush3.xpose.msra.mxu1 %v7644_v48 }
 0x47c   : > { %6879 = vmatpush3.xpose.msra.mxu0 %v7644_v48  ;;  %6903 = vmatprep.mubr.f32.mxu1 %v2613_v38 }
 0x47d   : > { %6880 = vmatprep.subr.mxu0 %v7652_v63  ;;  %6882 = vmatprep.mubr.f32.mxu0 %v2615_v29 }
 0x47e   : > { %6901 = vmatprep.subr.mxu1 %v7652_v63 }
 0x47f   : > { %6902 = vmatpush3.xpose.msra.mxu1 %v7652_v63 }
 0x480   : > { %6881 = vmatpush3.xpose.msra.mxu0 %v7652_v63  ;;  %6913 = vmatprep.subr.mxu1 %v7644_v48 }
 0x481   : > { %6892 = vmatprep.subr.mxu0 %v7655_v0 }
 0x482   : > { %6904 = vmatmul.mubr.f32.vlgmr.msra.gmra.mxu1 %v2623_v46 }
 0x483   : > { %6883 = vmatmul.mubr.f32.vlgmr.msra.gmra.mxu0 %v2625_v47  ;;  %6914 = vmatpush3.xpose.msra.mxu1 %v7644_v48 }
 0x484   : > { %6893 = vmatpush3.xpose.msra.mxu0 %v7655_v0  ;;  %6896 = vmatprep.mubr.f32.mxu0 %v2612_v27 }
 0x485   : > { %6917 = vmatprep.mubr.f32.mxu1 %v7673_v19  ;;  %6894 = vmatprep.subr.mxu0 %v7662_v7 }
 0x486   : > { %6915 = vmatprep.subr.mxu1 %v7652_v63 }
 0x487   : > { %6916 = vmatpush3.xpose.msra.mxu1 %v7652_v63 }
 0x488   : > { %6895 = vmatpush3.xpose.msra.mxu0 %v7662_v7 }
 0x489   : > { %6906 = vmatprep.subr.mxu0 %v7666_v10 }
 0x48a   : > { %6918 = vmatmul.mubr.f32.vlgmr.msra.gmra.mxu1 %v2621_v37 }
 0x48b   : > { %6897 = vmatmul.mubr.f32.vlgmr.msra.gmra.mxu0 %v2622_v42 }
 0x48c   : > { %6907 = vmatpush3.xpose.msra.mxu0 %v7666_v10  ;;  %6910 = vmatprep.mubr.f32.mxu0 %v7673_v19 }
 0x48d   : > { %6908 = vmatprep.subr.mxu0 %v7671_v18 }
 0x490   : > { %6909 = vmatpush3.xpose.msra.mxu0 %v7671_v18 }
 0x493   : > { %6911 = vmatmul.mubr.f32.vlgmr.msra.gmra.mxu0 %v2621_v37 }
 0x529   : > { %v6849_v49 = vpop.f32.mrf.mxu1 }
 0x52b   : > { %v2190_v35 = vpop.f32.mrf.mxu1 }
 0x52d   : > { %v6863_v32 = vpop.f32.mrf.mxu1 }
 0x52f   : > { %v2354_v45 = vpop.f32.mrf.mxu1 }
 0x531   : > { %v6842_v50 = vpop.f32.mrf.mxu0 }
 0x532   : > { %v2197_v22 = vadd.f32 %v6849_v49, %v6842_v50  ;;  %v6877_v55 = vpop.f32.mrf.mxu1 }
 0x533   : > { %v2099_v40 = vpop.f32.mrf.mxu0 }
 0x534   : > { %v2191_v36 = vadd.f32 %v2190_v35, %v2099_v40  ;;  %v2518_v60 = vpop.f32.mrf.mxu1 }
 0x536   : > { %v6856_v51 = vpop.f32.mrf.mxu0 }
 0x537   : > { %v2280_v53 = vadd.f32 %v6856_v51, %v2197_v22 }
 0x538   : > { %v2272_v41 = vpop.f32.mrf.mxu0 }
 0x539   : > { %v2273_v54 = vadd.f32 %v2272_v41, %v2191_v36  ;;  %v2363_v39 = vadd.f32 %v6863_v32, %v2280_v53 }
 0x53a   : > { %v6891_v63 = vpop.f32.mrf.mxu1 }
 0x53b   : > { %v6870_v44 = vpop.f32.mrf.mxu0  ;;  %v2355_v48 = vadd.f32 %v2354_v45, %v2273_v54 }
 0x53c   : > { %v2446_v56 = vadd.f32 %v6870_v44, %v2363_v39  ;;  %v2708_v1 = vpop.f32.mrf.mxu1 }
 0x53d   : > { %v2439_v57 = vpop.f32.mrf.mxu0 }
 0x53e   : > { %v7717_v58 = vadd.f32 %v6877_v55, %v2446_v56  ;;  %v2440_v59 = vadd.f32 %v2439_v57, %v2355_v48 }
 0x540   : > { %v7719_v61 = vadd.f32 %v2518_v60, %v2440_v59 }
 0x542   : > { %v6905_v4 = vpop.f32.mrf.mxu1 }
 0x543   : > { %v6884_v62 = vpop.f32.mrf.mxu0 }
 0x544   : > { %v2715_v3 = vadd.f32 %v6891_v63, %v6884_v62  ;;  %v2872_v9 = vpop.f32.mrf.mxu1 }
 0x545   : > { %v2617_v0 = vpop.f32.mrf.mxu0 }
 0x546   : > { %v2709_v6 = vadd.f32 %v2708_v1, %v2617_v0 }
 0x54a   : > { %v6919_v12 = vpop.f32.mrf.mxu1 }
 0x54b   : > { %v6898_v2 = vpop.f32.mrf.mxu0 }
 0x54c   : > { %v2798_v7 = vadd.f32 %v6898_v2, %v2715_v3  ;;  %v3036_v15 = vpop.f32.mrf.mxu1 }
 0x54d   : > { %v2790_v5 = vpop.f32.mrf.mxu0 }
 0x54e   : > { %v2791_v8 = vadd.f32 %v2790_v5, %v2709_v6  ;;  %v2881_v10 = vadd.f32 %v6905_v4, %v2798_v7 }
 0x550   : > { %v2873_v17 = vadd.f32 %v2872_v9, %v2791_v8 }
 0x553   : > { %v6912_v14 = vpop.f32.mrf.mxu0 }
 0x554   : > { %v2964_v16 = vadd.f32 %v6912_v14, %v2881_v10 }
 0x555   : > { %v2957_v18 = vpop.f32.mrf.mxu0 }
 0x556   : > { %v3043_v19 = vadd.f32 %v6919_v12, %v2964_v16  ;;  %v2958_v20 = vadd.f32 %v2957_v18, %v2873_v17 }
 0x558   : > { %v3037_v21 = vadd.f32 %v3036_v15, %v2958_v20  ;;  %v3047_v23 = vmul.f32 0.35355338, %v3043_v19 }
 0x55a   : > { %v3051_v24 = vsel %vm1991_vm2, %v3047_v23, -inf  ;;  %v3046_v25 = vmul.f32 0.35355338, %v3037_v21 }
 0x55b   : > { %3052 = vmax.xlane.f32.xlu1 %v3051_v24 }
 0x55c   : > { %v3048_v26 = vsel %vm1991_vm2, %v3046_v25, -inf }
 0x55d   : > { %3049 = vmax.xlane.f32.xlu0 %v3048_v26 }
 0x56c   : > { %3070 = vrot.lane.b32.xlu1 %v7607_v34, %s7266_s17 }
 0x570   : > { %3590 = vrot.lane.b32.xlu1 %v7605_v52, %s7267_s18 }
 0x574   : > { %3588 = vrot.lane.b32.xlu1 %v7607_v34, %s7267_s18 }
 0x578   : > { %3586 = vrot.lane.b32.xlu1 %v7601_v30, %s7267_s18 }
 0x5e4   : > { %v3053_v27 = vpop.xlane.xlu1 %3052 }
 0x5e5   : > { %v3055_v28 = vsub.f32 %v3047_v23, %v3053_v27 }
 0x5e6   : > { %v3050_v33 = vpop.xlane.xlu0 %3049 }
 0x5e7   : > { %v3058_v37 = vmul.f32 1.442695, %v3055_v28  ;;  %v3054_v13 = vsub.f32 %v3046_v25, %v3050_v33 }
 0x5e8   : > { %v3071_v31 = vpop.permute.xlu1 %3070 }
 0x5e9   : > { %7230 = vpow2.f32 %v3058_v37  ;;  %v3056_v38 = vmul.f32 1.442695, %v3054_v13  ;;  %v7731_v49 = vand.u32 4294901760, %v3071_v31 }
 0x5eb   : > { %7232 = vpow2.f32 %v3056_v38  ;;  %v7734_v22 = vsub.f32 %v3071_v31, %v7731_v49 }
 0x5ec   : > { %v3591_v50 = vpop.permute.xlu1 %3590 }
 0x5ed   : > { %v3598_v36 = vsel %vm1474_vm1, %v3591_v50, 0  ;;  %v7740_v45 = vand.u32 4294901760, %v7734_v22 }
 0x5ee   : > { %v7746_v39 = vand.u32 4294901760, %v3598_v36 }
 0x5ef   : > { %v3208_v48 = vsub.f32 %v7734_v22, %v7740_v45 }
 0x5f0   : > { %v3589_v53 = vpop.permute.xlu1 %3588  ;;  %v7761_v0 = vsub.f32 %v3598_v36, %v7746_v39 }
 0x5f1   : > { %v3596_v55 = vsel %vm1474_vm1, %v3589_v53, 0  ;;  %v3209_v1 = vand.u32 4294901760, %v3208_v48 }
 0x5f2   : > { %v7756_v62 = vand.u32 4294901760, %v3596_v55  ;;  %v7769_v9 = vand.u32 4294901760, %v7761_v0 }
 0x5f4   : > { %v7766_v6 = vsub.f32 %v3596_v55, %v7756_v62  ;;  %v3587_v17 = vpop.permute.xlu1 %3586  ;;  %v3719_v19 = vsub.f32 %v7761_v0, %v7769_v9 }
 0x5f5   : > { %v3594_v21 = vsel %vm1474_vm1, %v3587_v17, 0 }
 0x5f6   : > { %v7231_v42 = vpop.eup %7230  ;;  %v7774_v16 = vand.u32 4294901760, %v7766_v6  ;;  %v3720_v26 = vand.u32 4294901760, %v3719_v19  ;;  %v3677_v28 = vand.u32 4294901760, %v3594_v21 }
 0x5f7   : > { %v3063_v43 = vsel %vm1991_vm2, %v7231_v42, 0.0 }
 0x5f8   : > { %v7233_v46 = vpop.eup %7232  ;;  %3064 = vadd.xlane.f32.xlu0 %v3063_v43  ;;  %v3726_v24 = vsub.f32 %v7766_v6, %v7774_v16  ;;  %v3678_v13 = vsub.f32 %v3594_v21, %v3677_v28 }
 0x5f9   : > { %v3060_v29 = vsel %vm1991_vm2, %v7233_v46, 0.0 }
 0x5fa   : > { %v3727_v33 = vand.u32 4294901760, %v3726_v24 }
 0x5fc   : > { %3061 = vadd.xlane.f32.xlu0 %v3060_v29 }
 0x612   : > { %3072 = vrot.lane.b32.xlu0 %v7605_v52, %s7266_s17 }
 0x616   : > { %3584 = vrot.lane.b32.xlu0 %v7584_v11, %s7267_s18  ;;  %s325_s18 = scalar_lea.vmem %s8055_s8, %s7327_s29 }
 0x681   : > { %v3065_v47 = vpop.xlane.xlu0 %3064 }
 0x682   : > { %7234 = vrcp.f32 %v3065_v47 }
 0x685   : > { %v3062_v35 = vpop.xlane.xlu0 %3061 }
 0x686   : > { %7236 = vrcp.f32 %v3062_v35 }
 0x689   : > { %v3073_v32 = vpop.permute.xlu0 %3072 }
 0x68a   : > { %v3111_v40 = vand.u32 4294901760, %v3073_v32 }
 0x68c   : > { %v7737_v51 = vsub.f32 %v3073_v32, %v3111_v40  ;;  %6920 = vmatprep.subr.mxu0 %v3111_v40 }
 0x68d   : > { %6921 = vmatpush3.msra.mxu0 %v3111_v40  ;;  %v3585_v4 = vpop.permute.xlu0 %3584 }
 0x68e   : > { %6922 = vmatprep.subr.mxu0 %v7731_v49  ;;  %v7744_v41 = vand.u32 4294901760, %v7737_v51  ;;  %v3592_v10 = vsel %vm1474_vm1, %v3585_v4, 0 }
 0x68f   : > { %v7235_v54 = vpop.eup %7234  ;;  %6923 = vmatpush3.msra.mxu0 %v7731_v49  ;;  %v7776_v18 = vand.u32 4294901760, %v3592_v10 }
 0x690   : > { %6934 = vmatprep.subr.mxu0 %v7737_v51  ;;  %v3201_v44 = vsub.f32 %v7737_v51, %v7744_v41  ;;  %v3069_v56 = vmul.f32 %v7235_v54, %v7231_v42  ;;  %v3679_v42 = vand.u32 4294901760, %v3678_v13 }
 0x691   : > { %v3668_v25 = vsub.f32 %v3592_v10, %v7776_v18 }
 0x692   : > { %v3202_v57 = vand.u32 4294901760, %v3201_v44  ;;  %v3080_v59 = vsel %vm1991_vm2, %v3069_v56, 0 }
 0x693   : > { %v7237_v60 = vpop.eup %7236  ;;  %v7758_v63 = vand.u32 4294901760, %v3080_v59  ;;  %v3669_v37 = vand.u32 4294901760, %v3668_v25 }
 0x694   : > { %6927 = vmatprep.subr.mxu1 %v3202_v57  ;;  %v3067_v2 = vmul.f32 %v7237_v60, %v7233_v46  ;;  %v3680_v46 = vsub.f32 %v3678_v13, %v3679_v42 }
 0x695   : > { %6928 = vmatpush3.msra.mxu1 %v3202_v57  ;;  %v3160_v3 = vsub.f32 %v3080_v59, %v7758_v63  ;;  %v3670_v38 = vsub.f32 %v3668_v25, %v3669_v37 }
 0x696   : > { %6929 = vmatprep.subr.mxu1 %v3209_v1  ;;  %v3077_v5 = vsel %vm1991_vm2, %v3067_v2, 0  ;;  %v3681_v29 = vand.u32 4294901760, %v3680_v46 }
 0x697   : > { %6930 = vmatpush3.msra.mxu1 %v3209_v1  ;;  %v3149_v7 = vand.u32 4294901760, %v3077_v5  ;;  %v3161_v8 = vand.u32 4294901760, %v3160_v3  ;;  %v3671_v43 = vand.u32 4294901760, %v3670_v38 }
 0x698   : > { %6941 = vmatprep.subr.mxu1 %v3111_v40 }
 0x699   : > { %6931 = vmatprep.mubr.f32.mxu1 %v3149_v7  ;;  %v3150_v12 = vsub.f32 %v3077_v5, %v3149_v7  ;;  %v3162_v20 = vsub.f32 %v3160_v3, %v3161_v8 }
 0x69a   : > { %6932 = vmatmul.mubr.f32.vlgmr.msra.gmra.mxu1 %v7758_v63 }
 0x69b   : > { %6942 = vmatpush3.msra.mxu1 %v3111_v40  ;;  %v3151_v14 = vand.u32 4294901760, %v3150_v12  ;;  %v3163_v27 = vand.u32 4294901760, %v3162_v20 }
 0x69c   : > { %6943 = vmatprep.subr.mxu1 %v7731_v49 }
 0x69d   : > { %6944 = vmatpush3.msra.mxu1 %v7731_v49  ;;  %6945 = vmatprep.mubr.f32.mxu1 %v3151_v14  ;;  %v3152_v15 = vsub.f32 %v3150_v12, %v3151_v14 }
 0x69e   : > { %6955 = vmatprep.subr.mxu1 %v3111_v40  ;;  %6946 = vmatmul.mubr.f32.vlgmr.msra.gmra.mxu1 %v3161_v8 }
 0x69f   : > { %6956 = vmatpush3.msra.mxu1 %v3111_v40  ;;  %6959 = vmatprep.mubr.f32.mxu1 %v3149_v7  ;;  %v3153_v23 = vand.u32 4294901760, %v3152_v15 }
 0x6a0   : > { %6957 = vmatprep.subr.mxu1 %v7731_v49 }
 0x6a1   : > { %6958 = vmatpush3.msra.mxu1 %v7731_v49  ;;  %6924 = vmatprep.mubr.f32.mxu0 %v3153_v23 }
 0x6a2   : > { %6969 = vmatprep.subr.mxu1 %v3720_v26  ;;  %6925 = vmatmul.mubr.f32.vlgmr.msra.gmra.mxu0 %v3163_v27 }
 0x6a3   : > { %6935 = vmatpush3.msra.mxu0 %v7737_v51  ;;  %6960 = vmatmul.mubr.f32.vlgmr.msra.gmra.mxu1 %v7758_v63 }
 0x6a4   : > { %6970 = vmatpush3.xpose.msra.mxu1 %v3720_v26  ;;  %6936 = vmatprep.subr.mxu0 %v7734_v22 }
 0x6a5   : > { %6938 = vmatprep.mubr.f32.mxu0 %v3150_v12  ;;  %6971 = vmatprep.subr.mxu1 %v3727_v33 }
 0x6a6   : > { %6973 = vmatprep.mubr.f32.mxu1 %v7776_v18  ;;  %6937 = vmatpush3.msra.mxu0 %v7734_v22 }
 0x6a7   : > { %6948 = vmatprep.subr.mxu0 %v7744_v41  ;;  %6939 = vmatmul.mubr.f32.vlgmr.msra.gmra.mxu0 %v3160_v3 }
 0x6a8   : > { %6949 = vmatpush3.msra.mxu0 %v7744_v41  ;;  %6972 = vmatpush3.xpose.msra.mxu1 %v3727_v33 }
 0x6a9   : > { %6950 = vmatprep.subr.mxu0 %v7740_v45  ;;  %6952 = vmatprep.mubr.f32.mxu0 %v3149_v7 }
 0x6aa   : > { %6983 = vmatprep.subr.mxu1 %v7746_v39  ;;  %6951 = vmatpush3.msra.mxu0 %v7740_v45 }
 0x6ab   : > { %6962 = vmatprep.subr.mxu0 %v7746_v39  ;;  %6974 = vmatmul.mubr.f32.vlgmr.msra.gmra.mxu1 %v3677_v28 }
 0x6ac   : > { %6953 = vmatmul.mubr.f32.vlgmr.msra.gmra.mxu0 %v7758_v63  ;;  %6984 = vmatpush3.xpose.msra.mxu1 %v7746_v39 }
 0x6ad   : > { %6963 = vmatpush3.xpose.msra.mxu0 %v7746_v39  ;;  %6987 = vmatprep.mubr.f32.mxu1 %v3669_v37 }
 0x6ae   : > { %6964 = vmatprep.subr.mxu0 %v7756_v62  ;;  %6966 = vmatprep.mubr.f32.mxu0 %v3671_v43 }
 0x6af   : > { %6985 = vmatprep.subr.mxu1 %v7756_v62 }
 0x6b0   : > { %6986 = vmatpush3.xpose.msra.mxu1 %v7756_v62 }
 0x6b1   : > { %6965 = vmatpush3.xpose.msra.mxu0 %v7756_v62  ;;  %6997 = vmatprep.subr.mxu1 %v7746_v39 }
 0x6b2   : > { %6976 = vmatprep.subr.mxu0 %v7761_v0 }
 0x6b3   : > { %6988 = vmatmul.mubr.f32.vlgmr.msra.gmra.mxu1 %v3679_v42 }
 0x6b4   : > { %6967 = vmatmul.mubr.f32.vlgmr.msra.gmra.mxu0 %v3681_v29  ;;  %6998 = vmatpush3.xpose.msra.mxu1 %v7746_v39 }
 0x6b5   : > { %6977 = vmatpush3.xpose.msra.mxu0 %v7761_v0  ;;  %6980 = vmatprep.mubr.f32.mxu0 %v3668_v25 }
 0x6b6   : > { %7001 = vmatprep.mubr.f32.mxu1 %v7776_v18  ;;  %6978 = vmatprep.subr.mxu0 %v7766_v6 }
 0x6b7   : > { %6999 = vmatprep.subr.mxu1 %v7756_v62 }
 0x6b8   : > { %7000 = vmatpush3.xpose.msra.mxu1 %v7756_v62 }
 0x6b9   : > { %6979 = vmatpush3.xpose.msra.mxu0 %v7766_v6 }
 0x6ba   : > { %6990 = vmatprep.subr.mxu0 %v7769_v9 }
 0x6bb   : > { %7002 = vmatmul.mubr.f32.vlgmr.msra.gmra.mxu1 %v3677_v28 }
 0x6bc   : > { %6981 = vmatmul.mubr.f32.vlgmr.msra.gmra.mxu0 %v3678_v13 }
 0x6bd   : > { %6991 = vmatpush3.xpose.msra.mxu0 %v7769_v9  ;;  %6994 = vmatprep.mubr.f32.mxu0 %v7776_v18 }
 0x6be   : > { %6992 = vmatprep.subr.mxu0 %v7774_v16 }
 0x6c1   : > { %6993 = vmatpush3.xpose.msra.mxu0 %v7774_v16 }
 0x6c4   : > { %6995 = vmatmul.mubr.f32.vlgmr.msra.gmra.mxu0 %v3677_v28 }
 0x75a   : > { %v6933_v31 = vpop.f32.mrf.mxu1 }
 0x75c   : > { %v3246_v47 = vpop.f32.mrf.mxu1 }
 0x75e   : > { %v6947_v50 = vpop.f32.mrf.mxu1 }
 0x760   : > { %v3410_v36 = vpop.f32.mrf.mxu1 }
 0x762   : > { %v6926_v49 = vpop.f32.mrf.mxu0 }
 0x763   : > { %v3253_v35 = vadd.f32 %v6933_v31, %v6926_v49  ;;  %v6961_v54 = vpop.f32.mrf.mxu1 }
 0x764   : > { %v3155_v22 = vpop.f32.mrf.mxu0 }
 0x765   : > { %v3247_v32 = vadd.f32 %v3246_v47, %v3155_v22  ;;  %v3574_v59 = vpop.f32.mrf.mxu1 }
 0x767   : > { %v6940_v40 = vpop.f32.mrf.mxu0 }
 0x768   : > { %v3336_v51 = vadd.f32 %v6940_v40, %v3253_v35 }
 0x769   : > { %v3328_v45 = vpop.f32.mrf.mxu0 }
 0x76a   : > { %v3329_v53 = vadd.f32 %v3328_v45, %v3247_v32  ;;  %v3419_v41 = vadd.f32 %v6947_v50, %v3336_v51 }
 0x76b   : > { %v6975_v63 = vpop.f32.mrf.mxu1 }
 0x76c   : > { %v6954_v39 = vpop.f32.mrf.mxu0  ;;  %v3411_v55 = vadd.f32 %v3410_v36, %v3329_v53 }
 0x76d   : > { %v3502_v44 = vadd.f32 %v6954_v39, %v3419_v41  ;;  %v3764_v1 = vpop.f32.mrf.mxu1 }
 0x76e   : > { %v3495_v48 = vpop.f32.mrf.mxu0 }
 0x76f   : > { %v7820_v56 = vadd.f32 %v6961_v54, %v3502_v44  ;;  %v3496_v57 = vadd.f32 %v3495_v48, %v3411_v55 }
 0x771   : > { %v7822_v60 = vadd.f32 %v3574_v59, %v3496_v57 }
 0x773   : > { %v6989_v4 = vpop.f32.mrf.mxu1 }
 0x774   : > { %v6968_v62 = vpop.f32.mrf.mxu0 }
 0x775   : > { %v3771_v3 = vadd.f32 %v6975_v63, %v6968_v62  ;;  %v3928_v9 = vpop.f32.mrf.mxu1 }
 0x776   : > { %v3673_v0 = vpop.f32.mrf.mxu0 }
 0x777   : > { %v3765_v6 = vadd.f32 %v3764_v1, %v3673_v0 }
 0x77b   : > { %v7003_v12 = vpop.f32.mrf.mxu1 }
 0x77c   : > { %v6982_v2 = vpop.f32.mrf.mxu0 }
 0x77d   : > { %v3854_v7 = vadd.f32 %v6982_v2, %v3771_v3  ;;  %v4092_v15 = vpop.f32.mrf.mxu1 }
 0x77e   : > { %v3846_v5 = vpop.f32.mrf.mxu0 }
 0x77f   : > { %v3847_v8 = vadd.f32 %v3846_v5, %v3765_v6  ;;  %v3937_v10 = vadd.f32 %v6989_v4, %v3854_v7 }
 0x781   : > { %v3929_v17 = vadd.f32 %v3928_v9, %v3847_v8 }
 0x784   : > { %v6996_v14 = vpop.f32.mrf.mxu0 }
 0x785   : > { %v4020_v16 = vadd.f32 %v6996_v14, %v3937_v10 }
 0x786   : > { %v4013_v18 = vpop.f32.mrf.mxu0 }
 0x787   : > { %v4099_v19 = vadd.f32 %v7003_v12, %v4020_v16  ;;  %v4014_v20 = vadd.f32 %v4013_v18, %v3929_v17 }
 0x789   : > { %v4093_v21 = vadd.f32 %v4092_v15, %v4014_v20  ;;  %v4103_v23 = vmul.f32 0.35355338, %v4099_v19 }
 0x78b   : > { %v4107_v24 = vsel %vm1991_vm2, %v4103_v23, -inf  ;;  %v4102_v25 = vmul.f32 0.35355338, %v4093_v21 }
 0x78c   : > { %4108 = vmax.xlane.f32.xlu1 %v4107_v24 }
 0x78d   : > { %v4104_v26 = vsel %vm1991_vm2, %v4102_v25, -inf }
 0x78e   : > { %4105 = vmax.xlane.f32.xlu0 %v4104_v26 }
 0x79d   : > { %4126 = vrot.lane.b32.xlu1 %v7607_v34, %s7268_s19 }
 0x7a1   : > { %4646 = vrot.lane.b32.xlu1 %v7605_v52, %s7269_s20 }
 0x7a5   : > { %4644 = vrot.lane.b32.xlu1 %v7607_v34, %s7269_s20 }
 0x7a9   : > { %4642 = vrot.lane.b32.xlu1 %v7601_v30, %s7269_s20 }
 0x815   : > { %v4109_v27 = vpop.xlane.xlu1 %4108 }
 0x816   : > { %v4111_v28 = vsub.f32 %v4103_v23, %v4109_v27 }
 0x817   : > { %v4106_v33 = vpop.xlane.xlu0 %4105 }
 0x818   : > { %v4114_v37 = vmul.f32 1.442695, %v4111_v28  ;;  %v4110_v13 = vsub.f32 %v4102_v25, %v4106_v33 }
 0x819   : > { %v4127_v30 = vpop.permute.xlu1 %4126 }
 0x81a   : > { %7238 = vpow2.f32 %v4114_v37  ;;  %v4112_v38 = vmul.f32 1.442695, %v4110_v13  ;;  %v7834_v47 = vand.u32 4294901760, %v4127_v30 }
 0x81c   : > { %7240 = vpow2.f32 %v4112_v38  ;;  %v7837_v50 = vsub.f32 %v4127_v30, %v7834_v47 }
 0x81d   : > { %v4647_v35 = vpop.permute.xlu1 %4646 }
 0x81e   : > { %v4654_v40 = vsel %vm1474_vm1, %v4647_v35, 0 }
 0x81f   : > { %v7849_v41 = vand.u32 4294901760, %v4654_v40 }
 0x821   : > { %v4645_v51 = vpop.permute.xlu1 %4644  ;;  %v7864_v0 = vsub.f32 %v4654_v40, %v7849_v41 }
 0x822   : > { %v4652_v54 = vsel %vm1474_vm1, %v4645_v51, 0 }
 0x823   : > { %v7859_v62 = vand.u32 4294901760, %v4652_v54  ;;  %v7872_v9 = vand.u32 4294901760, %v7864_v0 }
 0x825   : > { %v7869_v6 = vsub.f32 %v4652_v54, %v7859_v62  ;;  %v4643_v17 = vpop.permute.xlu1 %4642  ;;  %v4775_v19 = vsub.f32 %v7864_v0, %v7872_v9 }
 0x826   : > { %v4650_v21 = vsel %vm1474_vm1, %v4643_v17, 0 }
 0x827   : > { %v7239_v42 = vpop.eup %7238  ;;  %v7877_v16 = vand.u32 4294901760, %v7869_v6  ;;  %v4776_v26 = vand.u32 4294901760, %v4775_v19  ;;  %v4733_v28 = vand.u32 4294901760, %v4650_v21 }
 0x828   : > { %v4119_v43 = vsel %vm1991_vm2, %v7239_v42, 0.0 }
 0x829   : > { %v7241_v46 = vpop.eup %7240  ;;  %4120 = vadd.xlane.f32.xlu0 %v4119_v43  ;;  %v4782_v24 = vsub.f32 %v7869_v6, %v7877_v16  ;;  %v4734_v13 = vsub.f32 %v4650_v21, %v4733_v28 }
 0x82a   : > { %v4116_v29 = vsel %vm1991_vm2, %v7241_v46, 0.0 }
 0x82b   : > { %v4783_v33 = vand.u32 4294901760, %v4782_v24 }
 0x82d   : > { %4117 = vadd.xlane.f32.xlu0 %v4116_v29 }
 0x843   : > { %4128 = vrot.lane.b32.xlu0 %v7605_v52, %s7268_s19 }
 0x847   : > { %4640 = vrot.lane.b32.xlu0 %v7584_v11, %s7269_s20  ;;  %v7843_v11 = vand.u32 4294901760, %v7837_v50 }
 0x849   : > { %v4264_v55 = vsub.f32 %v7837_v50, %v7843_v11 }
 0x84b   : > { %v4265_v1 = vand.u32 4294901760, %v4264_v55 }
 0x8b2   : > { %v4121_v31 = vpop.xlane.xlu0 %4120 }
 0x8b3   : > { %7242 = vrcp.f32 %v4121_v31 }
 0x8b6   : > { %v4118_v49 = vpop.xlane.xlu0 %4117 }
 0x8b7   : > { %7244 = vrcp.f32 %v4118_v49 }
 0x8ba   : > { %v4129_v22 = vpop.permute.xlu0 %4128 }
 0x8bb   : > { %v4167_v32 = vand.u32 4294901760, %v4129_v22 }
 0x8bd   : > { %v7840_v36 = vsub.f32 %v4129_v22, %v4167_v32  ;;  %7004 = vmatprep.subr.mxu0 %v4167_v32 }
 0x8be   : > { %7005 = vmatpush3.msra.mxu0 %v4167_v32  ;;  %v4641_v4 = vpop.permute.xlu0 %4640 }
 0x8bf   : > { %7006 = vmatprep.subr.mxu0 %v7834_v47  ;;  %v7847_v45 = vand.u32 4294901760, %v7840_v36  ;;  %v4648_v10 = vsel %vm1474_vm1, %v4641_v4, 0 }
 0x8c0   : > { %v7243_v53 = vpop.eup %7242  ;;  %7007 = vmatpush3.msra.mxu0 %v7834_v47  ;;  %v7879_v18 = vand.u32 4294901760, %v4648_v10 }
 0x8c1   : > { %7018 = vmatprep.subr.mxu0 %v7840_v36  ;;  %v4257_v39 = vsub.f32 %v7840_v36, %v7847_v45  ;;  %v4125_v44 = vmul.f32 %v7243_v53, %v7239_v42  ;;  %v4735_v42 = vand.u32 4294901760, %v4734_v13 }
 0x8c2   : > { %v4724_v25 = vsub.f32 %v4648_v10, %v7879_v18 }
 0x8c3   : > { %v4258_v48 = vand.u32 4294901760, %v4257_v39  ;;  %v4136_v57 = vsel %vm1991_vm2, %v4125_v44, 0 }
 0x8c4   : > { %v7245_v59 = vpop.eup %7244  ;;  %v7861_v63 = vand.u32 4294901760, %v4136_v57  ;;  %v4725_v37 = vand.u32 4294901760, %v4724_v25 }
 0x8c5   : > { %7011 = vmatprep.subr.mxu1 %v4258_v48  ;;  %v4123_v2 = vmul.f32 %v7245_v59, %v7241_v46  ;;  %v4736_v46 = vsub.f32 %v4734_v13, %v4735_v42 }
 0x8c6   : > { %7012 = vmatpush3.msra.mxu1 %v4258_v48  ;;  %v4216_v3 = vsub.f32 %v4136_v57, %v7861_v63  ;;  %v4726_v38 = vsub.f32 %v4724_v25, %v4725_v37 }
 0x8c7   : > { %7013 = vmatprep.subr.mxu1 %v4265_v1  ;;  %v4133_v5 = vsel %vm1991_vm2, %v4123_v2, 0  ;;  %v4737_v29 = vand.u32 4294901760, %v4736_v46 }
 0x8c8   : > { %7014 = vmatpush3.msra.mxu1 %v4265_v1  ;;  %v4205_v7 = vand.u32 4294901760, %v4133_v5  ;;  %v4217_v8 = vand.u32 4294901760, %v4216_v3  ;;  %v4727_v43 = vand.u32 4294901760, %v4726_v38 }
 0x8c9   : > { %7025 = vmatprep.subr.mxu1 %v4167_v32 }
 0x8ca   : > { %7015 = vmatprep.mubr.f32.mxu1 %v4205_v7  ;;  %v4206_v12 = vsub.f32 %v4133_v5, %v4205_v7  ;;  %v4218_v20 = vsub.f32 %v4216_v3, %v4217_v8 }
 0x8cb   : > { %7016 = vmatmul.mubr.f32.vlgmr.msra.gmra.mxu1 %v7861_v63 }
 0x8cc   : > { %7026 = vmatpush3.msra.mxu1 %v4167_v32  ;;  %v4207_v14 = vand.u32 4294901760, %v4206_v12  ;;  %v4219_v27 = vand.u32 4294901760, %v4218_v20 }
 0x8cd   : > { %7027 = vmatprep.subr.mxu1 %v7834_v47 }
 0x8ce   : > { %7028 = vmatpush3.msra.mxu1 %v7834_v47  ;;  %7029 = vmatprep.mubr.f32.mxu1 %v4207_v14  ;;  %v4208_v15 = vsub.f32 %v4206_v12, %v4207_v14 }
 0x8cf   : > { %7039 = vmatprep.subr.mxu1 %v4167_v32  ;;  %7030 = vmatmul.mubr.f32.vlgmr.msra.gmra.mxu1 %v4217_v8 }
 0x8d0   : > { %7040 = vmatpush3.msra.mxu1 %v4167_v32  ;;  %7043 = vmatprep.mubr.f32.mxu1 %v4205_v7  ;;  %v4209_v23 = vand.u32 4294901760, %v4208_v15 }
 0x8d1   : > { %7041 = vmatprep.subr.mxu1 %v7834_v47 }
 0x8d2   : > { %7042 = vmatpush3.msra.mxu1 %v7834_v47  ;;  %7008 = vmatprep.mubr.f32.mxu0 %v4209_v23 }
 0x8d3   : > { %7053 = vmatprep.subr.mxu1 %v4776_v26  ;;  %7009 = vmatmul.mubr.f32.vlgmr.msra.gmra.mxu0 %v4219_v27 }
 0x8d4   : > { %7019 = vmatpush3.msra.mxu0 %v7840_v36  ;;  %7044 = vmatmul.mubr.f32.vlgmr.msra.gmra.mxu1 %v7861_v63 }
 0x8d5   : > { %7054 = vmatpush3.xpose.msra.mxu1 %v4776_v26  ;;  %7020 = vmatprep.subr.mxu0 %v7837_v50 }
 0x8d6   : > { %7022 = vmatprep.mubr.f32.mxu0 %v4206_v12  ;;  %7055 = vmatprep.subr.mxu1 %v4783_v33 }
 0x8d7   : > { %7057 = vmatprep.mubr.f32.mxu1 %v7879_v18  ;;  %7021 = vmatpush3.msra.mxu0 %v7837_v50 }
 0x8d8   : > { %7032 = vmatprep.subr.mxu0 %v7847_v45  ;;  %7023 = vmatmul.mubr.f32.vlgmr.msra.gmra.mxu0 %v4216_v3 }
 0x8d9   : > { %7033 = vmatpush3.msra.mxu0 %v7847_v45  ;;  %7056 = vmatpush3.xpose.msra.mxu1 %v4783_v33 }
 0x8da   : > { %7034 = vmatprep.subr.mxu0 %v7843_v11  ;;  %7036 = vmatprep.mubr.f32.mxu0 %v4205_v7 }
 0x8db   : > { %7067 = vmatprep.subr.mxu1 %v7849_v41  ;;  %7035 = vmatpush3.msra.mxu0 %v7843_v11 }
 0x8dc   : > { %7046 = vmatprep.subr.mxu0 %v7849_v41  ;;  %7058 = vmatmul.mubr.f32.vlgmr.msra.gmra.mxu1 %v4733_v28 }
 0x8dd   : > { %7037 = vmatmul.mubr.f32.vlgmr.msra.gmra.mxu0 %v7861_v63  ;;  %7068 = vmatpush3.xpose.msra.mxu1 %v7849_v41 }
 0x8de   : > { %7047 = vmatpush3.xpose.msra.mxu0 %v7849_v41  ;;  %7071 = vmatprep.mubr.f32.mxu1 %v4725_v37 }
 0x8df   : > { %7048 = vmatprep.subr.mxu0 %v7859_v62  ;;  %7050 = vmatprep.mubr.f32.mxu0 %v4727_v43 }
 0x8e0   : > { %7069 = vmatprep.subr.mxu1 %v7859_v62 }
 0x8e1   : > { %7070 = vmatpush3.xpose.msra.mxu1 %v7859_v62 }
 0x8e2   : > { %7049 = vmatpush3.xpose.msra.mxu0 %v7859_v62  ;;  %7081 = vmatprep.subr.mxu1 %v7849_v41 }
 0x8e3   : > { %7060 = vmatprep.subr.mxu0 %v7864_v0 }
 0x8e4   : > { %7072 = vmatmul.mubr.f32.vlgmr.msra.gmra.mxu1 %v4735_v42 }
 0x8e5   : > { %7051 = vmatmul.mubr.f32.vlgmr.msra.gmra.mxu0 %v4737_v29  ;;  %7082 = vmatpush3.xpose.msra.mxu1 %v7849_v41 }
 0x8e6   : > { %7061 = vmatpush3.xpose.msra.mxu0 %v7864_v0  ;;  %7064 = vmatprep.mubr.f32.mxu0 %v4724_v25 }
 0x8e7   : > { %7085 = vmatprep.mubr.f32.mxu1 %v7879_v18  ;;  %7062 = vmatprep.subr.mxu0 %v7869_v6 }
 0x8e8   : > { %7083 = vmatprep.subr.mxu1 %v7859_v62 }
 0x8e9   : > { %7084 = vmatpush3.xpose.msra.mxu1 %v7859_v62 }
 0x8ea   : > { %7063 = vmatpush3.xpose.msra.mxu0 %v7869_v6 }
 0x8eb   : > { %7074 = vmatprep.subr.mxu0 %v7872_v9 }
 0x8ec   : > { %7086 = vmatmul.mubr.f32.vlgmr.msra.gmra.mxu1 %v4733_v28 }
 0x8ed   : > { %7065 = vmatmul.mubr.f32.vlgmr.msra.gmra.mxu0 %v4734_v13 }
 0x8ee   : > { %7075 = vmatpush3.xpose.msra.mxu0 %v7872_v9  ;;  %7078 = vmatprep.mubr.f32.mxu0 %v7879_v18 }
 0x8ef   : > { %7076 = vmatprep.subr.mxu0 %v7877_v16 }
 0x8f2   : > { %7077 = vmatpush3.xpose.msra.mxu0 %v7877_v16 }
 0x8f5   : > { %7079 = vmatmul.mubr.f32.vlgmr.msra.gmra.mxu0 %v4733_v28 }
 0x98b   : > { %v7017_v30 = vpop.f32.mrf.mxu1 }
 0x98d   : > { %v4302_v31 = vpop.f32.mrf.mxu1 }
 0x98f   : > { %v7031_v49 = vpop.f32.mrf.mxu1 }
 0x991   : > { %v4466_v32 = vpop.f32.mrf.mxu1 }
 0x993   : > { %v7010_v47 = vpop.f32.mrf.mxu0 }
 0x994   : > { %v7045_v11 = vpop.f32.mrf.mxu1  ;;  %v4309_v21 = vadd.f32 %v7017_v30, %v7010_v47 }
 0x995   : > { %v4211_v35 = vpop.f32.mrf.mxu0 }
 0x996   : > { %v4303_v50 = vadd.f32 %v4302_v31, %v4211_v35  ;;  %v4630_v54 = vpop.f32.mrf.mxu1 }
 0x998   : > { %v7024_v22 = vpop.f32.mrf.mxu0 }
 0x999   : > { %v4392_v23 = vadd.f32 %v7024_v22, %v4309_v21 }
 0x99a   : > { %v4384_v40 = vpop.f32.mrf.mxu0 }
 0x99b   : > { %v4385_v36 = vadd.f32 %v4384_v40, %v4303_v50  ;;  %v4475_v24 = vadd.f32 %v7031_v49, %v4392_v23 }
 0x99c   : > { %v7059_v44 = vpop.f32.mrf.mxu1 }
 0x99d   : > { %v7038_v51 = vpop.f32.mrf.mxu0  ;;  %v4467_v45 = vadd.f32 %v4466_v32, %v4385_v36 }
 0x99e   : > { %v4820_v57 = vpop.f32.mrf.mxu1  ;;  %v4558_v25 = vadd.f32 %v7038_v51, %v4475_v24 }
 0x99f   : > { %v4551_v53 = vpop.f32.mrf.mxu0 }
 0x9a0   : > { %v4552_v41 = vadd.f32 %v4551_v53, %v4467_v45  ;;  %v4637_v26 = vadd.f32 %v7045_v11, %v4558_v25 }
 0x9a2   : > { %v4631_v39 = vadd.f32 %v4630_v54, %v4552_v41 }
 0x9a4   : > { %v7073_v63 = vpop.f32.mrf.mxu1 }
 0x9a5   : > { %v7052_v55 = vpop.f32.mrf.mxu0 }
 0x9a6   : > { %v4827_v62 = vadd.f32 %v7059_v44, %v7052_v55  ;;  %v4984_v4 = vpop.f32.mrf.mxu1 }
 0x9a7   : > { %v4729_v48 = vpop.f32.mrf.mxu0 }
 0x9a8   : > { %v4821_v1 = vadd.f32 %v4820_v57, %v4729_v48 }
 0x9ac   : > { %v7087_v6 = vpop.f32.mrf.mxu1 }
 0x9ad   : > { %v7066_v59 = vpop.f32.mrf.mxu0 }
 0x9ae   : > { %v4910_v2 = vadd.f32 %v7066_v59, %v4827_v62  ;;  %v5148_v16 = vpop.f32.mrf.mxu1 }
 0x9af   : > { %v4902_v0 = vpop.f32.mrf.mxu0 }
 0x9b0   : > { %v4903_v3 = vadd.f32 %v4902_v0, %v4821_v1  ;;  %v4993_v5 = vadd.f32 %v7073_v63, %v4910_v2  ;;  %v5730_v2 = vld [vmem:[%s8053_s6 + $0x18] sm:$0xff] }
 0x9b2   : > { %v4985_v9 = vadd.f32 %v4984_v4, %v4903_v3  ;;  %v7936_v3 = vand.u32 4294901760, %v5730_v2 }
 0x9b4   : > { %v7939_v4 = vsub.f32 %v5730_v2, %v7936_v3 }
 0x9b5   : > { %v7080_v7 = vpop.f32.mrf.mxu0 }
 0x9b6   : > { %v5076_v8 = vadd.f32 %v7080_v7, %v4993_v5  ;;  %v7944_v5 = vand.u32 4294901760, %v7939_v4 }
 0x9b7   : > { %v5069_v10 = vpop.f32.mrf.mxu0 }
 0x9b8   : > { %v5155_v12 = vadd.f32 %v7087_v6, %v5076_v8  ;;  %v5070_v14 = vadd.f32 %v5069_v10, %v4985_v9  ;;  %v5861_v6 = vsub.f32 %v7939_v4, %v7944_v5  ;;  %v5729_v8 = vld [vmem:[%s8053_s6 + $0x10] sm:$0xff] }
 0x9b9   : > { %v7951_v9 = vand.u32 4294901760, %v5729_v8 }
 0x9ba   : > { %v5149_v17 = vadd.f32 %v5148_v16, %v5070_v14  ;;  %v5159_v18 = vmul.f32 0.35355338, %v5155_v12  ;;  %v5862_v7 = vand.u32 4294901760, %v5861_v6  ;;  %v5728_v12 = vld [vmem:[%s8053_s6 + $0x8] sm:$0xff] }
 0x9bb   : > { %v7957_v14 = vsub.f32 %v5729_v8, %v7951_v9  ;;  %v7959_v16 = vand.u32 4294901760, %v5728_v12 }
 0x9bc   : > { %v5163_v19 = vsel %vm1991_vm2, %v5159_v18, -inf  ;;  %v5158_v20 = vmul.f32 0.35355338, %v5149_v17  ;;  %v5727_v17 = vld [vmem:[%s8053_s6] sm:$0xff] }
 0x9bd   : > { %5164 = vmax.xlane.f32.xlu1 %v5163_v19  ;;  %v7970_v19 = vsub.f32 %v5728_v12, %v7959_v16 }
 0x9be   : > { %v5160_v15 = vsel %vm1991_vm2, %v5158_v20, -inf }
 0x9bf   : > { %5161 = vmax.xlane.f32.xlu0 %v5160_v15  ;;  %v7979_v23 = vand.u32 4294901760, %v7970_v19 }
 0x9ce   : > { %5182 = vrot.lane.b32.xlu1 %v7607_v34, %s7270_s21 }
 0x9d2   : > { %5698 = vrot.lane.b32.xlu1 %v7822_v60, %s7271_s22 }
 0x9d6   : > { %5700 = vrot.lane.b32.xlu1 %v7820_v56, %s7271_s22 }
 0x9da   : > { %5708 = vrot.lane.b32.xlu1 %v4637_v26, %s7272_s23  ;;  %v5875_v26 = vsub.f32 %v7970_v19, %v7979_v23 }
 0xa46   : > { %v5165_v27 = vpop.xlane.xlu1 %5164 }
 0xa47   : > { %v5167_v28 = vsub.f32 %v5159_v18, %v5165_v27  ;;  %v7967_v18 = vand.u32 4294901760, %v7957_v14 }
 0xa48   : > { %v5162_v33 = vpop.xlane.xlu0 %5161 }
 0xa49   : > { %v5170_v37 = vmul.f32 1.442695, %v5167_v28  ;;  %v5166_v13 = vsub.f32 %v5158_v20, %v5162_v33  ;;  %v7972_v20 = vand.u32 4294901760, %v5727_v17  ;;  %v5868_v21 = vsub.f32 %v7957_v14, %v7967_v18 }
 0xa4a   : > { %v5183_v56 = vpop.permute.xlu1 %5182 }
 0xa4b   : > { %7246 = vpow2.f32 %v5170_v37  ;;  %v5168_v38 = vmul.f32 1.442695, %v5166_v13  ;;  %v5226_v29 = vand.u32 4294901760, %v5183_v56  ;;  %v7982_v24 = vsub.f32 %v5727_v17, %v7972_v20 }
 0xa4c   : > { %v5869_v25 = vand.u32 4294901760, %v5868_v21  ;;  %v5876_v37 = vand.u32 4294901760, %v5875_v26 }
 0xa4d   : > { %7248 = vpow2.f32 %v5168_v38  ;;  %v5318_v31 = vsub.f32 %v5183_v56, %v5226_v29  ;;  %v7989_v27 = vand.u32 4294901760, %v7982_v24 }
 0xa4f   : > { %v5319_v50 = vand.u32 4294901760, %v5318_v31  ;;  %v5882_v13 = vsub.f32 %v7982_v24, %v7989_v27 }
 0xa51   : > { %v5320_v40 = vsub.f32 %v5318_v31, %v5319_v50 }
 0xa53   : > { %v5321_v41 = vand.u32 4294901760, %v5320_v40 }
 0xa58   : > { %v7247_v42 = vpop.eup %7246 }
 0xa59   : > { %v5175_v34 = vsel %vm1991_vm2, %v7247_v42, 0.0 }
 0xa5a   : > { %v7249_v43 = vpop.eup %7248  ;;  %5176 = vadd.xlane.f32.xlu0 %v5175_v34  ;;  %v5883_v34 = vand.u32 4294901760, %v5882_v13 }
 0xa5b   : > { %v5172_v60 = vsel %vm1991_vm2, %v7249_v43, 0.0 }
 0xa5e   : > { %5173 = vadd.xlane.f32.xlu0 %v5172_v60 }
 0xa74   : > { %5184 = vrot.lane.b32.xlu0 %v7605_v52, %s7270_s21 }
 0xa78   : > { %5706 = vrot.lane.b32.xlu0 %v4631_v39, %s7272_s23 }
 0xae3   : > { %v5177_v46 = vpop.xlane.xlu0 %5176 }
 0xae4   : > { %7250 = vrcp.f32 %v5177_v46 }
 0xae7   : > { %v5174_v30 = vpop.xlane.xlu0 %5173 }
 0xae8   : > { %7252 = vrcp.f32 %v5174_v30 }
 0xaeb   : > { %v5185_v47 = vpop.permute.xlu0 %5184 }
 0xaec   : > { %v5223_v49 = vand.u32 4294901760, %v5185_v47 }
 0xaee   : > { %v5311_v35 = vsub.f32 %v5185_v47, %v5223_v49  ;;  %7088 = vmatprep.subr.mxu0 %v5223_v49 }
 0xaef   : > { %7089 = vmatpush3.msra.mxu0 %v5223_v49 }
 0xaf0   : > { %7090 = vmatprep.subr.mxu0 %v5226_v29  ;;  %v5312_v22 = vand.u32 4294901760, %v5311_v35 }
 0xaf1   : > { %v7251_v32 = vpop.eup %7250  ;;  %7091 = vmatpush3.msra.mxu0 %v5226_v29 }
 0xaf2   : > { %7102 = vmatprep.subr.mxu0 %v5311_v35  ;;  %v5313_v52 = vsub.f32 %v5311_v35, %v5312_v22  ;;  %v5181_v36 = vmul.f32 %v7251_v32, %v7247_v42 }
 0xaf4   : > { %v5314_v11 = vand.u32 4294901760, %v5313_v52  ;;  %v5192_v51 = vsel %vm1991_vm2, %v5181_v36, 0 }
 0xaf5   : > { %v7253_v45 = vpop.eup %7252  ;;  %v5271_v53 = vand.u32 4294901760, %v5192_v51 }
 0xaf6   : > { %7095 = vmatprep.subr.mxu1 %v5314_v11  ;;  %v5179_v54 = vmul.f32 %v7253_v45, %v7249_v43 }
 0xaf7   : > { %7096 = vmatpush3.msra.mxu1 %v5314_v11  ;;  %v5272_v39 = vsub.f32 %v5192_v51, %v5271_v53  ;;  %v5699_v11 = vpop.permute.xlu1 %5698 }
 0xaf8   : > { %7097 = vmatprep.subr.mxu1 %v5321_v41  ;;  %v5189_v55 = vsel %vm1991_vm2, %v5179_v54, 0 }
 0xaf9   : > { %7098 = vmatpush3.msra.mxu1 %v5321_v41  ;;  %v5261_v44 = vand.u32 4294901760, %v5189_v55  ;;  %v5273_v48 = vand.u32 4294901760, %v5272_v39 }
 0xafa   : > { %7109 = vmatprep.subr.mxu1 %v5223_v49 }
 0xafb   : > { %7099 = vmatprep.mubr.f32.mxu1 %v5261_v44  ;;  %v5262_v57 = vsub.f32 %v5189_v55, %v5261_v44  ;;  %v5274_v62 = vsub.f32 %v5272_v39, %v5273_v48  ;;  %v5701_v51 = vpop.permute.xlu1 %5700  ;;  %v5720_v55 = vsel %vm1474_vm1, %v7719_v61, %v5699_v11 }
 0xafc   : > { %7100 = vmatmul.mubr.f32.vlgmr.msra.gmra.mxu1 %v5271_v53  ;;  %v5721_v41 = vsel %vm1474_vm1, %v7717_v58, %v5701_v51 }
 0xafd   : > { %7110 = vmatpush3.msra.mxu1 %v5223_v49  ;;  %v5263_v59 = vand.u32 4294901760, %v5262_v57  ;;  %v5275_v1 = vand.u32 4294901760, %v5274_v62 }
 0xafe   : > { %7111 = vmatprep.subr.mxu1 %v5226_v29 }
 0xaff   : > { %7112 = vmatpush3.msra.mxu1 %v5226_v29  ;;  %7113 = vmatprep.mubr.f32.mxu1 %v5263_v59  ;;  %v5264_v63 = vsub.f32 %v5262_v57, %v5263_v59  ;;  %v5709_v45 = vpop.permute.xlu1 %5708 }
 0xb00   : > { %7123 = vmatprep.subr.mxu1 %v5223_v49  ;;  %7114 = vmatmul.mubr.f32.vlgmr.msra.gmra.mxu1 %v5273_v48  ;;  %v5723_v54 = vsel %vm1991_vm2, %v5721_v41, %v5709_v45 }
 0xb01   : > { %7124 = vmatpush3.msra.mxu1 %v5223_v49  ;;  %7127 = vmatprep.mubr.f32.mxu1 %v5261_v44  ;;  %v5265_v0 = vand.u32 4294901760, %v5264_v63 }
 0xb02   : > { %7125 = vmatprep.subr.mxu1 %v5226_v29 }
 0xb03   : > { %7126 = vmatpush3.msra.mxu1 %v5226_v29  ;;  %7092 = vmatprep.mubr.f32.mxu0 %v5265_v0 }
 0xb04   : > { %7093 = vmatmul.mubr.f32.vlgmr.msra.gmra.mxu0 %v5275_v1  ;;  %7128 = vmatmul.mubr.f32.vlgmr.msra.gmra.mxu1 %v5271_v53 }
 0xb05   : > { %7103 = vmatpush3.msra.mxu0 %v5311_v35  ;;  %7106 = vmatprep.mubr.f32.mxu0 %v5262_v57 }
 0xb06   : > { %7104 = vmatprep.subr.mxu0 %v5318_v31  ;;  %7141 = vmatprep.subr.mxu1 %v5862_v7 }
 0xb07   : > { %7105 = vmatpush3.msra.mxu0 %v5318_v31  ;;  %7142 = vmatpush3.msra.mxu1 %v5862_v7 }
 0xb08   : > { %7116 = vmatprep.subr.mxu0 %v5312_v22  ;;  %7107 = vmatmul.mubr.f32.vlgmr.msra.gmra.mxu0 %v5272_v39 }
 0xb09   : > { %7117 = vmatpush3.msra.mxu0 %v5312_v22  ;;  %7120 = vmatprep.mubr.f32.mxu0 %v5261_v44 }
 0xb0a   : > { %7118 = vmatprep.subr.mxu0 %v5319_v50  ;;  %7143 = vmatprep.subr.mxu1 %v5869_v25 }
 0xb0b   : > { %7119 = vmatpush3.msra.mxu0 %v5319_v50  ;;  %7144 = vmatpush3.msra.mxu1 %v5869_v25 }
 0xb0c   : > { %7121 = vmatmul.mubr.f32.vlgmr.msra.gmra.mxu0 %v5271_v53  ;;  %7130 = vmatprep.subr.mxu0 %v7936_v3  ;;  %v5707_v53 = vpop.permute.xlu0 %5706 }
 0xb0d   : > { %7131 = vmatpush3.msra.mxu0 %v7936_v3  ;;  %7145 = vmatprep.subr.mxu1 %v5876_v37  ;;  %v5722_v48 = vsel %vm1991_vm2, %v5720_v55, %v5707_v53 }
 0xb0e   : > { %7132 = vmatprep.subr.mxu0 %v7951_v9  ;;  %7146 = vmatpush3.msra.mxu1 %v5876_v37 }
 0xb0f   : > { %7133 = vmatpush3.msra.mxu0 %v7951_v9  ;;  %7147 = vmatprep.subr.mxu1 %v5883_v34 }
 0xb10   : > { %7134 = vmatprep.subr.mxu0 %v7959_v16  ;;  %7148 = vmatpush3.msra.mxu1 %v5883_v34 }
 0xb11   : > { %7135 = vmatpush3.msra.mxu0 %v7959_v16  ;;  %7163 = vmatprep.subr.mxu1 %v7936_v3 }
 0xb12   : > { %7136 = vmatprep.subr.mxu0 %v7972_v20 }
 0xb13   : > { %7137 = vmatpush3.msra.mxu0 %v7972_v20 }
 0xb14   : > { %7152 = vmatprep.subr.mxu0 %v7939_v4 }
 0xbbc   : > { %v7101_v10 = vpop.f32.mrf.mxu1 }
 0xbbe   : > { %v5358_v15 = vpop.f32.mrf.mxu1 }
 0xbc0   : > { %v7115_v28 = vpop.f32.mrf.mxu1 }
 0xbc2   : > { %v5522_v43 = vpop.f32.mrf.mxu1 }
 0xbc4   : > { %v7094_v33 = vpop.f32.mrf.mxu0  ;;  %v7129_v47 = vpop.f32.mrf.mxu1 }
 0xbc5   : > { %v5365_v42 = vadd.f32 %v7101_v10, %v7094_v33 }
 0xbc6   : > { %v5267_v38 = vpop.f32.mrf.mxu0  ;;  %v5686_v40 = vpop.f32.mrf.mxu1 }
 0xbc7   : > { %v5359_v56 = vadd.f32 %v5358_v15, %v5267_v38 }
 0xbc8   : > { %v7108_v60 = vpop.f32.mrf.mxu0 }
 0xbc9   : > { %v5448_v46 = vadd.f32 %v7108_v60, %v5365_v42 }
 0xbca   : > { %v5440_v29 = vpop.f32.mrf.mxu0 }
 0xbcb   : > { %v5441_v30 = vadd.f32 %v5440_v29, %v5359_v56  ;;  %v5531_v31 = vadd.f32 %v7115_v28, %v5448_v46  ;;  %v7255_v46 = vld [vmem:[%s7333_s10] sm:$0xff] }
 0xbcc   : > { %v7122_v49 = vpop.f32.mrf.mxu0 }
 0xbcd   : > { %v5614_v35 = vadd.f32 %v7122_v49, %v5531_v31  ;;  %v5523_v50 = vadd.f32 %v5522_v43, %v5441_v30  ;;  %v7254_v43 = vld [vmem:[%s7333_s10 + $0x8] sm:$0xff] }
 0xbce   : > { %v5607_v22 = vpop.f32.mrf.mxu0 }
 0xbcf   : > { %v5693_v32 = vadd.f32 %v7129_v47, %v5614_v35  ;;  %v5608_v52 = vadd.f32 %v5607_v22, %v5523_v50 }
 0xbd1   : > { %v5687_v36 = vadd.f32 %v5686_v40, %v5608_v52  ;;  %5716 = vrot.lane.b32.xlu1 %v5693_v32, %s7273_s13 }
 0xbd3   : > { %5714 = vrot.lane.b32.xlu0 %v5687_v36, %s7273_s13 }
 0xc43   : > { %v5717_v39 = vpop.permute.xlu1 %5716 }
 0xc44   : > { %v5726_v44 = vsel %vm5724_vm3, %v5723_v54, %v5717_v39 }
 0xc45   : > { %v5742_v57 = vsel %vm330_vm0, %v5726_v44, 0  ;;  %v5715_v59 = vpop.permute.xlu0 %5714 }
 0xc46   : > { %v5823_v62 = vand.u32 4294901760, %v5742_v57  ;;  %v5725_v63 = vsel %vm5724_vm3, %v5722_v48, %v5715_v59 }
 0xc47   : > { %v5739_v0 = vsel %vm330_vm0, %v5725_v63, 0 }
 0xc48   : > { %v5824_v1 = vsub.f32 %v5742_v57, %v5823_v62  ;;  %v5813_v2 = vand.u32 4294901760, %v5739_v0 }
 0xc4a   : > { %v5814_v6 = vsub.f32 %v5739_v0, %v5813_v2  ;;  %7149 = vmatprep.mubr.f32.mxu1 %v5813_v2  ;;  %v5825_v58 = vand.u32 4294901760, %v5824_v1 }
 0xc4b   : > { %7150 = vmatmul.mubr.f32.vlgmr.msra.gmra.mxu1 %v5823_v62 }
 0xc4c   : > { %7164 = vmatpush3.msra.mxu1 %v7936_v3  ;;  %v5815_v7 = vand.u32 4294901760, %v5814_v6  ;;  %v5826_v8 = vsub.f32 %v5824_v1, %v5825_v58 }
 0xc4d   : > { %7165 = vmatprep.subr.mxu1 %v7951_v9 }
 0xc4e   : > { %7166 = vmatpush3.msra.mxu1 %v7951_v9  ;;  %7171 = vmatprep.mubr.f32.mxu1 %v5815_v7  ;;  %v5816_v61 = vsub.f32 %v5814_v6, %v5815_v7  ;;  %v5827_v12 = vand.u32 4294901760, %v5826_v8 }
 0xc4f   : > { %7167 = vmatprep.subr.mxu1 %v7959_v16 }
 0xc50   : > { %7168 = vmatpush3.msra.mxu1 %v7959_v16  ;;  %v5817_v10 = vand.u32 4294901760, %v5816_v61 }
 0xc51   : > { %7169 = vmatprep.subr.mxu1 %v7972_v20 }
 0xc52   : > { %7170 = vmatpush3.msra.mxu1 %v7972_v20  ;;  %7138 = vmatprep.mubr.f32.mxu0 %v5817_v10 }
 0xc53   : > { %7172 = vmatmul.mubr.f32.vlgmr.msra.gmra.mxu1 %v5825_v58  ;;  %7185 = vmatprep.subr.mxu1 %v7936_v3 }
 0xc54   : > { %7139 = vmatmul.mubr.f32.vlgmr.msra.gmra.mxu0 %v5827_v12  ;;  %7186 = vmatpush3.msra.mxu1 %v7936_v3 }
 0xc55   : > { %7153 = vmatpush3.msra.mxu0 %v7939_v4  ;;  %7193 = vmatprep.mubr.f32.mxu1 %v5813_v2  ;;  %v6356_v4 = vld [vmem:[%s8054_s7] ss:$0 sm:$0xff] }
 0xc56   : > { %7154 = vmatprep.subr.mxu0 %v7957_v14  ;;  %7160 = vmatprep.mubr.f32.mxu0 %v5814_v6 }
 0xc57   : > { %7187 = vmatprep.subr.mxu1 %v7951_v9  ;;  %7155 = vmatpush3.msra.mxu0 %v7957_v14 }
 0xc58   : > { %7188 = vmatpush3.msra.mxu1 %v7951_v9  ;;  %7156 = vmatprep.subr.mxu0 %v7970_v19 }
 0xc59   : > { %7189 = vmatprep.subr.mxu1 %v7959_v16  ;;  %7157 = vmatpush3.msra.mxu0 %v7970_v19 }
 0xc5a   : > { %7190 = vmatpush3.msra.mxu1 %v7959_v16  ;;  %7158 = vmatprep.subr.mxu0 %v7982_v24 }
 0xc5b   : > { %7191 = vmatprep.subr.mxu1 %v7972_v20  ;;  %7159 = vmatpush3.msra.mxu0 %v7982_v24 }
 0xc5c   : > { %7192 = vmatpush3.msra.mxu1 %v7972_v20  ;;  %7161 = vmatmul.mubr.f32.vlgmr.msra.gmra.mxu0 %v5824_v1 }
 0xc5d   : > { %7174 = vmatprep.subr.mxu0 %v7944_v5  ;;  %7194 = vmatmul.mubr.f32.vlgmr.msra.gmra.mxu1 %v5823_v62 }
 0xc5e   : > { %7175 = vmatpush3.msra.mxu0 %v7944_v5  ;;  %7182 = vmatprep.mubr.f32.mxu0 %v5813_v2 }
 0xc5f   : > { %7176 = vmatprep.subr.mxu0 %v7967_v18 }
 0xc60   : > { %7177 = vmatpush3.msra.mxu0 %v7967_v18 }
 0xc61   : > { %7178 = vmatprep.subr.mxu0 %v7979_v23 }
 0xc62   : > { %7179 = vmatpush3.msra.mxu0 %v7979_v23 }
 0xc63   : > { %7180 = vmatprep.subr.mxu0 %v7989_v27 }
 0xc64   : > { %7181 = vmatpush3.msra.mxu0 %v7989_v27 }
 0xc65   : > { %7183 = vmatmul.mubr.f32.vlgmr.msra.gmra.mxu0 %v5823_v62 }
 0xd0b   : > { %v7151_v5 = vpop.f32.mrf.mxu1 }
 0xd0d   : > { %v5920_v18 = vpop.f32.mrf.mxu1 }
 0xd13   : > { %v7173_v20 = vpop.f32.mrf.mxu1 }
 0xd14   : > { %v7140_v3 = vpop.f32.mrf.mxu0 }
 0xd15   : > { %v5830_v14 = vadd.f32 %v7140_v3, %v6356_v4  ;;  %v6090_v25 = vpop.f32.mrf.mxu1 }
 0xd16   : > { %v5819_v9 = vpop.f32.mrf.mxu0 }
 0xd17   : > { %v5820_v16 = vadd.f32 %v6356_v4, %v5819_v9  ;;  %v5927_v19 = vadd.f32 %v7151_v5, %v5830_v14 }
 0xd19   : > { %v5921_v23 = vadd.f32 %v5920_v18, %v5820_v16 }
 0xd1c   : > { %v7162_v17 = vpop.f32.mrf.mxu0 }
 0xd1d   : > { %v6014_v21 = vadd.f32 %v7162_v17, %v5927_v19  ;;  %v7195_v27 = vpop.f32.mrf.mxu1 }
 0xd1e   : > { %v6006_v15 = vpop.f32.mrf.mxu0 }
 0xd1f   : > { %v6007_v24 = vadd.f32 %v6006_v15, %v5921_v23  ;;  %v6099_v26 = vadd.f32 %v7173_v20, %v6014_v21  ;;  %v6262_v34 = vpop.f32.mrf.mxu1 }
 0xd21   : > { %v6091_v37 = vadd.f32 %v6090_v25, %v6007_v24 }
 0xd25   : > { %v7184_v28 = vpop.f32.mrf.mxu0 }
 0xd26   : > { %v6188_v33 = vadd.f32 %v7184_v28, %v6099_v26 }
 0xd27   : > { %v6181_v13 = vpop.f32.mrf.mxu0 }
 0xd28   : > { %v6269_v38 = vadd.f32 %v7195_v27, %v6188_v33  ;;  %v6182_v42 = vadd.f32 %v6181_v13, %v6091_v37 }
 0xd2a   : > { %v6273_v60 = vadd.f32 %v7254_v43, %v6269_v38  ;;  %v6263_v56 = vadd.f32 %v6262_v34, %v6182_v42 }
 0xd2c   : > { %6275 = vst.msk [vmem:[%s325_s18 + $0x8] sm:$0xff] %vm330_vm0, %v6273_v60  ;;  %v6272_v29 = vadd.f32 %v7255_v46, %v6263_v56 }
 0xd2e   : > { %6274 = vst.msk [vmem:[%s325_s18] sm:$0xff] %vm330_vm0, %v6272_v29 }
 0xd2f PF: > { %s18_s27 = sadd.s32 1, %s7262_s27  }
 0xd30   : > { %p15_p4 = scmp.ge.s32.totalorder %s18_s27, 4  }
 0xd32   :  { %17 = sbr.rel (!%p15_p4) target bundleno = 1 (0x1), region = 85 }

</bundles_post_ra>
